<compile_context>
chip_gen: v6e
topology: v6e:2x2x1
jax: 0.10.0
libtpu: 0.0.40
codegen_flags: <defaults>
</compile_context>

<pallas_src>
import math

import jax
import jax.numpy as jnp
from jax.experimental import pallas as pl
from jax.experimental.pallas import tpu as pltpu


def _make_encoder_kernel(prefix_len, num_layers, hp, tb):
    """Stacked-LSTM encoder over one batch tile of size `tb` (time-major)."""

    def sigmoid(x):
        # tanh-based sigmoid: single EUP op, no exp+divide on the critical path.
        return 0.5 * (jnp.tanh(0.5 * x) + 1.0)

    def kernel(prefix_ref, *rest):
        w_refs = rest[:3 * num_layers]
        enc_ref, hid_ref, cell_ref, seq_ref = rest[3 * num_layers:]

        x_seq = prefix_ref[...]                              # (P, tb, feat_in) f32

        for l in range(num_layers):
            wih = w_refs[3 * l][...]                         # (feat_in, 4*hp) bf16
            whh = w_refs[3 * l + 1][...]                     # (hp, 4*hp)      bf16
            b = w_refs[3 * l + 2][...]                       # (1, 4*hp)       f32
            feat_in = x_seq.shape[-1]
            last = (l == num_layers - 1)

            # Hoisted input projection: all prefix steps in one MXU matmul.
            xg_all = jnp.dot(
                x_seq.reshape(prefix_len * tb, feat_in).astype(jnp.bfloat16),
                wih, preferred_element_type=jnp.float32,
            ).reshape(prefix_len, tb, 4 * hp)

            h = jnp.zeros((tb, hp), jnp.float32)
            c = jnp.zeros((tb, hp), jnp.float32)
            for p in range(prefix_len):
                gates = (xg_all[p]
                         + jnp.dot(h.astype(jnp.bfloat16), whh,
                                   preferred_element_type=jnp.float32)
                         + b)
                # PyTorch gate order i, f, g, o; each slice is a full, aligned vreg.
                i = sigmoid(gates[:, 0 * hp:1 * hp])
                f = sigmoid(gates[:, 1 * hp:2 * hp])
                g = jnp.tanh(gates[:, 2 * hp:3 * hp])
                o = sigmoid(gates[:, 3 * hp:4 * hp])
                c = f * c + i * g
                h = o * jnp.tanh(c)
                if last:
                    enc_ref[p, :, :] = h                     # lane-dense (tb, hp) store
                else:
                    seq_ref[p, :, :] = h

            hid_ref[l, :, :] = h
            cell_ref[l, :, :] = c

            if not last:
                # TODO(synk): nn.LSTM inter-layer dropout is train-mode only; omitted (inference forward).
                x_seq = seq_ref[...]

    return kernel


def _pad_gates(w, h, hp):
    """(..., 4*h) -> (..., 4*hp): place each gate block (i,f,g,o) at a
    128-lane-aligned offset, zero-padding lanes h..hp of every gate."""
    pad = [(0, 0)] * (w.ndim - 1) + [(0, hp - h)]
    return jnp.concatenate(
        [jnp.pad(w[..., k * h:(k + 1) * h], pad) for k in range(4)], axis=-1)


def init_params(key, input_size, hidden_size, num_layers):
    h = hidden_size
    s = 1.0 / math.sqrt(h)
    keys = jax.random.split(key, 4 * num_layers)
    params = {}
    for l in range(num_layers):
        in_l = input_size if l == 0 else h
        k0, k1, k2, k3 = keys[4 * l:4 * l + 4]
        # stored pre-transposed: (in_features, 4H) so steps are plain x @ W
        params[f"wih_{l}"] = jax.random.uniform(k0, (in_l, 4 * h), jnp.float32, -s, s)
        params[f"whh_{l}"] = jax.random.uniform(k1, (h, 4 * h), jnp.float32, -s, s)
        b_ih = jax.random.uniform(k2, (1, 4 * h), jnp.float32, -s, s)
        b_hh = jax.random.uniform(k3, (1, 4 * h), jnp.float32, -s, s)
        params[f"b_{l}"] = b_ih + b_hh        # PyTorch LSTM adds both biases
    return params


def encoder_forward(params, prefix, hidden_size, num_layers):
    """Pallas equivalent of Encoder.forward(prefix).

    Returns (enc_states (B,P,H), hidden (L,B,H), cell (L,B,H)), matching
    nn.LSTM(batch_first=True).
    """
    b, p_len, feat = prefix.shape
    h = hidden_size
    hp = ((h + 127) // 128) * 128          # pad hidden so each gate is vreg-aligned
    tb = 8                                  # sublane-full batch tile
    bp = ((b + tb - 1) // tb) * tb

    # time-major, batch-padded input (feature axis on lanes)
    x = jnp.transpose(prefix.astype(jnp.float32), (1, 0, 2))     # (P, B, F)
    x = jnp.pad(x, ((0, 0), (0, bp - b), (0, 0)))                # (P, Bp, F)

    # pad / cast per-layer weights (bf16 weights, f32 bias)
    const2d = lambda bt: (0, 0)
    w_args, w_specs = [], []
    for l in range(num_layers):
        in_lp = feat if l == 0 else hp
        wih = _pad_gates(params[f"wih_{l}"], h, hp)
        if l > 0:
            wih = jnp.pad(wih, ((0, hp - h), (0, 0)))
        whh = jnp.pad(_pad_gates(params[f"whh_{l}"], h, hp), ((0, hp - h), (0, 0)))
        bias = _pad_gates(params[f"b_{l}"], h, hp)
        w_args += [wih.astype(jnp.bfloat16), whh.astype(jnp.bfloat16),
                   bias.astype(jnp.float32)]
        w_specs += [pl.BlockSpec((in_lp, 4 * hp), const2d),
                    pl.BlockSpec((hp, 4 * hp), const2d),
                    pl.BlockSpec((1, 4 * hp), const2d)]

    kernel = _make_encoder_kernel(p_len, num_layers, hp, tb)

    enc, hid, cell = pl.pallas_call(
        kernel,
        out_shape=(jax.ShapeDtypeStruct((p_len, bp, hp), jnp.float32),
                   jax.ShapeDtypeStruct((num_layers, bp, hp), jnp.float32),
                   jax.ShapeDtypeStruct((num_layers, bp, hp), jnp.float32)),
        grid_spec=pltpu.PrefetchScalarGridSpec(
            num_scalar_prefetch=0,
            grid=(bp // tb,),
            in_specs=[pl.BlockSpec((p_len, tb, feat), lambda bt: (0, bt, 0))] + w_specs,
            out_specs=(pl.BlockSpec((p_len, tb, hp), lambda bt: (0, bt, 0)),
                       pl.BlockSpec((num_layers, tb, hp), lambda bt: (0, bt, 0)),
                       pl.BlockSpec((num_layers, tb, hp), lambda bt: (0, bt, 0))),
            scratch_shapes=[pltpu.VMEM((p_len, tb, hp), jnp.float32)]),
        compiler_params=pltpu.CompilerParams(dimension_semantics=("parallel",)),
    )(x, *w_args)

    enc_states = jnp.transpose(enc, (1, 0, 2))[:b, :, :h]
    hidden = hid[:, :b, :h]
    cell = cell[:, :b, :h]
    return enc_states, hidden, cell


if __name__ == "__main__":
    BATCH, PREFIX_LEN = 2, 6
    INPUT_SIZE, HIDDEN, NUM_LAYERS = 10, 32, 2
    DROPOUT = 0.1   # nn.LSTM applies dropout only in train mode; no effect here

    root = jax.random.PRNGKey(0)
    k_param, k_prefix = jax.random.split(root)

    params = init_params(k_param, INPUT_SIZE, HIDDEN, NUM_LAYERS)
    prefix = jax.random.normal(k_prefix, (BATCH, PREFIX_LEN, INPUT_SIZE), jnp.float32)

    enc_states, hidden, cell = encoder_forward(params, prefix, HIDDEN, NUM_LAYERS)
    enc_states, hidden, cell = jax.block_until_ready((enc_states, hidden, cell))

    assert enc_states.shape == (BATCH, PREFIX_LEN, HIDDEN)
    assert hidden.shape == (NUM_LAYERS, BATCH, HIDDEN)
    assert cell.shape == (NUM_LAYERS, BATCH, HIDDEN)
    assert bool(jnp.all(jnp.isfinite(enc_states)))
    assert bool(jnp.all(jnp.isfinite(hidden))) and bool(jnp.all(jnp.isfinite(cell)))
    print("KERNEL_OK")
</pallas_src>

<mosaic_0001>
module attributes {stable_mosaic.version = 11 : i64} {
  func.func @kernel(%arg0: i32, %arg1: memref<6x8x10xf32, #tpu.memory_space<vmem>>, %arg2: memref<10x512xbf16, #tpu.memory_space<vmem>>, %arg3: memref<128x512xbf16, #tpu.memory_space<vmem>>, %arg4: memref<1x512xf32, #tpu.memory_space<vmem>>, %arg5: memref<128x512xbf16, #tpu.memory_space<vmem>>, %arg6: memref<128x512xbf16, #tpu.memory_space<vmem>>, %arg7: memref<1x512xf32, #tpu.memory_space<vmem>>, %arg8: memref<6x8x128xf32, #tpu.memory_space<vmem>>, %arg9: memref<2x8x128xf32, #tpu.memory_space<vmem>>, %arg10: memref<2x8x128xf32, #tpu.memory_space<vmem>>, %arg11: memref<6x8x128xf32, #tpu.memory_space<vmem>>) attributes {dimension_semantics = [#tpu.dimension_semantics<parallel>], iteration_bounds = array<i64: 1>, scalar_prefetch = 0 : i64, scratch_operands = 1 : i64, tpu.core_type = #tpu.core_type<tc>, window_params = [{transform_indices = @transform_0, window_bounds = array<i64: 6, 8, 10>}, {pipeline_mode = #tpu.pipeline_mode<synchronous>, transform_indices = @transform_1, window_bounds = array<i64: 10, 512>}, {pipeline_mode = #tpu.pipeline_mode<synchronous>, transform_indices = @transform_2, window_bounds = array<i64: 128, 512>}, {pipeline_mode = #tpu.pipeline_mode<synchronous>, transform_indices = @transform_3, window_bounds = array<i64: 1, 512>}, {pipeline_mode = #tpu.pipeline_mode<synchronous>, transform_indices = @transform_4, window_bounds = array<i64: 128, 512>}, {pipeline_mode = #tpu.pipeline_mode<synchronous>, transform_indices = @transform_5, window_bounds = array<i64: 128, 512>}, {pipeline_mode = #tpu.pipeline_mode<synchronous>, transform_indices = @transform_6, window_bounds = array<i64: 1, 512>}, {transform_indices = @transform_7, window_bounds = array<i64: 6, 8, 128>}, {transform_indices = @transform_8, window_bounds = array<i64: 2, 8, 128>}, {transform_indices = @transform_9, window_bounds = array<i64: 2, 8, 128>}]} {
    %c0 = arith.constant 0 : index
    %c0_0 = arith.constant 0 : index
    %c0_1 = arith.constant 0 : index
    %0 = vector.load %arg1[%c0, %c0_0, %c0_1] : memref<6x8x10xf32, #tpu.memory_space<vmem>>, vector<6x8x10xf32>
    %c0_2 = arith.constant 0 : index
    %c0_3 = arith.constant 0 : index
    %1 = vector.load %arg2[%c0_2, %c0_3] : memref<10x512xbf16, #tpu.memory_space<vmem>>, vector<10x512xbf16>
    %c0_4 = arith.constant 0 : index
    %c0_5 = arith.constant 0 : index
    %2 = vector.load %arg3[%c0_4, %c0_5] : memref<128x512xbf16, #tpu.memory_space<vmem>>, vector<128x512xbf16>
    %c0_6 = arith.constant 0 : index
    %c0_7 = arith.constant 0 : index
    %3 = vector.load %arg4[%c0_6, %c0_7] : memref<1x512xf32, #tpu.memory_space<vmem>>, vector<1x512xf32>
    %4 = vector.shape_cast %0 : vector<6x8x10xf32> to vector<48x10xf32>
    %5 = arith.truncf %4 : vector<48x10xf32> to vector<48x10xbf16>
    %cst = arith.constant dense<0.000000e+00> : vector<48x512xf32>
    %6 = tpu.matmul %5, %1, %cst {dimension_numbers = #tpu.dot_dimension_numbers<[1], [0], [0], [1], [0, 0, 1, 1], [], []>} : vector<48x10xbf16>, vector<10x512xbf16>, vector<48x512xf32> -> vector<48x512xf32>
    %7 = vector.shape_cast %6 : vector<48x512xf32> to vector<6x8x512xf32>
    %cst_8 = arith.constant 0.000000e+00 : f32
    %8 = vector.broadcast %cst_8 : f32 to vector<8x128xf32>
    %cst_9 = arith.constant 0.000000e+00 : f32
    %9 = vector.broadcast %cst_9 : f32 to vector<8x128xf32>
    %10 = vector.extract_strided_slice %7 {offsets = [0, 0, 0], sizes = [1, 8, 512], strides = [1, 1, 1]} : vector<6x8x512xf32> to vector<1x8x512xf32>
    %11 = vector.shape_cast %10 : vector<1x8x512xf32> to vector<8x512xf32>
    %12 = arith.truncf %8 : vector<8x128xf32> to vector<8x128xbf16>
    %cst_10 = arith.constant dense<0.000000e+00> : vector<8x512xf32>
    %13 = tpu.matmul %12, %2, %cst_10 {dimension_numbers = #tpu.dot_dimension_numbers<[1], [0], [0], [1], [0, 0, 1, 1], [], []>} : vector<8x128xbf16>, vector<128x512xbf16>, vector<8x512xf32> -> vector<8x512xf32>
    %14 = arith.addf %11, %13 : vector<8x512xf32>
    %15 = vector.broadcast %3 : vector<1x512xf32> to vector<8x512xf32>
    %16 = arith.addf %14, %15 : vector<8x512xf32>
    %17 = vector.extract_strided_slice %16 {offsets = [0, 0], sizes = [8, 128], strides = [1, 1]} : vector<8x512xf32> to vector<8x128xf32>
    %cst_11 = arith.constant 5.000000e-01 : f32
    %18 = vector.broadcast %cst_11 : f32 to vector<8x128xf32>
    %19 = arith.mulf %18, %17 : vector<8x128xf32>
    %20 = math.tanh %19 : vector<8x128xf32>
    %cst_12 = arith.constant 1.000000e+00 : f32
    %21 = vector.broadcast %cst_12 : f32 to vector<8x128xf32>
    %22 = arith.addf %20, %21 : vector<8x128xf32>
    %cst_13 = arith.constant 5.000000e-01 : f32
    %23 = vector.broadcast %cst_13 : f32 to vector<8x128xf32>
    %24 = arith.mulf %23, %22 : vector<8x128xf32>
    %25 = vector.extract_strided_slice %16 {offsets = [0, 128], sizes = [8, 128], strides = [1, 1]} : vector<8x512xf32> to vector<8x128xf32>
    %cst_14 = arith.constant 5.000000e-01 : f32
    %26 = vector.broadcast %cst_14 : f32 to vector<8x128xf32>
    %27 = arith.mulf %26, %25 : vector<8x128xf32>
    %28 = math.tanh %27 : vector<8x128xf32>
    %cst_15 = arith.constant 1.000000e+00 : f32
    %29 = vector.broadcast %cst_15 : f32 to vector<8x128xf32>
    %30 = arith.addf %28, %29 : vector<8x128xf32>
    %cst_16 = arith.constant 5.000000e-01 : f32
    %31 = vector.broadcast %cst_16 : f32 to vector<8x128xf32>
    %32 = arith.mulf %31, %30 : vector<8x128xf32>
    %33 = vector.extract_strided_slice %16 {offsets = [0, 256], sizes = [8, 128], strides = [1, 1]} : vector<8x512xf32> to vector<8x128xf32>
    %34 = math.tanh %33 : vector<8x128xf32>
    %35 = vector.extract_strided_slice %16 {offsets = [0, 384], sizes = [8, 128], strides = [1, 1]} : vector<8x512xf32> to vector<8x128xf32>
    %cst_17 = arith.constant 5.000000e-01 : f32
    %36 = vector.broadcast %cst_17 : f32 to vector<8x128xf32>
    %37 = arith.mulf %36, %35 : vector<8x128xf32>
    %38 = math.tanh %37 : vector<8x128xf32>
    %cst_18 = arith.constant 1.000000e+00 : f32
    %39 = vector.broadcast %cst_18 : f32 to vector<8x128xf32>
    %40 = arith.addf %38, %39 : vector<8x128xf32>
    %cst_19 = arith.constant 5.000000e-01 : f32
    %41 = vector.broadcast %cst_19 : f32 to vector<8x128xf32>
    %42 = arith.mulf %41, %40 : vector<8x128xf32>
    %43 = arith.mulf %32, %9 : vector<8x128xf32>
    %44 = arith.mulf %24, %34 : vector<8x128xf32>
    %45 = arith.addf %43, %44 : vector<8x128xf32>
    %46 = math.tanh %45 : vector<8x128xf32>
    %47 = arith.mulf %42, %46 : vector<8x128xf32>
    %c0_20 = arith.constant 0 : index
    %c0_21 = arith.constant 0 : index
    %c0_22 = arith.constant 0 : index
    %48 = vector.load %arg11[%c0_20, %c0_21, %c0_22] : memref<6x8x128xf32, #tpu.memory_space<vmem>>, vector<1x8x128xf32>
    %49 = vector.shape_cast %48 : vector<1x8x128xf32> to vector<8x128xf32>
    %50 = vector.shape_cast %47 : vector<8x128xf32> to vector<1x8x128xf32>
    tpu.vector_store %arg11[%c0_20, %c0_21, %c0_22], %50 {strides = array<i32>} : memref<6x8x128xf32, #tpu.memory_space<vmem>>, vector<1x8x128xf32>,
    %51 = vector.extract_strided_slice %7 {offsets = [1, 0, 0], sizes = [1, 8, 512], strides = [1, 1, 1]} : vector<6x8x512xf32> to vector<1x8x512xf32>
    %52 = vector.shape_cast %51 : vector<1x8x512xf32> to vector<8x512xf32>
    %53 = arith.truncf %47 : vector<8x128xf32> to vector<8x128xbf16>
    %cst_23 = arith.constant dense<0.000000e+00> : vector<8x512xf32>
    %54 = tpu.matmul %53, %2, %cst_23 {dimension_numbers = #tpu.dot_dimension_numbers<[1], [0], [0], [1], [0, 0, 1, 1], [], []>} : vector<8x128xbf16>, vector<128x512xbf16>, vector<8x512xf32> -> vector<8x512xf32>
    %55 = arith.addf %52, %54 : vector<8x512xf32>
    %56 = vector.broadcast %3 : vector<1x512xf32> to vector<8x512xf32>
    %57 = arith.addf %55, %56 : vector<8x512xf32>
    %58 = vector.extract_strided_slice %57 {offsets = [0, 0], sizes = [8, 128], strides = [1, 1]} : vector<8x512xf32> to vector<8x128xf32>
    %cst_24 = arith.constant 5.000000e-01 : f32
    %59 = vector.broadcast %cst_24 : f32 to vector<8x128xf32>
    %60 = arith.mulf %59, %58 : vector<8x128xf32>
    %61 = math.tanh %60 : vector<8x128xf32>
    %cst_25 = arith.constant 1.000000e+00 : f32
    %62 = vector.broadcast %cst_25 : f32 to vector<8x128xf32>
    %63 = arith.addf %61, %62 : vector<8x128xf32>
    %cst_26 = arith.constant 5.000000e-01 : f32
    %64 = vector.broadcast %cst_26 : f32 to vector<8x128xf32>
    %65 = arith.mulf %64, %63 : vector<8x128xf32>
    %66 = vector.extract_strided_slice %57 {offsets = [0, 128], sizes = [8, 128], strides = [1, 1]} : vector<8x512xf32> to vector<8x128xf32>
    %cst_27 = arith.constant 5.000000e-01 : f32
    %67 = vector.broadcast %cst_27 : f32 to vector<8x128xf32>
    %68 = arith.mulf %67, %66 : vector<8x128xf32>
    %69 = math.tanh %68 : vector<8x128xf32>
    %cst_28 = arith.constant 1.000000e+00 : f32
    %70 = vector.broadcast %cst_28 : f32 to vector<8x128xf32>
    %71 = arith.addf %69, %70 : vector<8x128xf32>
    %cst_29 = arith.constant 5.000000e-01 : f32
    %72 = vector.broadcast %cst_29 : f32 to vector<8x128xf32>
    %73 = arith.mulf %72, %71 : vector<8x128xf32>
    %74 = vector.extract_strided_slice %57 {offsets = [0, 256], sizes = [8, 128], strides = [1, 1]} : vector<8x512xf32> to vector<8x128xf32>
    %75 = math.tanh %74 : vector<8x128xf32>
    %76 = vector.extract_strided_slice %57 {offsets = [0, 384], sizes = [8, 128], strides = [1, 1]} : vector<8x512xf32> to vector<8x128xf32>
    %cst_30 = arith.constant 5.000000e-01 : f32
    %77 = vector.broadcast %cst_30 : f32 to vector<8x128xf32>
    %78 = arith.mulf %77, %76 : vector<8x128xf32>
    %79 = math.tanh %78 : vector<8x128xf32>
    %cst_31 = arith.constant 1.000000e+00 : f32
    %80 = vector.broadcast %cst_31 : f32 to vector<8x128xf32>
    %81 = arith.addf %79, %80 : vector<8x128xf32>
    %cst_32 = arith.constant 5.000000e-01 : f32
    %82 = vector.broadcast %cst_32 : f32 to vector<8x128xf32>
    %83 = arith.mulf %82, %81 : vector<8x128xf32>
    %84 = arith.mulf %73, %45 : vector<8x128xf32>
    %85 = arith.mulf %65, %75 : vector<8x128xf32>
    %86 = arith.addf %84, %85 : vector<8x128xf32>
    %87 = math.tanh %86 : vector<8x128xf32>
    %88 = arith.mulf %83, %87 : vector<8x128xf32>
    %c1 = arith.constant 1 : index
    %c0_33 = arith.constant 0 : index
    %c0_34 = arith.constant 0 : index
    %89 = vector.load %arg11[%c1, %c0_33, %c0_34] : memref<6x8x128xf32, #tpu.memory_space<vmem>>, vector<1x8x128xf32>
    %90 = vector.shape_cast %89 : vector<1x8x128xf32> to vector<8x128xf32>
    %91 = vector.shape_cast %88 : vector<8x128xf32> to vector<1x8x128xf32>
    tpu.vector_store %arg11[%c1, %c0_33, %c0_34], %91 {strides = array<i32>} : memref<6x8x128xf32, #tpu.memory_space<vmem>>, vector<1x8x128xf32>,
    %92 = vector.extract_strided_slice %7 {offsets = [2, 0, 0], sizes = [1, 8, 512], strides = [1, 1, 1]} : vector<6x8x512xf32> to vector<1x8x512xf32>
    %93 = vector.shape_cast %92 : vector<1x8x512xf32> to vector<8x512xf32>
    %94 = arith.truncf %88 : vector<8x128xf32> to vector<8x128xbf16>
    %cst_35 = arith.constant dense<0.000000e+00> : vector<8x512xf32>
    %95 = tpu.matmul %94, %2, %cst_35 {dimension_numbers = #tpu.dot_dimension_numbers<[1], [0], [0], [1], [0, 0, 1, 1], [], []>} : vector<8x128xbf16>, vector<128x512xbf16>, vector<8x512xf32> -> vector<8x512xf32>
    %96 = arith.addf %93, %95 : vector<8x512xf32>
    %97 = vector.broadcast %3 : vector<1x512xf32> to vector<8x512xf32>
    %98 = arith.addf %96, %97 : vector<8x512xf32>
    %99 = vector.extract_strided_slice %98 {offsets = [0, 0], sizes = [8, 128], strides = [1, 1]} : vector<8x512xf32> to vector<8x128xf32>
    %cst_36 = arith.constant 5.000000e-01 : f32
    %100 = vector.broadcast %cst_36 : f32 to vector<8x128xf32>
    %101 = arith.mulf %100, %99 : vector<8x128xf32>
    %102 = math.tanh %101 : vector<8x128xf32>
    %cst_37 = arith.constant 1.000000e+00 : f32
    %103 = vector.broadcast %cst_37 : f32 to vector<8x128xf32>
    %104 = arith.addf %102, %103 : vector<8x128xf32>
    %cst_38 = arith.constant 5.000000e-01 : f32
    %105 = vector.broadcast %cst_38 : f32 to vector<8x128xf32>
    %106 = arith.mulf %105, %104 : vector<8x128xf32>
    %107 = vector.extract_strided_slice %98 {offsets = [0, 128], sizes = [8, 128], strides = [1, 1]} : vector<8x512xf32> to vector<8x128xf32>
    %cst_39 = arith.constant 5.000000e-01 : f32
    %108 = vector.broadcast %cst_39 : f32 to vector<8x128xf32>
    %109 = arith.mulf %108, %107 : vector<8x128xf32>
    %110 = math.tanh %109 : vector<8x128xf32>
    %cst_40 = arith.constant 1.000000e+00 : f32
    %111 = vector.broadcast %cst_40 : f32 to vector<8x128xf32>
    %112 = arith.addf %110, %111 : vector<8x128xf32>
    %cst_41 = arith.constant 5.000000e-01 : f32
    %113 = vector.broadcast %cst_41 : f32 to vector<8x128xf32>
    %114 = arith.mulf %113, %112 : vector<8x128xf32>
    %115 = vector.extract_strided_slice %98 {offsets = [0, 256], sizes = [8, 128], strides = [1, 1]} : vector<8x512xf32> to vector<8x128xf32>
    %116 = math.tanh %115 : vector<8x128xf32>
    %117 = vector.extract_strided_slice %98 {offsets = [0, 384], sizes = [8, 128], strides = [1, 1]} : vector<8x512xf32> to vector<8x128xf32>
    %cst_42 = arith.constant 5.000000e-01 : f32
    %118 = vector.broadcast %cst_42 : f32 to vector<8x128xf32>
    %119 = arith.mulf %118, %117 : vector<8x128xf32>
    %120 = math.tanh %119 : vector<8x128xf32>
    %cst_43 = arith.constant 1.000000e+00 : f32
    %121 = vector.broadcast %cst_43 : f32 to vector<8x128xf32>
    %122 = arith.addf %120, %121 : vector<8x128xf32>
    %cst_44 = arith.constant 5.000000e-01 : f32
    %123 = vector.broadcast %cst_44 : f32 to vector<8x128xf32>
    %124 = arith.mulf %123, %122 : vector<8x128xf32>
    %125 = arith.mulf %114, %86 : vector<8x128xf32>
    %126 = arith.mulf %106, %116 : vector<8x128xf32>
    %127 = arith.addf %125, %126 : vector<8x128xf32>
    %128 = math.tanh %127 : vector<8x128xf32>
    %129 = arith.mulf %124, %128 : vector<8x128xf32>
    %c2 = arith.constant 2 : index
    %c0_45 = arith.constant 0 : index
    %c0_46 = arith.constant 0 : index
    %130 = vector.load %arg11[%c2, %c0_45, %c0_46] : memref<6x8x128xf32, #tpu.memory_space<vmem>>, vector<1x8x128xf32>
    %131 = vector.shape_cast %130 : vector<1x8x128xf32> to vector<8x128xf32>
    %132 = vector.shape_cast %129 : vector<8x128xf32> to vector<1x8x128xf32>
    tpu.vector_store %arg11[%c2, %c0_45, %c0_46], %132 {strides = array<i32>} : memref<6x8x128xf32, #tpu.memory_space<vmem>>, vector<1x8x128xf32>,
    %133 = vector.extract_strided_slice %7 {offsets = [3, 0, 0], sizes = [1, 8, 512], strides = [1, 1, 1]} : vector<6x8x512xf32> to vector<1x8x512xf32>
    %134 = vector.shape_cast %133 : vector<1x8x512xf32> to vector<8x512xf32>
    %135 = arith.truncf %129 : vector<8x128xf32> to vector<8x128xbf16>
    %cst_47 = arith.constant dense<0.000000e+00> : vector<8x512xf32>
    %136 = tpu.matmul %135, %2, %cst_47 {dimension_numbers = #tpu.dot_dimension_numbers<[1], [0], [0], [1], [0, 0, 1, 1], [], []>} : vector<8x128xbf16>, vector<128x512xbf16>, vector<8x512xf32> -> vector<8x512xf32>
    %137 = arith.addf %134, %136 : vector<8x512xf32>
    %138 = vector.broadcast %3 : vector<1x512xf32> to vector<8x512xf32>
    %139 = arith.addf %137, %138 : vector<8x512xf32>
    %140 = vector.extract_strided_slice %139 {offsets = [0, 0], sizes = [8, 128], strides = [1, 1]} : vector<8x512xf32> to vector<8x128xf32>
    %cst_48 = arith.constant 5.000000e-01 : f32
    %141 = vector.broadcast %cst_48 : f32 to vector<8x128xf32>
    %142 = arith.mulf %141, %140 : vector<8x128xf32>
    %143 = math.tanh %142 : vector<8x128xf32>
    %cst_49 = arith.constant 1.000000e+00 : f32
    %144 = vector.broadcast %cst_49 : f32 to vector<8x128xf32>
    %145 = arith.addf %143, %144 : vector<8x128xf32>
    %cst_50 = arith.constant 5.000000e-01 : f32
    %146 = vector.broadcast %cst_50 : f32 to vector<8x128xf32>
    %147 = arith.mulf %146, %145 : vector<8x128xf32>
    %148 = vector.extract_strided_slice %139 {offsets = [0, 128], sizes = [8, 128], strides = [1, 1]} : vector<8x512xf32> to vector<8x128xf32>
    %cst_51 = arith.constant 5.000000e-01 : f32
    %149 = vector.broadcast %cst_51 : f32 to vector<8x128xf32>
    %150 = arith.mulf %149, %148 : vector<8x128xf32>
    %151 = math.tanh %150 : vector<8x128xf32>
    %cst_52 = arith.constant 1.000000e+00 : f32
    %152 = vector.broadcast %cst_52 : f32 to vector<8x128xf32>
    %153 = arith.addf %151, %152 : vector<8x128xf32>
    %cst_53 = arith.constant 5.000000e-01 : f32
    %154 = vector.broadcast %cst_53 : f32 to vector<8x128xf32>
    %155 = arith.mulf %154, %153 : vector<8x128xf32>
    %156 = vector.extract_strided_slice %139 {offsets = [0, 256], sizes = [8, 128], strides = [1, 1]} : vector<8x512xf32> to vector<8x128xf32>
    %157 = math.tanh %156 : vector<8x128xf32>
    %158 = vector.extract_strided_slice %139 {offsets = [0, 384], sizes = [8, 128], strides = [1, 1]} : vector<8x512xf32> to vector<8x128xf32>
    %cst_54 = arith.constant 5.000000e-01 : f32
    %159 = vector.broadcast %cst_54 : f32 to vector<8x128xf32>
    %160 = arith.mulf %159, %158 : vector<8x128xf32>
    %161 = math.tanh %160 : vector<8x128xf32>
    %cst_55 = arith.constant 1.000000e+00 : f32
    %162 = vector.broadcast %cst_55 : f32 to vector<8x128xf32>
    %163 = arith.addf %161, %162 : vector<8x128xf32>
    %cst_56 = arith.constant 5.000000e-01 : f32
    %164 = vector.broadcast %cst_56 : f32 to vector<8x128xf32>
    %165 = arith.mulf %164, %163 : vector<8x128xf32>
    %166 = arith.mulf %155, %127 : vector<8x128xf32>
    %167 = arith.mulf %147, %157 : vector<8x128xf32>
    %168 = arith.addf %166, %167 : vector<8x128xf32>
    %169 = math.tanh %168 : vector<8x128xf32>
    %170 = arith.mulf %165, %169 : vector<8x128xf32>
    %c3 = arith.constant 3 : index
    %c0_57 = arith.constant 0 : index
    %c0_58 = arith.constant 0 : index
    %171 = vector.load %arg11[%c3, %c0_57, %c0_58] : memref<6x8x128xf32, #tpu.memory_space<vmem>>, vector<1x8x128xf32>
    %172 = vector.shape_cast %171 : vector<1x8x128xf32> to vector<8x128xf32>
    %173 = vector.shape_cast %170 : vector<8x128xf32> to vector<1x8x128xf32>
    tpu.vector_store %arg11[%c3, %c0_57, %c0_58], %173 {strides = array<i32>} : memref<6x8x128xf32, #tpu.memory_space<vmem>>, vector<1x8x128xf32>,
    %174 = vector.extract_strided_slice %7 {offsets = [4, 0, 0], sizes = [1, 8, 512], strides = [1, 1, 1]} : vector<6x8x512xf32> to vector<1x8x512xf32>
    %175 = vector.shape_cast %174 : vector<1x8x512xf32> to vector<8x512xf32>
    %176 = arith.truncf %170 : vector<8x128xf32> to vector<8x128xbf16>
    %cst_59 = arith.constant dense<0.000000e+00> : vector<8x512xf32>
    %177 = tpu.matmul %176, %2, %cst_59 {dimension_numbers = #tpu.dot_dimension_numbers<[1], [0], [0], [1], [0, 0, 1, 1], [], []>} : vector<8x128xbf16>, vector<128x512xbf16>, vector<8x512xf32> -> vector<8x512xf32>
    %178 = arith.addf %175, %177 : vector<8x512xf32>
    %179 = vector.broadcast %3 : vector<1x512xf32> to vector<8x512xf32>
    %180 = arith.addf %178, %179 : vector<8x512xf32>
    %181 = vector.extract_strided_slice %180 {offsets = [0, 0], sizes = [8, 128], strides = [1, 1]} : vector<8x512xf32> to vector<8x128xf32>
    %cst_60 = arith.constant 5.000000e-01 : f32
    %182 = vector.broadcast %cst_60 : f32 to vector<8x128xf32>
    %183 = arith.mulf %182, %181 : vector<8x128xf32>
    %184 = math.tanh %183 : vector<8x128xf32>
    %cst_61 = arith.constant 1.000000e+00 : f32
    %185 = vector.broadcast %cst_61 : f32 to vector<8x128xf32>
    %186 = arith.addf %184, %185 : vector<8x128xf32>
    %cst_62 = arith.constant 5.000000e-01 : f32
    %187 = vector.broadcast %cst_62 : f32 to vector<8x128xf32>
    %188 = arith.mulf %187, %186 : vector<8x128xf32>
    %189 = vector.extract_strided_slice %180 {offsets = [0, 128], sizes = [8, 128], strides = [1, 1]} : vector<8x512xf32> to vector<8x128xf32>
    %cst_63 = arith.constant 5.000000e-01 : f32
    %190 = vector.broadcast %cst_63 : f32 to vector<8x128xf32>
    %191 = arith.mulf %190, %189 : vector<8x128xf32>
    %192 = math.tanh %191 : vector<8x128xf32>
    %cst_64 = arith.constant 1.000000e+00 : f32
    %193 = vector.broadcast %cst_64 : f32 to vector<8x128xf32>
    %194 = arith.addf %192, %193 : vector<8x128xf32>
    %cst_65 = arith.constant 5.000000e-01 : f32
    %195 = vector.broadcast %cst_65 : f32 to vector<8x128xf32>
    %196 = arith.mulf %195, %194 : vector<8x128xf32>
    %197 = vector.extract_strided_slice %180 {offsets = [0, 256], sizes = [8, 128], strides = [1, 1]} : vector<8x512xf32> to vector<8x128xf32>
    %198 = math.tanh %197 : vector<8x128xf32>
    %199 = vector.extract_strided_slice %180 {offsets = [0, 384], sizes = [8, 128], strides = [1, 1]} : vector<8x512xf32> to vector<8x128xf32>
    %cst_66 = arith.constant 5.000000e-01 : f32
    %200 = vector.broadcast %cst_66 : f32 to vector<8x128xf32>
    %201 = arith.mulf %200, %199 : vector<8x128xf32>
    %202 = math.tanh %201 : vector<8x128xf32>
    %cst_67 = arith.constant 1.000000e+00 : f32
    %203 = vector.broadcast %cst_67 : f32 to vector<8x128xf32>
    %204 = arith.addf %202, %203 : vector<8x128xf32>
    %cst_68 = arith.constant 5.000000e-01 : f32
    %205 = vector.broadcast %cst_68 : f32 to vector<8x128xf32>
    %206 = arith.mulf %205, %204 : vector<8x128xf32>
    %207 = arith.mulf %196, %168 : vector<8x128xf32>
    %208 = arith.mulf %188, %198 : vector<8x128xf32>
    %209 = arith.addf %207, %208 : vector<8x128xf32>
    %210 = math.tanh %209 : vector<8x128xf32>
    %211 = arith.mulf %206, %210 : vector<8x128xf32>
    %c4 = arith.constant 4 : index
    %c0_69 = arith.constant 0 : index
    %c0_70 = arith.constant 0 : index
    %212 = vector.load %arg11[%c4, %c0_69, %c0_70] : memref<6x8x128xf32, #tpu.memory_space<vmem>>, vector<1x8x128xf32>
    %213 = vector.shape_cast %212 : vector<1x8x128xf32> to vector<8x128xf32>
    %214 = vector.shape_cast %211 : vector<8x128xf32> to vector<1x8x128xf32>
    tpu.vector_store %arg11[%c4, %c0_69, %c0_70], %214 {strides = array<i32>} : memref<6x8x128xf32, #tpu.memory_space<vmem>>, vector<1x8x128xf32>,
    %215 = vector.extract_strided_slice %7 {offsets = [5, 0, 0], sizes = [1, 8, 512], strides = [1, 1, 1]} : vector<6x8x512xf32> to vector<1x8x512xf32>
    %216 = vector.shape_cast %215 : vector<1x8x512xf32> to vector<8x512xf32>
    %217 = arith.truncf %211 : vector<8x128xf32> to vector<8x128xbf16>
    %cst_71 = arith.constant dense<0.000000e+00> : vector<8x512xf32>
    %218 = tpu.matmul %217, %2, %cst_71 {dimension_numbers = #tpu.dot_dimension_numbers<[1], [0], [0], [1], [0, 0, 1, 1], [], []>} : vector<8x128xbf16>, vector<128x512xbf16>, vector<8x512xf32> -> vector<8x512xf32>
    %219 = arith.addf %216, %218 : vector<8x512xf32>
    %220 = vector.broadcast %3 : vector<1x512xf32> to vector<8x512xf32>
    %221 = arith.addf %219, %220 : vector<8x512xf32>
    %222 = vector.extract_strided_slice %221 {offsets = [0, 0], sizes = [8, 128], strides = [1, 1]} : vector<8x512xf32> to vector<8x128xf32>
    %cst_72 = arith.constant 5.000000e-01 : f32
    %223 = vector.broadcast %cst_72 : f32 to vector<8x128xf32>
    %224 = arith.mulf %223, %222 : vector<8x128xf32>
    %225 = math.tanh %224 : vector<8x128xf32>
    %cst_73 = arith.constant 1.000000e+00 : f32
    %226 = vector.broadcast %cst_73 : f32 to vector<8x128xf32>
    %227 = arith.addf %225, %226 : vector<8x128xf32>
    %cst_74 = arith.constant 5.000000e-01 : f32
    %228 = vector.broadcast %cst_74 : f32 to vector<8x128xf32>
    %229 = arith.mulf %228, %227 : vector<8x128xf32>
    %230 = vector.extract_strided_slice %221 {offsets = [0, 128], sizes = [8, 128], strides = [1, 1]} : vector<8x512xf32> to vector<8x128xf32>
    %cst_75 = arith.constant 5.000000e-01 : f32
    %231 = vector.broadcast %cst_75 : f32 to vector<8x128xf32>
    %232 = arith.mulf %231, %230 : vector<8x128xf32>
    %233 = math.tanh %232 : vector<8x128xf32>
    %cst_76 = arith.constant 1.000000e+00 : f32
    %234 = vector.broadcast %cst_76 : f32 to vector<8x128xf32>
    %235 = arith.addf %233, %234 : vector<8x128xf32>
    %cst_77 = arith.constant 5.000000e-01 : f32
    %236 = vector.broadcast %cst_77 : f32 to vector<8x128xf32>
    %237 = arith.mulf %236, %235 : vector<8x128xf32>
    %238 = vector.extract_strided_slice %221 {offsets = [0, 256], sizes = [8, 128], strides = [1, 1]} : vector<8x512xf32> to vector<8x128xf32>
    %239 = math.tanh %238 : vector<8x128xf32>
    %240 = vector.extract_strided_slice %221 {offsets = [0, 384], sizes = [8, 128], strides = [1, 1]} : vector<8x512xf32> to vector<8x128xf32>
    %cst_78 = arith.constant 5.000000e-01 : f32
    %241 = vector.broadcast %cst_78 : f32 to vector<8x128xf32>
    %242 = arith.mulf %241, %240 : vector<8x128xf32>
    %243 = math.tanh %242 : vector<8x128xf32>
    %cst_79 = arith.constant 1.000000e+00 : f32
    %244 = vector.broadcast %cst_79 : f32 to vector<8x128xf32>
    %245 = arith.addf %243, %244 : vector<8x128xf32>
    %cst_80 = arith.constant 5.000000e-01 : f32
    %246 = vector.broadcast %cst_80 : f32 to vector<8x128xf32>
    %247 = arith.mulf %246, %245 : vector<8x128xf32>
    %248 = arith.mulf %237, %209 : vector<8x128xf32>
    %249 = arith.mulf %229, %239 : vector<8x128xf32>
    %250 = arith.addf %248, %249 : vector<8x128xf32>
    %251 = math.tanh %250 : vector<8x128xf32>
    %252 = arith.mulf %247, %251 : vector<8x128xf32>
    %c5 = arith.constant 5 : index
    %c0_81 = arith.constant 0 : index
    %c0_82 = arith.constant 0 : index
    %253 = vector.load %arg11[%c5, %c0_81, %c0_82] : memref<6x8x128xf32, #tpu.memory_space<vmem>>, vector<1x8x128xf32>
    %254 = vector.shape_cast %253 : vector<1x8x128xf32> to vector<8x128xf32>
    %255 = vector.shape_cast %252 : vector<8x128xf32> to vector<1x8x128xf32>
    tpu.vector_store %arg11[%c5, %c0_81, %c0_82], %255 {strides = array<i32>} : memref<6x8x128xf32, #tpu.memory_space<vmem>>, vector<1x8x128xf32>,
    %c0_83 = arith.constant 0 : index
    %c0_84 = arith.constant 0 : index
    %c0_85 = arith.constant 0 : index
    %256 = vector.load %arg9[%c0_83, %c0_84, %c0_85] : memref<2x8x128xf32, #tpu.memory_space<vmem>>, vector<1x8x128xf32>
    %257 = vector.shape_cast %256 : vector<1x8x128xf32> to vector<8x128xf32>
    %258 = vector.shape_cast %252 : vector<8x128xf32> to vector<1x8x128xf32>
    tpu.vector_store %arg9[%c0_83, %c0_84, %c0_85], %258 {strides = array<i32>} : memref<2x8x128xf32, #tpu.memory_space<vmem>>, vector<1x8x128xf32>,
    %c0_86 = arith.constant 0 : index
    %c0_87 = arith.constant 0 : index
    %c0_88 = arith.constant 0 : index
    %259 = vector.load %arg10[%c0_86, %c0_87, %c0_88] : memref<2x8x128xf32, #tpu.memory_space<vmem>>, vector<1x8x128xf32>
    %260 = vector.shape_cast %259 : vector<1x8x128xf32> to vector<8x128xf32>
    %261 = vector.shape_cast %250 : vector<8x128xf32> to vector<1x8x128xf32>
    tpu.vector_store %arg10[%c0_86, %c0_87, %c0_88], %261 {strides = array<i32>} : memref<2x8x128xf32, #tpu.memory_space<vmem>>, vector<1x8x128xf32>,
    %c0_89 = arith.constant 0 : index
    %c0_90 = arith.constant 0 : index
    %c0_91 = arith.constant 0 : index
    %262 = vector.load %arg11[%c0_89, %c0_90, %c0_91] : memref<6x8x128xf32, #tpu.memory_space<vmem>>, vector<6x8x128xf32>
    %c0_92 = arith.constant 0 : index
    %c0_93 = arith.constant 0 : index
    %263 = vector.load %arg5[%c0_92, %c0_93] : memref<128x512xbf16, #tpu.memory_space<vmem>>, vector<128x512xbf16>
    %c0_94 = arith.constant 0 : index
    %c0_95 = arith.constant 0 : index
    %264 = vector.load %arg6[%c0_94, %c0_95] : memref<128x512xbf16, #tpu.memory_space<vmem>>, vector<128x512xbf16>
    %c0_96 = arith.constant 0 : index
    %c0_97 = arith.constant 0 : index
    %265 = vector.load %arg7[%c0_96, %c0_97] : memref<1x512xf32, #tpu.memory_space<vmem>>, vector<1x512xf32>
    %266 = vector.shape_cast %262 : vector<6x8x128xf32> to vector<48x128xf32>
    %267 = arith.truncf %266 : vector<48x128xf32> to vector<48x128xbf16>
    %cst_98 = arith.constant dense<0.000000e+00> : vector<48x512xf32>
    %268 = tpu.matmul %267, %263, %cst_98 {dimension_numbers = #tpu.dot_dimension_numbers<[1], [0], [0], [1], [0, 0, 1, 1], [], []>} : vector<48x128xbf16>, vector<128x512xbf16>, vector<48x512xf32> -> vector<48x512xf32>
    %269 = vector.shape_cast %268 : vector<48x512xf32> to vector<6x8x512xf32>
    %cst_99 = arith.constant 0.000000e+00 : f32
    %270 = vector.broadcast %cst_99 : f32 to vector<8x128xf32>
    %cst_100 = arith.constant 0.000000e+00 : f32
    %271 = vector.broadcast %cst_100 : f32 to vector<8x128xf32>
    %272 = vector.extract_strided_slice %269 {offsets = [0, 0, 0], sizes = [1, 8, 512], strides = [1, 1, 1]} : vector<6x8x512xf32> to vector<1x8x512xf32>
    %273 = vector.shape_cast %272 : vector<1x8x512xf32> to vector<8x512xf32>
    %274 = arith.truncf %270 : vector<8x128xf32> to vector<8x128xbf16>
    %cst_101 = arith.constant dense<0.000000e+00> : vector<8x512xf32>
    %275 = tpu.matmul %274, %264, %cst_101 {dimension_numbers = #tpu.dot_dimension_numbers<[1], [0], [0], [1], [0, 0, 1, 1], [], []>} : vector<8x128xbf16>, vector<128x512xbf16>, vector<8x512xf32> -> vector<8x512xf32>
    %276 = arith.addf %273, %275 : vector<8x512xf32>
    %277 = vector.broadcast %265 : vector<1x512xf32> to vector<8x512xf32>
    %278 = arith.addf %276, %277 : vector<8x512xf32>
    %279 = vector.extract_strided_slice %278 {offsets = [0, 0], sizes = [8, 128], strides = [1, 1]} : vector<8x512xf32> to vector<8x128xf32>
    %cst_102 = arith.constant 5.000000e-01 : f32
    %280 = vector.broadcast %cst_102 : f32 to vector<8x128xf32>
    %281 = arith.mulf %280, %279 : vector<8x128xf32>
    %282 = math.tanh %281 : vector<8x128xf32>
    %cst_103 = arith.constant 1.000000e+00 : f32
    %283 = vector.broadcast %cst_103 : f32 to vector<8x128xf32>
    %284 = arith.addf %282, %283 : vector<8x128xf32>
    %cst_104 = arith.constant 5.000000e-01 : f32
    %285 = vector.broadcast %cst_104 : f32 to vector<8x128xf32>
    %286 = arith.mulf %285, %284 : vector<8x128xf32>
    %287 = vector.extract_strided_slice %278 {offsets = [0, 128], sizes = [8, 128], strides = [1, 1]} : vector<8x512xf32> to vector<8x128xf32>
    %cst_105 = arith.constant 5.000000e-01 : f32
    %288 = vector.broadcast %cst_105 : f32 to vector<8x128xf32>
    %289 = arith.mulf %288, %287 : vector<8x128xf32>
    %290 = math.tanh %289 : vector<8x128xf32>
    %cst_106 = arith.constant 1.000000e+00 : f32
    %291 = vector.broadcast %cst_106 : f32 to vector<8x128xf32>
    %292 = arith.addf %290, %291 : vector<8x128xf32>
    %cst_107 = arith.constant 5.000000e-01 : f32
    %293 = vector.broadcast %cst_107 : f32 to vector<8x128xf32>
    %294 = arith.mulf %293, %292 : vector<8x128xf32>
    %295 = vector.extract_strided_slice %278 {offsets = [0, 256], sizes = [8, 128], strides = [1, 1]} : vector<8x512xf32> to vector<8x128xf32>
    %296 = math.tanh %295 : vector<8x128xf32>
    %297 = vector.extract_strided_slice %278 {offsets = [0, 384], sizes = [8, 128], strides = [1, 1]} : vector<8x512xf32> to vector<8x128xf32>
    %cst_108 = arith.constant 5.000000e-01 : f32
    %298 = vector.broadcast %cst_108 : f32 to vector<8x128xf32>
    %299 = arith.mulf %298, %297 : vector<8x128xf32>
    %300 = math.tanh %299 : vector<8x128xf32>
    %cst_109 = arith.constant 1.000000e+00 : f32
    %301 = vector.broadcast %cst_109 : f32 to vector<8x128xf32>
    %302 = arith.addf %300, %301 : vector<8x128xf32>
    %cst_110 = arith.constant 5.000000e-01 : f32
    %303 = vector.broadcast %cst_110 : f32 to vector<8x128xf32>
    %304 = arith.mulf %303, %302 : vector<8x128xf32>
    %305 = arith.mulf %294, %271 : vector<8x128xf32>
    %306 = arith.mulf %286, %296 : vector<8x128xf32>
    %307 = arith.addf %305, %306 : vector<8x128xf32>
    %308 = math.tanh %307 : vector<8x128xf32>
    %309 = arith.mulf %304, %308 : vector<8x128xf32>
    %c0_111 = arith.constant 0 : index
    %c0_112 = arith.constant 0 : index
    %c0_113 = arith.constant 0 : index
    %310 = vector.load %arg8[%c0_111, %c0_112, %c0_113] : memref<6x8x128xf32, #tpu.memory_space<vmem>>, vector<1x8x128xf32>
    %311 = vector.shape_cast %310 : vector<1x8x128xf32> to vector<8x128xf32>
    %312 = vector.shape_cast %309 : vector<8x128xf32> to vector<1x8x128xf32>
    tpu.vector_store %arg8[%c0_111, %c0_112, %c0_113], %312 {strides = array<i32>} : memref<6x8x128xf32, #tpu.memory_space<vmem>>, vector<1x8x128xf32>,
    %313 = vector.extract_strided_slice %269 {offsets = [1, 0, 0], sizes = [1, 8, 512], strides = [1, 1, 1]} : vector<6x8x512xf32> to vector<1x8x512xf32>
    %314 = vector.shape_cast %313 : vector<1x8x512xf32> to vector<8x512xf32>
    %315 = arith.truncf %309 : vector<8x128xf32> to vector<8x128xbf16>
    %cst_114 = arith.constant dense<0.000000e+00> : vector<8x512xf32>
    %316 = tpu.matmul %315, %264, %cst_114 {dimension_numbers = #tpu.dot_dimension_numbers<[1], [0], [0], [1], [0, 0, 1, 1], [], []>} : vector<8x128xbf16>, vector<128x512xbf16>, vector<8x512xf32> -> vector<8x512xf32>
    %317 = arith.addf %314, %316 : vector<8x512xf32>
    %318 = vector.broadcast %265 : vector<1x512xf32> to vector<8x512xf32>
    %319 = arith.addf %317, %318 : vector<8x512xf32>
    %320 = vector.extract_strided_slice %319 {offsets = [0, 0], sizes = [8, 128], strides = [1, 1]} : vector<8x512xf32> to vector<8x128xf32>
    %cst_115 = arith.constant 5.000000e-01 : f32
    %321 = vector.broadcast %cst_115 : f32 to vector<8x128xf32>
    %322 = arith.mulf %321, %320 : vector<8x128xf32>
    %323 = math.tanh %322 : vector<8x128xf32>
    %cst_116 = arith.constant 1.000000e+00 : f32
    %324 = vector.broadcast %cst_116 : f32 to vector<8x128xf32>
    %325 = arith.addf %323, %324 : vector<8x128xf32>
    %cst_117 = arith.constant 5.000000e-01 : f32
    %326 = vector.broadcast %cst_117 : f32 to vector<8x128xf32>
    %327 = arith.mulf %326, %325 : vector<8x128xf32>
    %328 = vector.extract_strided_slice %319 {offsets = [0, 128], sizes = [8, 128], strides = [1, 1]} : vector<8x512xf32> to vector<8x128xf32>
    %cst_118 = arith.constant 5.000000e-01 : f32
    %329 = vector.broadcast %cst_118 : f32 to vector<8x128xf32>
    %330 = arith.mulf %329, %328 : vector<8x128xf32>
    %331 = math.tanh %330 : vector<8x128xf32>
    %cst_119 = arith.constant 1.000000e+00 : f32
    %332 = vector.broadcast %cst_119 : f32 to vector<8x128xf32>
    %333 = arith.addf %331, %332 : vector<8x128xf32>
    %cst_120 = arith.constant 5.000000e-01 : f32
    %334 = vector.broadcast %cst_120 : f32 to vector<8x128xf32>
    %335 = arith.mulf %334, %333 : vector<8x128xf32>
    %336 = vector.extract_strided_slice %319 {offsets = [0, 256], sizes = [8, 128], strides = [1, 1]} : vector<8x512xf32> to vector<8x128xf32>
    %337 = math.tanh %336 : vector<8x128xf32>
    %338 = vector.extract_strided_slice %319 {offsets = [0, 384], sizes = [8, 128], strides = [1, 1]} : vector<8x512xf32> to vector<8x128xf32>
    %cst_121 = arith.constant 5.000000e-01 : f32
    %339 = vector.broadcast %cst_121 : f32 to vector<8x128xf32>
    %340 = arith.mulf %339, %338 : vector<8x128xf32>
    %341 = math.tanh %340 : vector<8x128xf32>
    %cst_122 = arith.constant 1.000000e+00 : f32
    %342 = vector.broadcast %cst_122 : f32 to vector<8x128xf32>
    %343 = arith.addf %341, %342 : vector<8x128xf32>
    %cst_123 = arith.constant 5.000000e-01 : f32
    %344 = vector.broadcast %cst_123 : f32 to vector<8x128xf32>
    %345 = arith.mulf %344, %343 : vector<8x128xf32>
    %346 = arith.mulf %335, %307 : vector<8x128xf32>
    %347 = arith.mulf %327, %337 : vector<8x128xf32>
    %348 = arith.addf %346, %347 : vector<8x128xf32>
    %349 = math.tanh %348 : vector<8x128xf32>
    %350 = arith.mulf %345, %349 : vector<8x128xf32>
    %c1_124 = arith.constant 1 : index
    %c0_125 = arith.constant 0 : index
    %c0_126 = arith.constant 0 : index
    %351 = vector.load %arg8[%c1_124, %c0_125, %c0_126] : memref<6x8x128xf32, #tpu.memory_space<vmem>>, vector<1x8x128xf32>
    %352 = vector.shape_cast %351 : vector<1x8x128xf32> to vector<8x128xf32>
    %353 = vector.shape_cast %350 : vector<8x128xf32> to vector<1x8x128xf32>
    tpu.vector_store %arg8[%c1_124, %c0_125, %c0_126], %353 {strides = array<i32>} : memref<6x8x128xf32, #tpu.memory_space<vmem>>, vector<1x8x128xf32>,
    %354 = vector.extract_strided_slice %269 {offsets = [2, 0, 0], sizes = [1, 8, 512], strides = [1, 1, 1]} : vector<6x8x512xf32> to vector<1x8x512xf32>
    %355 = vector.shape_cast %354 : vector<1x8x512xf32> to vector<8x512xf32>
    %356 = arith.truncf %350 : vector<8x128xf32> to vector<8x128xbf16>
    %cst_127 = arith.constant dense<0.000000e+00> : vector<8x512xf32>
    %357 = tpu.matmul %356, %264, %cst_127 {dimension_numbers = #tpu.dot_dimension_numbers<[1], [0], [0], [1], [0, 0, 1, 1], [], []>} : vector<8x128xbf16>, vector<128x512xbf16>, vector<8x512xf32> -> vector<8x512xf32>
    %358 = arith.addf %355, %357 : vector<8x512xf32>
    %359 = vector.broadcast %265 : vector<1x512xf32> to vector<8x512xf32>
    %360 = arith.addf %358, %359 : vector<8x512xf32>
    %361 = vector.extract_strided_slice %360 {offsets = [0, 0], sizes = [8, 128], strides = [1, 1]} : vector<8x512xf32> to vector<8x128xf32>
    %cst_128 = arith.constant 5.000000e-01 : f32
    %362 = vector.broadcast %cst_128 : f32 to vector<8x128xf32>
    %363 = arith.mulf %362, %361 : vector<8x128xf32>
    %364 = math.tanh %363 : vector<8x128xf32>
    %cst_129 = arith.constant 1.000000e+00 : f32
    %365 = vector.broadcast %cst_129 : f32 to vector<8x128xf32>
    %366 = arith.addf %364, %365 : vector<8x128xf32>
    %cst_130 = arith.constant 5.000000e-01 : f32
    %367 = vector.broadcast %cst_130 : f32 to vector<8x128xf32>
    %368 = arith.mulf %367, %366 : vector<8x128xf32>
    %369 = vector.extract_strided_slice %360 {offsets = [0, 128], sizes = [8, 128], strides = [1, 1]} : vector<8x512xf32> to vector<8x128xf32>
    %cst_131 = arith.constant 5.000000e-01 : f32
    %370 = vector.broadcast %cst_131 : f32 to vector<8x128xf32>
    %371 = arith.mulf %370, %369 : vector<8x128xf32>
    %372 = math.tanh %371 : vector<8x128xf32>
    %cst_132 = arith.constant 1.000000e+00 : f32
    %373 = vector.broadcast %cst_132 : f32 to vector<8x128xf32>
    %374 = arith.addf %372, %373 : vector<8x128xf32>
    %cst_133 = arith.constant 5.000000e-01 : f32
    %375 = vector.broadcast %cst_133 : f32 to vector<8x128xf32>
    %376 = arith.mulf %375, %374 : vector<8x128xf32>
    %377 = vector.extract_strided_slice %360 {offsets = [0, 256], sizes = [8, 128], strides = [1, 1]} : vector<8x512xf32> to vector<8x128xf32>
    %378 = math.tanh %377 : vector<8x128xf32>
    %379 = vector.extract_strided_slice %360 {offsets = [0, 384], sizes = [8, 128], strides = [1, 1]} : vector<8x512xf32> to vector<8x128xf32>
    %cst_134 = arith.constant 5.000000e-01 : f32
    %380 = vector.broadcast %cst_134 : f32 to vector<8x128xf32>
    %381 = arith.mulf %380, %379 : vector<8x128xf32>
    %382 = math.tanh %381 : vector<8x128xf32>
    %cst_135 = arith.constant 1.000000e+00 : f32
    %383 = vector.broadcast %cst_135 : f32 to vector<8x128xf32>
    %384 = arith.addf %382, %383 : vector<8x128xf32>
    %cst_136 = arith.constant 5.000000e-01 : f32
    %385 = vector.broadcast %cst_136 : f32 to vector<8x128xf32>
    %386 = arith.mulf %385, %384 : vector<8x128xf32>
    %387 = arith.mulf %376, %348 : vector<8x128xf32>
    %388 = arith.mulf %368, %378 : vector<8x128xf32>
    %389 = arith.addf %387, %388 : vector<8x128xf32>
    %390 = math.tanh %389 : vector<8x128xf32>
    %391 = arith.mulf %386, %390 : vector<8x128xf32>
    %c2_137 = arith.constant 2 : index
    %c0_138 = arith.constant 0 : index
    %c0_139 = arith.constant 0 : index
    %392 = vector.load %arg8[%c2_137, %c0_138, %c0_139] : memref<6x8x128xf32, #tpu.memory_space<vmem>>, vector<1x8x128xf32>
    %393 = vector.shape_cast %392 : vector<1x8x128xf32> to vector<8x128xf32>
    %394 = vector.shape_cast %391 : vector<8x128xf32> to vector<1x8x128xf32>
    tpu.vector_store %arg8[%c2_137, %c0_138, %c0_139], %394 {strides = array<i32>} : memref<6x8x128xf32, #tpu.memory_space<vmem>>, vector<1x8x128xf32>,
    %395 = vector.extract_strided_slice %269 {offsets = [3, 0, 0], sizes = [1, 8, 512], strides = [1, 1, 1]} : vector<6x8x512xf32> to vector<1x8x512xf32>
    %396 = vector.shape_cast %395 : vector<1x8x512xf32> to vector<8x512xf32>
    %397 = arith.truncf %391 : vector<8x128xf32> to vector<8x128xbf16>
    %cst_140 = arith.constant dense<0.000000e+00> : vector<8x512xf32>
    %398 = tpu.matmul %397, %264, %cst_140 {dimension_numbers = #tpu.dot_dimension_numbers<[1], [0], [0], [1], [0, 0, 1, 1], [], []>} : vector<8x128xbf16>, vector<128x512xbf16>, vector<8x512xf32> -> vector<8x512xf32>
    %399 = arith.addf %396, %398 : vector<8x512xf32>
    %400 = vector.broadcast %265 : vector<1x512xf32> to vector<8x512xf32>
    %401 = arith.addf %399, %400 : vector<8x512xf32>
    %402 = vector.extract_strided_slice %401 {offsets = [0, 0], sizes = [8, 128], strides = [1, 1]} : vector<8x512xf32> to vector<8x128xf32>
    %cst_141 = arith.constant 5.000000e-01 : f32
    %403 = vector.broadcast %cst_141 : f32 to vector<8x128xf32>
    %404 = arith.mulf %403, %402 : vector<8x128xf32>
    %405 = math.tanh %404 : vector<8x128xf32>
    %cst_142 = arith.constant 1.000000e+00 : f32
    %406 = vector.broadcast %cst_142 : f32 to vector<8x128xf32>
    %407 = arith.addf %405, %406 : vector<8x128xf32>
    %cst_143 = arith.constant 5.000000e-01 : f32
    %408 = vector.broadcast %cst_143 : f32 to vector<8x128xf32>
    %409 = arith.mulf %408, %407 : vector<8x128xf32>
    %410 = vector.extract_strided_slice %401 {offsets = [0, 128], sizes = [8, 128], strides = [1, 1]} : vector<8x512xf32> to vector<8x128xf32>
    %cst_144 = arith.constant 5.000000e-01 : f32
    %411 = vector.broadcast %cst_144 : f32 to vector<8x128xf32>
    %412 = arith.mulf %411, %410 : vector<8x128xf32>
    %413 = math.tanh %412 : vector<8x128xf32>
    %cst_145 = arith.constant 1.000000e+00 : f32
    %414 = vector.broadcast %cst_145 : f32 to vector<8x128xf32>
    %415 = arith.addf %413, %414 : vector<8x128xf32>
    %cst_146 = arith.constant 5.000000e-01 : f32
    %416 = vector.broadcast %cst_146 : f32 to vector<8x128xf32>
    %417 = arith.mulf %416, %415 : vector<8x128xf32>
    %418 = vector.extract_strided_slice %401 {offsets = [0, 256], sizes = [8, 128], strides = [1, 1]} : vector<8x512xf32> to vector<8x128xf32>
    %419 = math.tanh %418 : vector<8x128xf32>
    %420 = vector.extract_strided_slice %401 {offsets = [0, 384], sizes = [8, 128], strides = [1, 1]} : vector<8x512xf32> to vector<8x128xf32>
    %cst_147 = arith.constant 5.000000e-01 : f32
    %421 = vector.broadcast %cst_147 : f32 to vector<8x128xf32>
    %422 = arith.mulf %421, %420 : vector<8x128xf32>
    %423 = math.tanh %422 : vector<8x128xf32>
    %cst_148 = arith.constant 1.000000e+00 : f32
    %424 = vector.broadcast %cst_148 : f32 to vector<8x128xf32>
    %425 = arith.addf %423, %424 : vector<8x128xf32>
    %cst_149 = arith.constant 5.000000e-01 : f32
    %426 = vector.broadcast %cst_149 : f32 to vector<8x128xf32>
    %427 = arith.mulf %426, %425 : vector<8x128xf32>
    %428 = arith.mulf %417, %389 : vector<8x128xf32>
    %429 = arith.mulf %409, %419 : vector<8x128xf32>
    %430 = arith.addf %428, %429 : vector<8x128xf32>
    %431 = math.tanh %430 : vector<8x128xf32>
    %432 = arith.mulf %427, %431 : vector<8x128xf32>
    %c3_150 = arith.constant 3 : index
    %c0_151 = arith.constant 0 : index
    %c0_152 = arith.constant 0 : index
    %433 = vector.load %arg8[%c3_150, %c0_151, %c0_152] : memref<6x8x128xf32, #tpu.memory_space<vmem>>, vector<1x8x128xf32>
    %434 = vector.shape_cast %433 : vector<1x8x128xf32> to vector<8x128xf32>
    %435 = vector.shape_cast %432 : vector<8x128xf32> to vector<1x8x128xf32>
    tpu.vector_store %arg8[%c3_150, %c0_151, %c0_152], %435 {strides = array<i32>} : memref<6x8x128xf32, #tpu.memory_space<vmem>>, vector<1x8x128xf32>,
    %436 = vector.extract_strided_slice %269 {offsets = [4, 0, 0], sizes = [1, 8, 512], strides = [1, 1, 1]} : vector<6x8x512xf32> to vector<1x8x512xf32>
    %437 = vector.shape_cast %436 : vector<1x8x512xf32> to vector<8x512xf32>
    %438 = arith.truncf %432 : vector<8x128xf32> to vector<8x128xbf16>
    %cst_153 = arith.constant dense<0.000000e+00> : vector<8x512xf32>
    %439 = tpu.matmul %438, %264, %cst_153 {dimension_numbers = #tpu.dot_dimension_numbers<[1], [0], [0], [1], [0, 0, 1, 1], [], []>} : vector<8x128xbf16>, vector<128x512xbf16>, vector<8x512xf32> -> vector<8x512xf32>
    %440 = arith.addf %437, %439 : vector<8x512xf32>
    %441 = vector.broadcast %265 : vector<1x512xf32> to vector<8x512xf32>
    %442 = arith.addf %440, %441 : vector<8x512xf32>
    %443 = vector.extract_strided_slice %442 {offsets = [0, 0], sizes = [8, 128], strides = [1, 1]} : vector<8x512xf32> to vector<8x128xf32>
    %cst_154 = arith.constant 5.000000e-01 : f32
    %444 = vector.broadcast %cst_154 : f32 to vector<8x128xf32>
    %445 = arith.mulf %444, %443 : vector<8x128xf32>
    %446 = math.tanh %445 : vector<8x128xf32>
    %cst_155 = arith.constant 1.000000e+00 : f32
    %447 = vector.broadcast %cst_155 : f32 to vector<8x128xf32>
    %448 = arith.addf %446, %447 : vector<8x128xf32>
    %cst_156 = arith.constant 5.000000e-01 : f32
    %449 = vector.broadcast %cst_156 : f32 to vector<8x128xf32>
    %450 = arith.mulf %449, %448 : vector<8x128xf32>
    %451 = vector.extract_strided_slice %442 {offsets = [0, 128], sizes = [8, 128], strides = [1, 1]} : vector<8x512xf32> to vector<8x128xf32>
    %cst_157 = arith.constant 5.000000e-01 : f32
    %452 = vector.broadcast %cst_157 : f32 to vector<8x128xf32>
    %453 = arith.mulf %452, %451 : vector<8x128xf32>
    %454 = math.tanh %453 : vector<8x128xf32>
    %cst_158 = arith.constant 1.000000e+00 : f32
    %455 = vector.broadcast %cst_158 : f32 to vector<8x128xf32>
    %456 = arith.addf %454, %455 : vector<8x128xf32>
    %cst_159 = arith.constant 5.000000e-01 : f32
    %457 = vector.broadcast %cst_159 : f32 to vector<8x128xf32>
    %458 = arith.mulf %457, %456 : vector<8x128xf32>
    %459 = vector.extract_strided_slice %442 {offsets = [0, 256], sizes = [8, 128], strides = [1, 1]} : vector<8x512xf32> to vector<8x128xf32>
    %460 = math.tanh %459 : vector<8x128xf32>
    %461 = vector.extract_strided_slice %442 {offsets = [0, 384], sizes = [8, 128], strides = [1, 1]} : vector<8x512xf32> to vector<8x128xf32>
    %cst_160 = arith.constant 5.000000e-01 : f32
    %462 = vector.broadcast %cst_160 : f32 to vector<8x128xf32>
    %463 = arith.mulf %462, %461 : vector<8x128xf32>
    %464 = math.tanh %463 : vector<8x128xf32>
    %cst_161 = arith.constant 1.000000e+00 : f32
    %465 = vector.broadcast %cst_161 : f32 to vector<8x128xf32>
    %466 = arith.addf %464, %465 : vector<8x128xf32>
    %cst_162 = arith.constant 5.000000e-01 : f32
    %467 = vector.broadcast %cst_162 : f32 to vector<8x128xf32>
    %468 = arith.mulf %467, %466 : vector<8x128xf32>
    %469 = arith.mulf %458, %430 : vector<8x128xf32>
    %470 = arith.mulf %450, %460 : vector<8x128xf32>
    %471 = arith.addf %469, %470 : vector<8x128xf32>
    %472 = math.tanh %471 : vector<8x128xf32>
    %473 = arith.mulf %468, %472 : vector<8x128xf32>
    %c4_163 = arith.constant 4 : index
    %c0_164 = arith.constant 0 : index
    %c0_165 = arith.constant 0 : index
    %474 = vector.load %arg8[%c4_163, %c0_164, %c0_165] : memref<6x8x128xf32, #tpu.memory_space<vmem>>, vector<1x8x128xf32>
    %475 = vector.shape_cast %474 : vector<1x8x128xf32> to vector<8x128xf32>
    %476 = vector.shape_cast %473 : vector<8x128xf32> to vector<1x8x128xf32>
    tpu.vector_store %arg8[%c4_163, %c0_164, %c0_165], %476 {strides = array<i32>} : memref<6x8x128xf32, #tpu.memory_space<vmem>>, vector<1x8x128xf32>,
    %477 = vector.extract_strided_slice %269 {offsets = [5, 0, 0], sizes = [1, 8, 512], strides = [1, 1, 1]} : vector<6x8x512xf32> to vector<1x8x512xf32>
    %478 = vector.shape_cast %477 : vector<1x8x512xf32> to vector<8x512xf32>
    %479 = arith.truncf %473 : vector<8x128xf32> to vector<8x128xbf16>
    %cst_166 = arith.constant dense<0.000000e+00> : vector<8x512xf32>
    %480 = tpu.matmul %479, %264, %cst_166 {dimension_numbers = #tpu.dot_dimension_numbers<[1], [0], [0], [1], [0, 0, 1, 1], [], []>} : vector<8x128xbf16>, vector<128x512xbf16>, vector<8x512xf32> -> vector<8x512xf32>
    %481 = arith.addf %478, %480 : vector<8x512xf32>
    %482 = vector.broadcast %265 : vector<1x512xf32> to vector<8x512xf32>
    %483 = arith.addf %481, %482 : vector<8x512xf32>
    %484 = vector.extract_strided_slice %483 {offsets = [0, 0], sizes = [8, 128], strides = [1, 1]} : vector<8x512xf32> to vector<8x128xf32>
    %cst_167 = arith.constant 5.000000e-01 : f32
    %485 = vector.broadcast %cst_167 : f32 to vector<8x128xf32>
    %486 = arith.mulf %485, %484 : vector<8x128xf32>
    %487 = math.tanh %486 : vector<8x128xf32>
    %cst_168 = arith.constant 1.000000e+00 : f32
    %488 = vector.broadcast %cst_168 : f32 to vector<8x128xf32>
    %489 = arith.addf %487, %488 : vector<8x128xf32>
    %cst_169 = arith.constant 5.000000e-01 : f32
    %490 = vector.broadcast %cst_169 : f32 to vector<8x128xf32>
    %491 = arith.mulf %490, %489 : vector<8x128xf32>
    %492 = vector.extract_strided_slice %483 {offsets = [0, 128], sizes = [8, 128], strides = [1, 1]} : vector<8x512xf32> to vector<8x128xf32>
    %cst_170 = arith.constant 5.000000e-01 : f32
    %493 = vector.broadcast %cst_170 : f32 to vector<8x128xf32>
    %494 = arith.mulf %493, %492 : vector<8x128xf32>
    %495 = math.tanh %494 : vector<8x128xf32>
    %cst_171 = arith.constant 1.000000e+00 : f32
    %496 = vector.broadcast %cst_171 : f32 to vector<8x128xf32>
    %497 = arith.addf %495, %496 : vector<8x128xf32>
    %cst_172 = arith.constant 5.000000e-01 : f32
    %498 = vector.broadcast %cst_172 : f32 to vector<8x128xf32>
    %499 = arith.mulf %498, %497 : vector<8x128xf32>
    %500 = vector.extract_strided_slice %483 {offsets = [0, 256], sizes = [8, 128], strides = [1, 1]} : vector<8x512xf32> to vector<8x128xf32>
    %501 = math.tanh %500 : vector<8x128xf32>
    %502 = vector.extract_strided_slice %483 {offsets = [0, 384], sizes = [8, 128], strides = [1, 1]} : vector<8x512xf32> to vector<8x128xf32>
    %cst_173 = arith.constant 5.000000e-01 : f32
    %503 = vector.broadcast %cst_173 : f32 to vector<8x128xf32>
    %504 = arith.mulf %503, %502 : vector<8x128xf32>
    %505 = math.tanh %504 : vector<8x128xf32>
    %cst_174 = arith.constant 1.000000e+00 : f32
    %506 = vector.broadcast %cst_174 : f32 to vector<8x128xf32>
    %507 = arith.addf %505, %506 : vector<8x128xf32>
    %cst_175 = arith.constant 5.000000e-01 : f32
    %508 = vector.broadcast %cst_175 : f32 to vector<8x128xf32>
    %509 = arith.mulf %508, %507 : vector<8x128xf32>
    %510 = arith.mulf %499, %471 : vector<8x128xf32>
    %511 = arith.mulf %491, %501 : vector<8x128xf32>
    %512 = arith.addf %510, %511 : vector<8x128xf32>
    %513 = math.tanh %512 : vector<8x128xf32>
    %514 = arith.mulf %509, %513 : vector<8x128xf32>
    %c5_176 = arith.constant 5 : index
    %c0_177 = arith.constant 0 : index
    %c0_178 = arith.constant 0 : index
    %515 = vector.load %arg8[%c5_176, %c0_177, %c0_178] : memref<6x8x128xf32, #tpu.memory_space<vmem>>, vector<1x8x128xf32>
    %516 = vector.shape_cast %515 : vector<1x8x128xf32> to vector<8x128xf32>
    %517 = vector.shape_cast %514 : vector<8x128xf32> to vector<1x8x128xf32>
    tpu.vector_store %arg8[%c5_176, %c0_177, %c0_178], %517 {strides = array<i32>} : memref<6x8x128xf32, #tpu.memory_space<vmem>>, vector<1x8x128xf32>,
    %c1_179 = arith.constant 1 : index
    %c0_180 = arith.constant 0 : index
    %c0_181 = arith.constant 0 : index
    %518 = vector.load %arg9[%c1_179, %c0_180, %c0_181] : memref<2x8x128xf32, #tpu.memory_space<vmem>>, vector<1x8x128xf32>
    %519 = vector.shape_cast %518 : vector<1x8x128xf32> to vector<8x128xf32>
    %520 = vector.shape_cast %514 : vector<8x128xf32> to vector<1x8x128xf32>
    tpu.vector_store %arg9[%c1_179, %c0_180, %c0_181], %520 {strides = array<i32>} : memref<2x8x128xf32, #tpu.memory_space<vmem>>, vector<1x8x128xf32>,
    %c1_182 = arith.constant 1 : index
    %c0_183 = arith.constant 0 : index
    %c0_184 = arith.constant 0 : index
    %521 = vector.load %arg10[%c1_182, %c0_183, %c0_184] : memref<2x8x128xf32, #tpu.memory_space<vmem>>, vector<1x8x128xf32>
    %522 = vector.shape_cast %521 : vector<1x8x128xf32> to vector<8x128xf32>
    %523 = vector.shape_cast %512 : vector<8x128xf32> to vector<1x8x128xf32>
    tpu.vector_store %arg10[%c1_182, %c0_183, %c0_184], %523 {strides = array<i32>} : memref<2x8x128xf32, #tpu.memory_space<vmem>>, vector<1x8x128xf32>,
    return
  }
  func.func @transform_0(%arg0: i32) -> (i32, i32, i32) {
    %c0_i32 = arith.constant 0 : i32
    %c0_i32_0 = arith.constant 0 : i32
    %c0_i32_1 = arith.constant 0 : i32
    return %c0_i32, %arg0, %c0_i32_0 : i32, i32, i32
  }
  func.func @transform_1(%arg0: i32) -> (i32, i32) {
    %c0_i32 = arith.constant 0 : i32
    %c0_i32_0 = arith.constant 0 : i32
    %c0_i32_1 = arith.constant 0 : i32
    return %c0_i32, %c0_i32_0 : i32, i32
  }
  func.func @transform_2(%arg0: i32) -> (i32, i32) {
    %c0_i32 = arith.constant 0 : i32
    %c0_i32_0 = arith.constant 0 : i32
    %c0_i32_1 = arith.constant 0 : i32
    return %c0_i32, %c0_i32_0 : i32, i32
  }
  func.func @transform_3(%arg0: i32) -> (i32, i32) {
    %c0_i32 = arith.constant 0 : i32
    %c0_i32_0 = arith.constant 0 : i32
    %c0_i32_1 = arith.constant 0 : i32
    return %c0_i32, %c0_i32_0 : i32, i32
  }
  func.func @transform_4(%arg0: i32) -> (i32, i32) {
    %c0_i32 = arith.constant 0 : i32
    %c0_i32_0 = arith.constant 0 : i32
    %c0_i32_1 = arith.constant 0 : i32
    return %c0_i32, %c0_i32_0 : i32, i32
  }
  func.func @transform_5(%arg0: i32) -> (i32, i32) {
    %c0_i32 = arith.constant 0 : i32
    %c0_i32_0 = arith.constant 0 : i32
    %c0_i32_1 = arith.constant 0 : i32
    return %c0_i32, %c0_i32_0 : i32, i32
  }
  func.func @transform_6(%arg0: i32) -> (i32, i32) {
    %c0_i32 = arith.constant 0 : i32
    %c0_i32_0 = arith.constant 0 : i32
    %c0_i32_1 = arith.constant 0 : i32
    return %c0_i32, %c0_i32_0 : i32, i32
  }
  func.func @transform_7(%arg0: i32) -> (i32, i32, i32) {
    %c0_i32 = arith.constant 0 : i32
    %c0_i32_0 = arith.constant 0 : i32
    %c0_i32_1 = arith.constant 0 : i32
    return %c0_i32, %arg0, %c0_i32_0 : i32, i32, i32
  }
  func.func @transform_8(%arg0: i32) -> (i32, i32, i32) {
    %c0_i32 = arith.constant 0 : i32
    %c0_i32_0 = arith.constant 0 : i32
    %c0_i32_1 = arith.constant 0 : i32
    return %c0_i32, %arg0, %c0_i32_0 : i32, i32, i32
  }
  func.func @transform_9(%arg0: i32) -> (i32, i32, i32) {
    %c0_i32 = arith.constant 0 : i32
    %c0_i32_0 = arith.constant 0 : i32
    %c0_i32_1 = arith.constant 0 : i32
    return %c0_i32, %arg0, %c0_i32_0 : i32, i32, i32
  }
}

</mosaic_0001>

<bundles_post_ra>
// kernel: tpu_custom_call.1
= control target key start
LH: loop header
LB: loop body
LE: loop exit
PB: predicated region body
PF: predicated region fallthrough
CT: control target
= control target key end

     0   :  { %15 = vsyncpa [#allocation4], 0  ;;  %s3920_s0 = inlined_call_operand.hbm [shape: f32[6,8,10], index: 0, kind: input, shape index: {}]   ;;  %s3921_s1 = inlined_call_operand.hbm [shape: bf16[10,512], index: 1, kind: input, shape index: {}]   ;;  %s3922_s2 = inlined_call_operand.hbm [shape: bf16[128,512], index: 2, kind: input, shape index: {}]   ;;  %s3923_s3 = inlined_call_operand.vmem [shape: f32[1,512], index: 3, kind: input, shape index: {}]   ;;  %s3924_s4 = inlined_call_operand.hbm [shape: bf16[128,512], index: 4, kind: input, shape index: {}]   ;;  %s3925_s5 = inlined_call_operand.hbm [shape: bf16[128,512], index: 5, kind: input, shape index: {}]   ;;  %s3926_s6 = inlined_call_operand.vmem [shape: f32[1,512], index: 6, kind: input, shape index: {}]   ;;  %s3927_s7 = inlined_call_operand.hbm [shape: f32[6,8,128], index: 7, kind: output, shape index: {0}]   ;;  %s3928_s8 = inlined_call_operand.hbm [shape: f32[2,8,128], index: 8, kind: output, shape index: {1}]   ;;  %s3929_s9 = inlined_call_operand.hbm [shape: f32[2,8,128], index: 9, kind: output, shape index: {2}]  }
   0x1   :  { %16 = vsyncpa [#allocation7], 0 }
   0x2   :  { %17 = vsyncpa [#allocation10], 0 }
   0x3   :  { %18 = vsyncpa [#allocation5], 0 }
   0x4   :  { %19 = vsyncpa [#allocation14], 0  ;;  %s2980_s30 = smov [#allocation6]  }
   0x5   :  { %s37_s10 = sshll.u32 %s2980_s30, 4  ;;  %s38_s10 = int_to_ptr.vmem [resolvable:$true] %s37_s10 }
   0x6   :  { %s2818_s11 = scalar_lea.vmem %s38_s10, 512  ;;  %p2823_p1 = scmp.lt.s32.totalorder %s38_s10, %s38_s10 }
   0x7   :  { %p2819_p0 = scmp.ne.s32.totalorder %s38_s10, %s2818_s11  ;;  %p2824_p2 = scmp.lt.s32.totalorder %s2818_s11, %s2818_s11 }
   0x9   :  { %p2825_p3 = por %p2824_p2, %p2823_p1 }
   0xb   :  { %p2826_p4 = pnand %p2825_p3, %p2819_p0 }
   0xd   :  { %2829 = shalt.err (!%p2826_p4)
}
   0xe   :  { %s2981_s12 = smov 256   ;;  %s2982_s13 = smov 16  }
   0xf   :  { %43 = dma.hbm_to_vmem [thread:$0]  %s3921_s1, 512, %s38_s10, [#allocation7], %s2981_s12, %s2981_s12, %s2982_s13  }
  0x10   :  { %s2983_s16 = smov [#allocation9]   ;;  %s2984_s18 = smov [#allocation3]  }
  0x11   :  { %s63_s17 = sshll.u32 %s2983_s16, 4  ;;  %s25_s19 = sshll.u32 %s2984_s18, 4  ;;  %s64_s17 = int_to_ptr.vmem [resolvable:$true] %s63_s17  ;;  %s26_s19 = int_to_ptr.vmem [resolvable:$true] %s25_s19 }
  0x12   :  { %s2838_s20 = scalar_lea.vmem %s64_s17, 4096  ;;  %p2843_p6 = scmp.lt.s32.totalorder %s64_s17, %s64_s17 }
  0x13   :  { %p2839_p5 = scmp.ne.s32.totalorder %s64_s17, %s2838_s20  ;;  %p2844_p7 = scmp.lt.s32.totalorder %s2838_s20, %s2838_s20 }
  0x15   :  { %p2845_p8 = por %p2844_p7, %p2843_p6 }
  0x17   :  { %p2846_p9 = pnand %p2845_p8, %p2839_p5 }
  0x19   :  { %2849 = shalt.err (!%p2846_p9)
}
  0x1a   :  { %69 = dma.hbm_to_vmem [thread:$0]  %s3924_s4, 4096, %s64_s17, [#allocation10], %s2981_s12, %s2981_s12, %s2982_s13  }
  0x1b   :  { %s2858_s1 = scalar_lea.vmem %s26_s19, 768  ;;  %p2863_p11 = scmp.lt.s32.totalorder %s26_s19, %s26_s19 }
  0x1c   :  { %p2859_p10 = scmp.ne.s32.totalorder %s26_s19, %s2858_s1  ;;  %p2864_p12 = scmp.lt.s32.totalorder %s2858_s1, %s2858_s1 }
  0x1e   :  { %p2865_p13 = por %p2864_p12, %p2863_p11 }
  0x20   :  { %p2866_p0 = pnand %p2865_p13, %p2859_p10 }
  0x22   :  { %2869 = shalt.err (!%p2866_p0)
}
  0x23   :  { %s2985_s23 = smov 128   ;;  %s2986_s24 = smov 8  }
  0x24   :  { %31 = dma.hbm_to_vmem [thread:$0]  %s3920_s0, 768, %s26_s19, [#allocation4], %s2985_s23, %s2985_s23, %s2986_s24  }
  0x25   :  { %s2987_s27 = smov [#allocation8]   ;;  %s2988_s4 = smov [#allocation11]  }
  0x26   :  { %s49_s28 = sshll.u32 %s2987_s27, 4  ;;  %s75_s29 = sshll.u32 %s2988_s4, 4  ;;  %s50_s28 = int_to_ptr.vmem [resolvable:$true] %s49_s28  ;;  %s76_s29 = int_to_ptr.vmem [resolvable:$true] %s75_s29 }
  0x27   :  { %s2878_s30 = scalar_lea.vmem %s50_s28, 4096  ;;  %p2883_p2 = scmp.lt.s32.totalorder %s50_s28, %s50_s28 }
  0x28   :  { %p2879_p1 = scmp.ne.s32.totalorder %s50_s28, %s2878_s30  ;;  %p2884_p3 = scmp.lt.s32.totalorder %s2878_s30, %s2878_s30 }
  0x2a   :  { %p2885_p4 = por %p2884_p3, %p2883_p2 }
  0x2c   :  { %p2886_p5 = pnand %p2885_p4, %p2879_p1 }
  0x2e   :  { %2889 = shalt.err (!%p2886_p5)
}
  0x2f   :  { %55 = dma.hbm_to_vmem [thread:$0]  %s3922_s2, 4096, %s50_s28, [#allocation7], %s2981_s12, %s2981_s12, %s2982_s13  }
  0x30   :  { %s2898_s0 = scalar_lea.vmem %s76_s29, 4096  ;;  %p2903_p7 = scmp.lt.s32.totalorder %s76_s29, %s76_s29 }
  0x31   :  { %p2899_p6 = scmp.ne.s32.totalorder %s76_s29, %s2898_s0  ;;  %p2904_p8 = scmp.lt.s32.totalorder %s2898_s0, %s2898_s0 }
  0x33   :  { %p2905_p9 = por %p2904_p8, %p2903_p7 }
  0x35   :  { %p2906_p10 = pnand %p2905_p9, %p2899_p6 }
  0x37   :  { %2909 = shalt.err (!%p2906_p10)
}
  0x38   :  { %81 = dma.hbm_to_vmem [thread:$0]  %s3925_s5, 4096, %s76_s29, [#allocation10], %s2981_s12, %s2981_s12, %s2982_s13  }
  0x39   :  { %2970 = dma.done.wait [#allocation4], 768  }
  0x3a   :  { %2971 = vsyncadd [#allocation4], 4294966528 }
  0x3b   :  { %2972 = dma.done.wait [#allocation7], 4608  }
  0x3c   :  { %2973 = vsyncadd [#allocation7], 4294962688 }
  0x3d   :  { %2974 = dma.done.wait [#allocation10], 8192  }
  0x3e   :  { %2975 = vsyncadd [#allocation10], 4294959104  ;;  %v3930_v0 = vmov 0   ;;  %vm172_vm0 = vcmask 1044480   ;;  %v100_v5 = vld [vmem:[#allocation3] sm:$0xff]  ;;  %v101_v6 = vld [vmem:[#allocation3 + $0x8] sm:$0xff] }
  0x3f   :  { %217 = vmatprep.mubr.bf16.mxu0 %v3930_v0  ;;  %280 = vmatprep.mubr.bf16.mxu1 %v3930_v0  ;;  %v2538_v1 = vld [vmem:[#allocation6 + $0x4] ss:$16 sps:$4 sm:$0x1f]   ;;  %v2540_v2 = vld [vmem:[#allocation6 + $0xc] ss:$16 sps:$4 sm:$0x1f]   ;;  %v143_v9 = vpack.c.bf16 %v101_v6, %v100_v5 }
  0x40   :  { %2421 = vmatprep.subr.msk.bf16.mxu0 %vm172_vm0, %v2538_v1  ;;  %v2542_v3 = vld [vmem:[#allocation6] ss:$16 sps:$4 sm:$0x1f]   ;;  %v2543_v4 = vld [vmem:[#allocation6 + $0x8] ss:$16 sps:$4 sm:$0x1f]   ;;  %2425 = vmatprep.subr.msk.bf16.mxu1 %vm172_vm0, %v2540_v2 }
  0x41   :  { %v174_v7 = vsel %vm172_vm0, %v2542_v3, 0  ;;  %v180_v8 = vsel %vm172_vm0, %v2543_v4, 0  ;;  %v3075_v10 = vld [vmem:[#allocation8 + $0xe4] ss:$16 sps:$4 sm:$0xff]   ;;  %vm162_vm1 = vcmask 80896   ;;  %v103_v22 = vld [vmem:[#allocation3 + $0x18] sm:$0xff]  ;;  %v558_v3 = vlaneseq }
  0x42   :  { %200 = vmatpush1.bf16.msra.mxu0 %v174_v7  ;;  %263 = vmatpush1.bf16.msra.mxu1 %v180_v8  ;;  %v3077_v11 = vld [vmem:[#allocation8 + $0xec] ss:$16 sps:$4 sm:$0xff]   ;;  %v3079_v12 = vld [vmem:[#allocation8 + $0xe0] ss:$16 sps:$4 sm:$0xff]   ;;  %v3082_v13 = vld [vmem:[#allocation8 + $0xe8] ss:$16 sps:$4 sm:$0xff]  }
  0x43   :  { %471 = vmatprep.subr.bf16.mxu0 %v3075_v10  ;;  %512 = vmatprep.subr.bf16.mxu1 %v3077_v11  ;;  %v3085_v14 = vld [vmem:[#allocation8 + $0xc4] ss:$16 sps:$4 sm:$0xff]   ;;  %v3089_v15 = vld [vmem:[#allocation8 + $0xcc] ss:$16 sps:$4 sm:$0xff]   ;;  %v3091_v16 = vld [vmem:[#allocation8 + $0xc0] ss:$16 sps:$4 sm:$0xff]  }
  0x44   :  { %v3093_v17 = vld [vmem:[#allocation8 + $0xc8] ss:$16 sps:$4 sm:$0xff]   ;;  %v3097_v18 = vld [vmem:[#allocation8 + $0xa4] ss:$16 sps:$4 sm:$0xff]   ;;  %v3101_v19 = vld [vmem:[#allocation8 + $0xac] ss:$16 sps:$4 sm:$0xff]  }
  0x45   :  { %2422 = vmatmul.mubr.msk.bf16.vlgmr.msra.gmra.mxu0 %vm162_vm1, %v143_v9  ;;  %2426 = vmatmul.mubr.msk.bf16.vlgmr.msra.gmra.mxu1 %vm162_vm1, %v143_v9  ;;  %v3104_v20 = vld [vmem:[#allocation8 + $0xa0] ss:$16 sps:$4 sm:$0xff]   ;;  %v3109_v23 = vld [vmem:[#allocation8 + $0xa8] ss:$16 sps:$4 sm:$0xff]   ;;  %v3113_v25 = vld [vmem:[#allocation8 + $0x84] ss:$16 sps:$4 sm:$0xff]  }
  0x46   :  { %472 = vmatpush1.bf16.msra.mxu0 %v3079_v12  ;;  %513 = vmatpush1.bf16.msra.mxu1 %v3082_v13  ;;  %v102_v21 = vld [vmem:[#allocation3 + $0x10] sm:$0xff]  ;;  %v3115_v26 = vld [vmem:[#allocation8 + $0x8c] ss:$16 sps:$4 sm:$0xff]   ;;  %v3120_v28 = vld [vmem:[#allocation8 + $0x88] ss:$16 sps:$4 sm:$0xff]   ;;  %v3253_v6 = vshrl.u32 %v558_v3, 7 }
  0x47   :  { %473 = vmatprep.subr.bf16.mxu0 %v3085_v14  ;;  %514 = vmatprep.subr.bf16.mxu1 %v3089_v15  ;;  %v144_v24 = vpack.c.bf16 %v103_v22, %v102_v21  ;;  %v3117_v27 = vld [vmem:[#allocation8 + $0x80] ss:$16 sps:$4 sm:$0xff]   ;;  %v3125_v29 = vld [vmem:[#allocation8 + $0x64] ss:$16 sps:$4 sm:$0xff]   ;;  %v3127_v30 = vld [vmem:[#allocation8 + $0x6c] ss:$16 sps:$4 sm:$0xff]  }
  0x48   :  { %227 = vmatprep.mubr.bf16.mxu0 %v3930_v0  ;;  %290 = vmatprep.mubr.bf16.mxu1 %v3930_v0  ;;  %v104_v31 = vld [vmem:[#allocation3 + $0x20] sm:$0xff]  ;;  %v105_v32 = vld [vmem:[#allocation3 + $0x28] sm:$0xff]  ;;  %v3932_v9 = vsub.s32 0, %v3253_v6  ;;  %s2991_s16 = smov [#allocation12]   ;;  %s2992_s18 = smov [#allocation15]  }
  0x49   :  { %v3133_v33 = vld [vmem:[#allocation8 + $0x60] ss:$16 sps:$4 sm:$0xff]   ;;  %v3135_v34 = vld [vmem:[#allocation8 + $0x68] ss:$16 sps:$4 sm:$0xff]   ;;  %v145_v35 = vpack.c.bf16 %v105_v32, %v104_v31  ;;  %v3139_v36 = vld [vmem:[#allocation8 + $0x44] ss:$16 sps:$4 sm:$0xff]  }
  0x4a   :  { %474 = vmatpush1.bf16.msra.mxu0 %v3091_v16  ;;  %515 = vmatpush1.bf16.msra.mxu1 %v3093_v17  ;;  %v3143_v37 = vld [vmem:[#allocation8 + $0x4c] ss:$16 sps:$4 sm:$0xff]   ;;  %v3146_v38 = vld [vmem:[#allocation8 + $0x40] ss:$16 sps:$4 sm:$0xff]   ;;  %v3151_v39 = vld [vmem:[#allocation8 + $0x48] ss:$16 sps:$4 sm:$0xff]  }
  0x4b   :  { %475 = vmatprep.subr.bf16.mxu0 %v3097_v18  ;;  %516 = vmatprep.subr.bf16.mxu1 %v3101_v19  ;;  %v3153_v40 = vld [vmem:[#allocation8 + $0x24] ss:$16 sps:$4 sm:$0xff]   ;;  %v3157_v41 = vld [vmem:[#allocation8 + $0x2c] ss:$16 sps:$4 sm:$0xff]   ;;  %v3159_v42 = vld [vmem:[#allocation8 + $0x20] ss:$16 sps:$4 sm:$0xff]  }
  0x4c   :  { %v3161_v43 = vld [vmem:[#allocation8 + $0x28] ss:$16 sps:$4 sm:$0xff]   ;;  %v3165_v44 = vld [vmem:[#allocation8 + $0x4] ss:$16 sps:$4 sm:$0xff]   ;;  %v3167_v45 = vld [vmem:[#allocation8 + $0xc] ss:$16 sps:$4 sm:$0xff]  }
  0x4d   :  { %2423 = vmatmul.mubr.msk.bf16.gmra.mxu0 %vm162_vm1, %v144_v24  ;;  %2427 = vmatmul.mubr.msk.bf16.gmra.mxu1 %vm162_vm1, %v144_v24  ;;  %v3173_v46 = vld [vmem:[#allocation8] ss:$16 sps:$4 sm:$0xff]   ;;  %v3175_v47 = vld [vmem:[#allocation8 + $0x8] ss:$16 sps:$4 sm:$0xff]   ;;  %v3933_v24 = vsub.s32 1, %v3253_v6  ;;  %s2372_s17 = sshll.u32 %s2991_s16, 4  ;;  %s2373_s17 = int_to_ptr.vmem [resolvable:$true] %s2372_s17 }
  0x4e   :  { %476 = vmatpush1.bf16.msra.mxu0 %v3104_v20  ;;  %517 = vmatpush1.bf16.msra.mxu1 %v3109_v23  ;;  %v142_v22 = vld [vmem:[%s3923_s3] sm:$0xf]  ;;  %s2396_s19 = sshll.u32 %s2992_s18, 4  ;;  %s2397_s19 = int_to_ptr.vmem [resolvable:$true] %s2396_s19 }
  0x4f   :  { %477 = vmatprep.subr.bf16.mxu0 %v3113_v25  ;;  %518 = vmatprep.subr.bf16.mxu1 %v3115_v26  ;;  %v3270_v32 = vrot.slane %v142_v22, %v3932_v9 }
  0x50   :  { %237 = vmatprep.mubr.bf16.mxu0 %v3930_v0  ;;  %300 = vmatprep.mubr.bf16.mxu1 %v3930_v0 }
  0x52   :  { %478 = vmatpush1.bf16.msra.mxu0 %v3117_v27  ;;  %519 = vmatpush1.bf16.msra.mxu1 %v3120_v28 }
  0x53   :  { %479 = vmatprep.subr.bf16.mxu0 %v3125_v29  ;;  %520 = vmatprep.subr.bf16.mxu1 %v3127_v30 }
  0x55   :  { %2424 = vmatmul.mubr.msk.bf16.gmra.mxu0 %vm162_vm1, %v145_v35  ;;  %2428 = vmatmul.mubr.msk.bf16.gmra.mxu1 %vm162_vm1, %v145_v35 }
  0x56   :  { %480 = vmatpush1.bf16.msra.mxu0 %v3133_v33  ;;  %521 = vmatpush1.bf16.msra.mxu1 %v3135_v34 }
  0x57   :  { %481 = vmatprep.subr.bf16.mxu0 %v3139_v36  ;;  %522 = vmatprep.subr.bf16.mxu1 %v3143_v37 }
  0x58   :  { %503 = vmatprep.mubr.bf16.mxu0 %v3930_v0  ;;  %544 = vmatprep.mubr.bf16.mxu1 %v3930_v0 }
  0x5a   :  { %482 = vmatpush1.bf16.msra.mxu0 %v3146_v38  ;;  %523 = vmatpush1.bf16.msra.mxu1 %v3151_v39 }
  0x5b   :  { %483 = vmatprep.subr.bf16.mxu0 %v3153_v40  ;;  %524 = vmatprep.subr.bf16.mxu1 %v3157_v41 }
  0x5e   :  { %484 = vmatpush1.bf16.msra.mxu0 %v3159_v42  ;;  %525 = vmatpush1.bf16.msra.mxu1 %v3161_v43 }
  0x5f   :  { %485 = vmatprep.subr.bf16.mxu0 %v3165_v44  ;;  %526 = vmatprep.subr.bf16.mxu1 %v3167_v45 }
  0x62   :  { %486 = vmatpush1.bf16.msra.mxu0 %v3173_v46  ;;  %527 = vmatpush1.bf16.msra.mxu1 %v3175_v47 }
  0x63   :  { %602 = vmatprep.subr.bf16.mxu0 %v3075_v10  ;;  %643 = vmatprep.subr.bf16.mxu1 %v3077_v11 }
  0x65   :  { %504 = vmatmul.mubr.bf16.vlgmr.msra.gmra.mxu0 %v3930_v0  ;;  %545 = vmatmul.mubr.bf16.vlgmr.msra.gmra.mxu1 %v3930_v0 }
  0x66   :  { %603 = vmatpush1.bf16.msra.mxu0 %v3079_v12  ;;  %644 = vmatpush1.bf16.msra.mxu1 %v3082_v13 }
  0x67   :  { %604 = vmatprep.subr.bf16.mxu0 %v3085_v14  ;;  %645 = vmatprep.subr.bf16.mxu1 %v3089_v15 }
  0x68   :  { %634 = vmatprep.mubr.bf16.mxu0 %v3930_v0  ;;  %675 = vmatprep.mubr.bf16.mxu1 %v3930_v0 }
  0x6a   :  { %605 = vmatpush1.bf16.msra.mxu0 %v3091_v16  ;;  %646 = vmatpush1.bf16.msra.mxu1 %v3093_v17 }
  0x6b   :  { %606 = vmatprep.subr.bf16.mxu0 %v3097_v18  ;;  %647 = vmatprep.subr.bf16.mxu1 %v3101_v19 }
  0x6e   :  { %607 = vmatpush1.bf16.msra.mxu0 %v3104_v20  ;;  %648 = vmatpush1.bf16.msra.mxu1 %v3109_v23 }
  0x6f   :  { %608 = vmatprep.subr.bf16.mxu0 %v3113_v25  ;;  %649 = vmatprep.subr.bf16.mxu1 %v3115_v26 }
  0x72   :  { %609 = vmatpush1.bf16.msra.mxu0 %v3117_v27  ;;  %650 = vmatpush1.bf16.msra.mxu1 %v3120_v28 }
  0x73   :  { %610 = vmatprep.subr.bf16.mxu0 %v3125_v29  ;;  %651 = vmatprep.subr.bf16.mxu1 %v3127_v30 }
  0x76   :  { %611 = vmatpush1.bf16.msra.mxu0 %v3133_v33  ;;  %652 = vmatpush1.bf16.msra.mxu1 %v3135_v34 }
  0x77   :  { %612 = vmatprep.subr.bf16.mxu0 %v3139_v36  ;;  %653 = vmatprep.subr.bf16.mxu1 %v3143_v37 }
  0x7a   :  { %613 = vmatpush1.bf16.msra.mxu0 %v3146_v38  ;;  %654 = vmatpush1.bf16.msra.mxu1 %v3151_v39 }
  0x7b   :  { %614 = vmatprep.subr.bf16.mxu0 %v3153_v40  ;;  %655 = vmatprep.subr.bf16.mxu1 %v3157_v41 }
  0x7e   :  { %615 = vmatpush1.bf16.msra.mxu0 %v3159_v42  ;;  %656 = vmatpush1.bf16.msra.mxu1 %v3161_v43 }
  0x7f   :  { %616 = vmatprep.subr.bf16.mxu0 %v3165_v44  ;;  %657 = vmatprep.subr.bf16.mxu1 %v3167_v45 }
  0x82   :  { %617 = vmatpush1.bf16.msra.mxu0 %v3173_v46  ;;  %658 = vmatpush1.bf16.msra.mxu1 %v3175_v47 }
  0x83   :  { %713 = vmatprep.subr.bf16.mxu0 %v3075_v10  ;;  %754 = vmatprep.subr.bf16.mxu1 %v3077_v11 }
 0x105   :  { %v219_v48 = vpop.f32.mrf.mxu0  ;;  %v282_v49 = vpop.f32.mrf.mxu1 }
 0x107   :  { %v221_v50 = vpop.f32.mrf.mxu0  ;;  %v284_v51 = vpop.f32.mrf.mxu1 }
 0x109   :  { %v3221_v52 = vpop.f32.mrf.mxu0  ;;  %v3223_v53 = vpop.f32.mrf.mxu1 }
 0x10b   :  { %v3225_v54 = vpop.f32.mrf.mxu0  ;;  %v3227_v55 = vpop.f32.mrf.mxu1 }
 0x10d   :  { %v3229_v56 = vpop.f32.mrf.mxu0  ;;  %v3231_v57 = vpop.f32.mrf.mxu1 }
 0x10f   :  { %v3233_v58 = vpop.f32.mrf.mxu0  ;;  %v3235_v59 = vpop.f32.mrf.mxu1 }
 0x110   :  { %3936 = vst [vmem:[#allocation21_spill] sm:$0xff] %v3235_v59 }
 0x111   :  { %v3237_v60 = vpop.f32.mrf.mxu0  ;;  %v3239_v61 = vpop.f32.mrf.mxu1 }
 0x112   :  { %3937 = vst [vmem:[#allocation22_spill] sm:$0xff] %v3237_v60  ;;  %3938 = vst [vmem:[#allocation23_spill] sm:$0xff] %v3239_v61  ;;  %v3934_v60 = vsub.s32 3, %v3253_v6 }
 0x113   :  { %v3241_v62 = vpop.f32.mrf.mxu0  ;;  %v3243_v63 = vpop.f32.mrf.mxu1 }
 0x114   :  { %3939 = vst [vmem:[#allocation24_spill] sm:$0xff] %v3241_v62  ;;  %3940 = vst [vmem:[#allocation25_spill] sm:$0xff] %v3243_v63 }
 0x115   :  { %v3245_v1 = vpop.f32.mrf.mxu1  ;;  %v3247_v2 = vpop.f32.mrf.mxu0 }
 0x116   :  { %3941 = vst [vmem:[#allocation26_spill] sm:$0xff] %v3245_v1  ;;  %3942 = vst [vmem:[#allocation27_spill] sm:$0xff] %v3247_v2 }
 0x117   :  { %v3249_v4 = vpop.f32.mrf.mxu1  ;;  %v3251_v5 = vpop.f32.mrf.mxu0 }
 0x118   :  { %3943 = vst [vmem:[#allocation28_spill] sm:$0xff] %v3249_v4  ;;  %3944 = vst [vmem:[#allocation29_spill] sm:$0xff] %v3251_v5 }
 0x119   :  { %v3255_v7 = vpop.f32.mrf.mxu1  ;;  %v3257_v8 = vpop.f32.mrf.mxu0 }
 0x11a   :  { %3945 = vst [vmem:[#allocation30_spill] sm:$0xff] %v3255_v7  ;;  %3946 = vst [vmem:[#allocation31_spill] sm:$0xff] %v3257_v8  ;;  %v3935_v7 = vsub.s32 2, %v3253_v6 }
 0x11b   :  { %v3260_v21 = vpop.f32.mrf.mxu1  ;;  %v3266_v31 = vpop.f32.mrf.mxu0 }
 0x11c   :  { %3947 = vst [vmem:[#allocation32_spill] sm:$0xff] %v3260_v21  ;;  %3948 = vst [vmem:[#allocation33_spill] sm:$0xff] %v3266_v31  ;;  %v3275_v21 = vrot.slane %v142_v22, %v3933_v24  ;;  %v3280_v9 = vrot.slane %v142_v22, %v3935_v7 }
 0x125   :  { %v505_v35 = vpop.f32.mrf.mxu0  ;;  %v546_v3 = vpop.f32.mrf.mxu1 }
 0x126   :  { %v553_v0 = vadd.f32 %v505_v35, %v219_v48  ;;  %v555_v61 = vadd.f32 %v546_v3, %v282_v49 }
 0x127   :  { %v507_v8 = vpop.f32.mrf.mxu0  ;;  %v548_v4 = vpop.f32.mrf.mxu1 }
 0x128   :  { %v578_v1 = vadd.f32 %v3270_v32, %v553_v0  ;;  %v554_v5 = vadd.f32 %v507_v8, %v221_v50  ;;  %v580_v59 = vadd.f32 %v3280_v9, %v555_v61  ;;  %v556_v0 = vadd.f32 %v548_v4, %v284_v51 }
 0x129   :  { %v509_v2 = vpop.f32.mrf.mxu0  ;;  %v550_v31 = vpop.f32.mrf.mxu1  ;;  %v3287_v50 = vrot.slane %v142_v22, %v3934_v60 }
 0x12a   :  { %v582_v63 = vmul.f32 0.5, %v578_v1  ;;  %v579_v48 = vadd.f32 %v3275_v21, %v554_v5 }
 0x12b   :  { %v510_v35 = vpop.f32.mrf.mxu0  ;;  %v551_v62 = vpop.f32.mrf.mxu1  ;;  %v581_v49 = vadd.f32 %v3287_v50, %v556_v0 }
 0x12c   :  { %2688 = vtanh.f32 %v582_v63  ;;  %v586_v24 = vmul.f32 0.5, %v579_v48 }
 0x12d   :  { %v591_v1 = vmul.f32 0.5, %v581_v49  ;;  %v3949_v49 = vmov 0  }
 0x12e   :  { %2690 = vtanh.f32 %v586_v24 }
 0x12f   :  { %2692 = vtanh.f32 %v580_v59 }
 0x130   :  { %2694 = vtanh.f32 %v591_v1 }
 0x139   :  { %v2689_v2 = vpop.eup %2688 }
 0x13a   :  { %v584_v5 = vadd.f32 1.0, %v2689_v2 }
 0x13b   :  { %v2691_v8 = vpop.eup %2690 }
 0x13c   :  { %v585_v62 = vmul.f32 0.5, %v584_v5  ;;  %v588_v63 = vadd.f32 1.0, %v2691_v8  ;;  %v2693_v3 = vpop.eup %2692 }
 0x13d   :  { %v2695_v51 = vpop.eup %2694 }
 0x13e   :  { %v589_v31 = vmul.f32 0.5, %v588_v63  ;;  %v596_v61 = vmul.f32 %v2693_v3, %v585_v62  ;;  %v593_v4 = vadd.f32 1.0, %v2695_v51 }
 0x140   :  { %v595_v48 = vmul.f32 0.0, %v589_v31  ;;  %v594_v59 = vmul.f32 0.5, %v593_v4 }
 0x142   :  { %v3290_v24 = vadd.f32 %v596_v61, %v595_v48 }
 0x144   :  { %2696 = vtanh.f32 %v3290_v24 }
 0x151   :  { %v2697_v22 = vpop.eup %2696 }
 0x152   :  { %v3293_v35 = vmul.f32 %v2697_v22, %v594_v59 }
 0x154   :  { %v601_v0 = vpack.c.bf16 %v3293_v35, %v3293_v35 }
 0x156   :  { %635 = vmatmul.mubr.bf16.vlgmr.msra.gmra.mxu0 %v601_v0  ;;  %676 = vmatmul.mubr.bf16.vlgmr.msra.gmra.mxu1 %v601_v0 }
 0x157   :  { %714 = vmatpush1.bf16.msra.mxu0 %v3079_v12  ;;  %755 = vmatpush1.bf16.msra.mxu1 %v3082_v13 }
 0x158   :  { %715 = vmatprep.subr.bf16.mxu0 %v3085_v14  ;;  %756 = vmatprep.subr.bf16.mxu1 %v3089_v15 }
 0x159   :  { %745 = vmatprep.mubr.bf16.mxu0 %v3949_v49  ;;  %786 = vmatprep.mubr.bf16.mxu1 %v3949_v49 }
 0x15b   :  { %716 = vmatpush1.bf16.msra.mxu0 %v3091_v16  ;;  %757 = vmatpush1.bf16.msra.mxu1 %v3093_v17 }
 0x15c   :  { %717 = vmatprep.subr.bf16.mxu0 %v3097_v18  ;;  %758 = vmatprep.subr.bf16.mxu1 %v3101_v19 }
 0x15f   :  { %718 = vmatpush1.bf16.msra.mxu0 %v3104_v20  ;;  %759 = vmatpush1.bf16.msra.mxu1 %v3109_v23 }
 0x160   :  { %719 = vmatprep.subr.bf16.mxu0 %v3113_v25  ;;  %760 = vmatprep.subr.bf16.mxu1 %v3115_v26 }
 0x163   :  { %720 = vmatpush1.bf16.msra.mxu0 %v3117_v27  ;;  %761 = vmatpush1.bf16.msra.mxu1 %v3120_v28 }
 0x164   :  { %721 = vmatprep.subr.bf16.mxu0 %v3125_v29  ;;  %762 = vmatprep.subr.bf16.mxu1 %v3127_v30 }
 0x167   :  { %722 = vmatpush1.bf16.msra.mxu0 %v3133_v33  ;;  %763 = vmatpush1.bf16.msra.mxu1 %v3135_v34 }
 0x168   :  { %723 = vmatprep.subr.bf16.mxu0 %v3139_v36  ;;  %764 = vmatprep.subr.bf16.mxu1 %v3143_v37 }
 0x16b   :  { %724 = vmatpush1.bf16.msra.mxu0 %v3146_v38  ;;  %765 = vmatpush1.bf16.msra.mxu1 %v3151_v39 }
 0x16c   :  { %725 = vmatprep.subr.bf16.mxu0 %v3153_v40  ;;  %766 = vmatprep.subr.bf16.mxu1 %v3157_v41 }
 0x16f   :  { %726 = vmatpush1.bf16.msra.mxu0 %v3159_v42  ;;  %767 = vmatpush1.bf16.msra.mxu1 %v3161_v43 }
 0x170   :  { %727 = vmatprep.subr.bf16.mxu0 %v3165_v44  ;;  %768 = vmatprep.subr.bf16.mxu1 %v3167_v45 }
 0x173   :  { %728 = vmatpush1.bf16.msra.mxu0 %v3173_v46  ;;  %769 = vmatpush1.bf16.msra.mxu1 %v3175_v47 }
 0x174   :  { %824 = vmatprep.subr.bf16.mxu0 %v3075_v10  ;;  %865 = vmatprep.subr.bf16.mxu1 %v3077_v11 }
 0x216   :  { %v636_v1 = vpop.f32.mrf.mxu0  ;;  %v677_v2 = vpop.f32.mrf.mxu1 }
 0x217   :  { %v684_v5 = vadd.f32 %v636_v1, %v3221_v52  ;;  %v686_v51 = vadd.f32 %v677_v2, %v3223_v53 }
 0x218   :  { %v638_v8 = vpop.f32.mrf.mxu0  ;;  %v679_v62 = vpop.f32.mrf.mxu1 }
 0x219   :  { %v688_v63 = vadd.f32 %v684_v5, %v3270_v32  ;;  %v685_v31 = vadd.f32 %v638_v8, %v3225_v54  ;;  %v690_v60 = vadd.f32 %v686_v51, %v3280_v9  ;;  %v687_v52 = vadd.f32 %v679_v62, %v3227_v55 }
 0x21a   :  { %v640_v3 = vpop.f32.mrf.mxu0  ;;  %v681_v48 = vpop.f32.mrf.mxu1 }
 0x21b   :  { %v692_v61 = vmul.f32 0.5, %v688_v63  ;;  %v689_v4 = vadd.f32 %v685_v31, %v3275_v21  ;;  %v691_v1 = vadd.f32 %v687_v52, %v3287_v50 }
 0x21c   :  { %v641_v59 = vpop.f32.mrf.mxu0  ;;  %v682_v22 = vpop.f32.mrf.mxu1 }
 0x21d   :  { %2698 = vtanh.f32 %v692_v61  ;;  %v696_v0 = vmul.f32 0.5, %v689_v4  ;;  %v701_v54 = vmul.f32 0.5, %v691_v1 }
 0x21f   :  { %2700 = vtanh.f32 %v696_v0 }
 0x220   :  { %2702 = vtanh.f32 %v690_v60 }
 0x221   :  { %2704 = vtanh.f32 %v701_v54 }
 0x22a   :  { %v2699_v5 = vpop.eup %2698 }
 0x22b   :  { %v694_v8 = vadd.f32 1.0, %v2699_v5 }
 0x22c   :  { %v2701_v63 = vpop.eup %2700 }
 0x22d   :  { %v695_v3 = vmul.f32 0.5, %v694_v8  ;;  %v698_v53 = vadd.f32 1.0, %v2701_v63  ;;  %v2703_v31 = vpop.eup %2702 }
 0x22e   :  { %v2705_v55 = vpop.eup %2704 }
 0x22f   :  { %v699_v2 = vmul.f32 0.5, %v698_v53  ;;  %v706_v61 = vmul.f32 %v2703_v31, %v695_v3  ;;  %v703_v60 = vadd.f32 1.0, %v2705_v55 }
 0x231   :  { %v705_v48 = vmul.f32 %v699_v2, %v3290_v24  ;;  %v704_v62 = vmul.f32 0.5, %v703_v60 }
 0x233   :  { %v3340_v4 = vadd.f32 %v706_v61, %v705_v48 }
 0x235   :  { %2706 = vtanh.f32 %v3340_v4 }
 0x242   :  { %v2707_v51 = vpop.eup %2706 }
 0x243   :  { %v3343_v59 = vmul.f32 %v2707_v51, %v704_v62 }
 0x245   :  { %v712_v22 = vpack.c.bf16 %v3343_v59, %v3343_v59 }
 0x247   :  { %746 = vmatmul.mubr.bf16.vlgmr.msra.gmra.mxu0 %v712_v22  ;;  %787 = vmatmul.mubr.bf16.vlgmr.msra.gmra.mxu1 %v712_v22 }
 0x248   :  { %825 = vmatpush1.bf16.msra.mxu0 %v3079_v12  ;;  %866 = vmatpush1.bf16.msra.mxu1 %v3082_v13 }
 0x249   :  { %826 = vmatprep.subr.bf16.mxu0 %v3085_v14  ;;  %867 = vmatprep.subr.bf16.mxu1 %v3089_v15 }
 0x24a   :  { %856 = vmatprep.mubr.bf16.mxu0 %v3949_v49  ;;  %897 = vmatprep.mubr.bf16.mxu1 %v3949_v49 }
 0x24c   :  { %827 = vmatpush1.bf16.msra.mxu0 %v3091_v16  ;;  %868 = vmatpush1.bf16.msra.mxu1 %v3093_v17 }
 0x24d   :  { %828 = vmatprep.subr.bf16.mxu0 %v3097_v18  ;;  %869 = vmatprep.subr.bf16.mxu1 %v3101_v19 }
 0x250   :  { %829 = vmatpush1.bf16.msra.mxu0 %v3104_v20  ;;  %870 = vmatpush1.bf16.msra.mxu1 %v3109_v23 }
 0x251   :  { %830 = vmatprep.subr.bf16.mxu0 %v3113_v25  ;;  %871 = vmatprep.subr.bf16.mxu1 %v3115_v26 }
 0x254   :  { %831 = vmatpush1.bf16.msra.mxu0 %v3117_v27  ;;  %872 = vmatpush1.bf16.msra.mxu1 %v3120_v28 }
 0x255   :  { %832 = vmatprep.subr.bf16.mxu0 %v3125_v29  ;;  %873 = vmatprep.subr.bf16.mxu1 %v3127_v30 }
 0x258   :  { %833 = vmatpush1.bf16.msra.mxu0 %v3133_v33  ;;  %874 = vmatpush1.bf16.msra.mxu1 %v3135_v34 }
 0x259   :  { %834 = vmatprep.subr.bf16.mxu0 %v3139_v36  ;;  %875 = vmatprep.subr.bf16.mxu1 %v3143_v37 }
 0x25c   :  { %835 = vmatpush1.bf16.msra.mxu0 %v3146_v38  ;;  %876 = vmatpush1.bf16.msra.mxu1 %v3151_v39 }
 0x25d   :  { %836 = vmatprep.subr.bf16.mxu0 %v3153_v40  ;;  %877 = vmatprep.subr.bf16.mxu1 %v3157_v41 }
 0x260   :  { %837 = vmatpush1.bf16.msra.mxu0 %v3159_v42  ;;  %878 = vmatpush1.bf16.msra.mxu1 %v3161_v43 }
 0x261   :  { %838 = vmatprep.subr.bf16.mxu0 %v3165_v44  ;;  %879 = vmatprep.subr.bf16.mxu1 %v3167_v45 }
 0x264   :  { %839 = vmatpush1.bf16.msra.mxu0 %v3173_v46  ;;  %880 = vmatpush1.bf16.msra.mxu1 %v3175_v47 }
 0x265   :  { %935 = vmatprep.subr.bf16.mxu0 %v3075_v10  ;;  %976 = vmatprep.subr.bf16.mxu1 %v3077_v11 }
 0x307   :  { %v747_v24 = vpop.f32.mrf.mxu0  ;;  %v788_v0 = vpop.f32.mrf.mxu1 }
 0x308   :  { %v795_v52 = vadd.f32 %v747_v24, %v3229_v56  ;;  %v797_v2 = vadd.f32 %v788_v0, %v3231_v57  ;;  %v3950_v56 = vld [vmem:[#allocation21_spill] sm:$0xff] }
 0x309   :  { %v749_v1 = vpop.f32.mrf.mxu0  ;;  %v790_v54 = vpop.f32.mrf.mxu1 }
 0x30a   :  { %v799_v5 = vadd.f32 %v795_v52, %v3270_v32  ;;  %v796_v8 = vadd.f32 %v749_v1, %v3233_v58  ;;  %v801_v60 = vadd.f32 %v797_v2, %v3280_v9  ;;  %v798_v62 = vadd.f32 %v790_v54, %v3950_v56 }
 0x30b   :  { %v751_v63 = vpop.f32.mrf.mxu0  ;;  %v792_v3 = vpop.f32.mrf.mxu1 }
 0x30c   :  { %v803_v53 = vmul.f32 0.5, %v799_v5  ;;  %v800_v31 = vadd.f32 %v796_v8, %v3275_v21  ;;  %v802_v51 = vadd.f32 %v798_v62, %v3287_v50 }
 0x30d   :  { %v752_v48 = vpop.f32.mrf.mxu0  ;;  %v793_v61 = vpop.f32.mrf.mxu1 }
 0x30e   :  { %2708 = vtanh.f32 %v803_v53  ;;  %v807_v55 = vmul.f32 0.5, %v800_v31  ;;  %v812_v58 = vmul.f32 0.5, %v802_v51  ;;  %v3952_v51 = vld [vmem:[#allocation24_spill] sm:$0xff] }
 0x310   :  { %2710 = vtanh.f32 %v807_v55 }
 0x311   :  { %2712 = vtanh.f32 %v801_v60 }
 0x312   :  { %2714 = vtanh.f32 %v812_v58 }
 0x31b   :  { %v2709_v22 = vpop.eup %2708 }
 0x31c   :  { %v805_v24 = vadd.f32 1.0, %v2709_v22 }
 0x31d   :  { %v2711_v52 = vpop.eup %2710 }
 0x31e   :  { %v806_v1 = vmul.f32 0.5, %v805_v24  ;;  %v809_v57 = vadd.f32 1.0, %v2711_v52  ;;  %v2713_v5 = vpop.eup %2712 }
 0x31f   :  { %v2715_v54 = vpop.eup %2714 }
 0x320   :  { %v810_v0 = vmul.f32 0.5, %v809_v57  ;;  %v817_v63 = vmul.f32 %v2713_v5, %v806_v1  ;;  %v814_v53 = vadd.f32 1.0, %v2715_v54  ;;  %v3953_v1 = vld [vmem:[#allocation23_spill] sm:$0xff] }
 0x322   :  { %v816_v8 = vmul.f32 %v810_v0, %v3340_v4  ;;  %v815_v2 = vmul.f32 0.5, %v814_v53  ;;  %v3951_v4 = vld [vmem:[#allocation22_spill] sm:$0xff] }
 0x324   :  { %v3390_v3 = vadd.f32 %v817_v63, %v816_v8  ;;  %v3954_v63 = vld [vmem:[#allocation25_spill] sm:$0xff] }
 0x326   :  { %2716 = vtanh.f32 %v3390_v3 }
 0x333   :  { %v2717_v31 = vpop.eup %2716 }
 0x334   :  { %v3393_v48 = vmul.f32 %v2717_v31, %v815_v2 }
 0x336   :  { %v823_v61 = vpack.c.bf16 %v3393_v48, %v3393_v48 }
 0x338   :  { %857 = vmatmul.mubr.bf16.vlgmr.msra.gmra.mxu0 %v823_v61  ;;  %898 = vmatmul.mubr.bf16.vlgmr.msra.gmra.mxu1 %v823_v61 }
 0x339   :  { %936 = vmatpush1.bf16.msra.mxu0 %v3079_v12  ;;  %977 = vmatpush1.bf16.msra.mxu1 %v3082_v13 }
 0x33a   :  { %937 = vmatprep.subr.bf16.mxu0 %v3085_v14  ;;  %978 = vmatprep.subr.bf16.mxu1 %v3089_v15 }
 0x33b   :  { %967 = vmatprep.mubr.bf16.mxu0 %v3949_v49  ;;  %1008 = vmatprep.mubr.bf16.mxu1 %v3949_v49 }
 0x33d   :  { %938 = vmatpush1.bf16.msra.mxu0 %v3091_v16  ;;  %979 = vmatpush1.bf16.msra.mxu1 %v3093_v17 }
 0x33e   :  { %939 = vmatprep.subr.bf16.mxu0 %v3097_v18  ;;  %980 = vmatprep.subr.bf16.mxu1 %v3101_v19 }
 0x341   :  { %940 = vmatpush1.bf16.msra.mxu0 %v3104_v20  ;;  %981 = vmatpush1.bf16.msra.mxu1 %v3109_v23 }
 0x342   :  { %941 = vmatprep.subr.bf16.mxu0 %v3113_v25  ;;  %982 = vmatprep.subr.bf16.mxu1 %v3115_v26 }
 0x345   :  { %942 = vmatpush1.bf16.msra.mxu0 %v3117_v27  ;;  %983 = vmatpush1.bf16.msra.mxu1 %v3120_v28 }
 0x346   :  { %943 = vmatprep.subr.bf16.mxu0 %v3125_v29  ;;  %984 = vmatprep.subr.bf16.mxu1 %v3127_v30 }
 0x349   :  { %944 = vmatpush1.bf16.msra.mxu0 %v3133_v33  ;;  %985 = vmatpush1.bf16.msra.mxu1 %v3135_v34 }
 0x34a   :  { %945 = vmatprep.subr.bf16.mxu0 %v3139_v36  ;;  %986 = vmatprep.subr.bf16.mxu1 %v3143_v37 }
 0x34d   :  { %946 = vmatpush1.bf16.msra.mxu0 %v3146_v38  ;;  %987 = vmatpush1.bf16.msra.mxu1 %v3151_v39 }
 0x34e   :  { %947 = vmatprep.subr.bf16.mxu0 %v3153_v40  ;;  %988 = vmatprep.subr.bf16.mxu1 %v3157_v41 }
 0x351   :  { %948 = vmatpush1.bf16.msra.mxu0 %v3159_v42  ;;  %989 = vmatpush1.bf16.msra.mxu1 %v3161_v43 }
 0x352   :  { %949 = vmatprep.subr.bf16.mxu0 %v3165_v44  ;;  %990 = vmatprep.subr.bf16.mxu1 %v3167_v45 }
 0x355   :  { %950 = vmatpush1.bf16.msra.mxu0 %v3173_v46  ;;  %991 = vmatpush1.bf16.msra.mxu1 %v3175_v47 }
 0x356   :  { %1046 = vmatprep.subr.bf16.mxu0 %v3075_v10  ;;  %1087 = vmatprep.subr.bf16.mxu1 %v3077_v11 }
 0x3f8   :  { %v858_v12 = vpop.f32.mrf.mxu0  ;;  %v899_v13 = vpop.f32.mrf.mxu1 }
 0x3f9   :  { %v906_v55 = vadd.f32 %v858_v12, %v3951_v4  ;;  %v908_v57 = vadd.f32 %v899_v13, %v3953_v1 }
 0x3fa   :  { %v860_v60 = vpop.f32.mrf.mxu0  ;;  %v901_v56 = vpop.f32.mrf.mxu1 }
 0x3fb   :  { %v910_v62 = vadd.f32 %v906_v55, %v3270_v32  ;;  %v907_v58 = vadd.f32 %v860_v60, %v3952_v51  ;;  %v912_v8 = vadd.f32 %v908_v57, %v3280_v9  ;;  %v909_v54 = vadd.f32 %v901_v56, %v3954_v63 }
 0x3fc   :  { %v862_v22 = vpop.f32.mrf.mxu0  ;;  %v903_v24 = vpop.f32.mrf.mxu1 }
 0x3fd   :  { %v914_v52 = vmul.f32 0.5, %v910_v62  ;;  %v911_v0 = vadd.f32 %v907_v58, %v3275_v21  ;;  %v913_v53 = vadd.f32 %v909_v54, %v3287_v50 }
 0x3fe   :  { %v863_v10 = vpop.f32.mrf.mxu0  ;;  %v904_v5 = vpop.f32.mrf.mxu1 }
 0x3ff   :  { %2718 = vtanh.f32 %v914_v52  ;;  %v918_v11 = vmul.f32 0.5, %v911_v0  ;;  %v923_v2 = vmul.f32 0.5, %v913_v53  ;;  %v2808_v0 = vld [vmem:[#allocation8 + $0xe0] ss:$16 sps:$4 sm:$0xff]   ;;  %v2809_v10 = vld [vmem:[#allocation8 + $0xe8] ss:$16 sps:$4 sm:$0xff]  }
 0x401   :  { %2720 = vtanh.f32 %v918_v11 }
 0x402   :  { %2722 = vtanh.f32 %v912_v8 }
 0x403   :  { %2724 = vtanh.f32 %v923_v2 }
 0x40c   :  { %v2719_v31 = vpop.eup %2718 }
 0x40d   :  { %v916_v61 = vadd.f32 1.0, %v2719_v31 }
 0x40e   :  { %v2721_v12 = vpop.eup %2720 }
 0x40f   :  { %v917_v4 = vmul.f32 0.5, %v916_v61  ;;  %v920_v13 = vadd.f32 1.0, %v2721_v12  ;;  %v2723_v60 = vpop.eup %2722 }
 0x410   :  { %v2725_v56 = vpop.eup %2724 }
 0x411   :  { %v921_v55 = vmul.f32 0.5, %v920_v13  ;;  %v928_v51 = vmul.f32 %v2723_v60, %v917_v4  ;;  %v925_v22 = vadd.f32 1.0, %v2725_v56  ;;  %v2592_v13 = vld [vmem:[#allocation9 + $0xe0] ss:$16 sps:$4 sm:$0xff]   ;;  %v2601_v56 = vld [vmem:[#allocation9 + $0xc8] ss:$16 sps:$4 sm:$0xff]  }
 0x413   :  { %v927_v62 = vmul.f32 %v921_v55, %v3390_v3  ;;  %v926_v24 = vmul.f32 0.5, %v925_v22  ;;  %v2595_v55 = vld [vmem:[#allocation9 + $0xe8] ss:$16 sps:$4 sm:$0xff]   ;;  %v2606_v22 = vld [vmem:[#allocation9 + $0xa4] ss:$16 sps:$4 sm:$0xff]  }
 0x415   :  { %v3440_v58 = vadd.f32 %v928_v51, %v927_v62  ;;  %v2600_v62 = vld [vmem:[#allocation9 + $0xc4] ss:$16 sps:$4 sm:$0xff]   ;;  %v2603_v51 = vld [vmem:[#allocation9 + $0xcc] ss:$16 sps:$4 sm:$0xff]  }
 0x417   :  { %2726 = vtanh.f32 %v3440_v58 }
 0x424   :  { %v2727_v52 = vpop.eup %2726 }
 0x425   :  { %v3443_v1 = vmul.f32 %v2727_v52, %v926_v24  ;;  %v2609_v24 = vld [vmem:[#allocation9 + $0xac] ss:$16 sps:$4 sm:$0xff]   ;;  %v2604_v52 = vld [vmem:[#allocation9 + $0xa0] ss:$16 sps:$4 sm:$0xff]  }
 0x427   :  { %v934_v57 = vpack.c.bf16 %v3443_v1, %v3443_v1 }
 0x429   :  { %968 = vmatmul.mubr.bf16.vlgmr.msra.gmra.mxu0 %v934_v57  ;;  %1009 = vmatmul.mubr.bf16.vlgmr.msra.gmra.mxu1 %v934_v57  ;;  %v2607_v57 = vld [vmem:[#allocation9 + $0xa8] ss:$16 sps:$4 sm:$0xff]  }
 0x42a   :  { %1047 = vmatpush1.bf16.msra.mxu0 %v2808_v0  ;;  %1088 = vmatpush1.bf16.msra.mxu1 %v2809_v10  ;;  %v2612_v0 = vld [vmem:[#allocation9 + $0x84] ss:$16 sps:$4 sm:$0xff]   ;;  %v2615_v10 = vld [vmem:[#allocation9 + $0x8c] ss:$16 sps:$4 sm:$0xff]  }
 0x42b   :  { %1048 = vmatprep.subr.bf16.mxu0 %v3085_v14  ;;  %1089 = vmatprep.subr.bf16.mxu1 %v3089_v15  ;;  %v2594_v14 = vld [vmem:[#allocation9 + $0xe4] ss:$16 sps:$4 sm:$0xff]   ;;  %v2597_v15 = vld [vmem:[#allocation9 + $0xec] ss:$16 sps:$4 sm:$0xff]  }
 0x42c   :  { %1078 = vmatprep.mubr.bf16.mxu0 %v3949_v49  ;;  %1119 = vmatprep.mubr.bf16.mxu1 %v3949_v49 }
 0x42e   :  { %1049 = vmatpush1.bf16.msra.mxu0 %v3091_v16  ;;  %1090 = vmatpush1.bf16.msra.mxu1 %v3093_v17 }
 0x42f   :  { %1050 = vmatprep.subr.bf16.mxu0 %v3097_v18  ;;  %1091 = vmatprep.subr.bf16.mxu1 %v3101_v19  ;;  %v3955_v18 = vld [vmem:[#allocation27_spill] sm:$0xff] }
 0x432   :  { %1051 = vmatpush1.bf16.msra.mxu0 %v3104_v20  ;;  %1092 = vmatpush1.bf16.msra.mxu1 %v3109_v23 }
 0x433   :  { %1052 = vmatprep.subr.bf16.mxu0 %v3113_v25  ;;  %1093 = vmatprep.subr.bf16.mxu1 %v3115_v26  ;;  %v3956_v26 = vld [vmem:[#allocation29_spill] sm:$0xff] }
 0x436   :  { %1053 = vmatpush1.bf16.msra.mxu0 %v3117_v27  ;;  %1094 = vmatpush1.bf16.msra.mxu1 %v3120_v28 }
 0x437   :  { %1054 = vmatprep.subr.bf16.mxu0 %v3125_v29  ;;  %1095 = vmatprep.subr.bf16.mxu1 %v3127_v30 }
 0x43a   :  { %1055 = vmatpush1.bf16.msra.mxu0 %v3133_v33  ;;  %1096 = vmatpush1.bf16.msra.mxu1 %v3135_v34  ;;  %v3957_v33 = vld [vmem:[#allocation26_spill] sm:$0xff] }
 0x43b   :  { %1056 = vmatprep.subr.bf16.mxu0 %v3139_v36  ;;  %1097 = vmatprep.subr.bf16.mxu1 %v3143_v37 }
 0x43e   :  { %1057 = vmatpush1.bf16.msra.mxu0 %v3146_v38  ;;  %1098 = vmatpush1.bf16.msra.mxu1 %v3151_v39 }
 0x43f   :  { %1058 = vmatprep.subr.bf16.mxu0 %v3153_v40  ;;  %1099 = vmatprep.subr.bf16.mxu1 %v3157_v41  ;;  %v3958_v41 = vld [vmem:[#allocation28_spill] sm:$0xff] }
 0x442   :  { %1059 = vmatpush1.bf16.msra.mxu0 %v3159_v42  ;;  %1100 = vmatpush1.bf16.msra.mxu1 %v3161_v43 }
 0x443   :  { %1060 = vmatprep.subr.bf16.mxu0 %v3165_v44  ;;  %1101 = vmatprep.subr.bf16.mxu1 %v3167_v45 }
 0x446   :  { %1061 = vmatpush1.bf16.msra.mxu0 %v3173_v46  ;;  %1102 = vmatpush1.bf16.msra.mxu1 %v3175_v47 }
 0x447   :  { %1392 = vmatprep.subr.bf16.mxu0 %v2594_v14  ;;  %1455 = vmatprep.subr.bf16.mxu1 %v2597_v15  ;;  %v2610_v14 = vld [vmem:[#allocation9 + $0x80] ss:$16 sps:$4 sm:$0xff]   ;;  %v2613_v15 = vld [vmem:[#allocation9 + $0x88] ss:$16 sps:$4 sm:$0xff]  }
 0x4e9   :  { %v969_v16 = vpop.f32.mrf.mxu0  ;;  %v1010_v17 = vpop.f32.mrf.mxu1 }
 0x4ea   :  { %v1017_v19 = vadd.f32 %v969_v16, %v3955_v18  ;;  %v1019_v34 = vadd.f32 %v1010_v17, %v3957_v33  ;;  %v2618_v16 = vld [vmem:[#allocation9 + $0x64] ss:$16 sps:$4 sm:$0xff]   ;;  %v2621_v17 = vld [vmem:[#allocation9 + $0x6c] ss:$16 sps:$4 sm:$0xff]   ;;  %v2616_v18 = vld [vmem:[#allocation9 + $0x60] ss:$16 sps:$4 sm:$0xff]  }
 0x4eb   :  { %v971_v20 = vpop.f32.mrf.mxu0  ;;  %v1012_v23 = vpop.f32.mrf.mxu1  ;;  %v2636_v33 = vld [vmem:[#allocation9 + $0x4] ss:$16 sps:$4 sm:$0xff]  }
 0x4ec   :  { %v1021_v25 = vadd.f32 %v1017_v19, %v3270_v32  ;;  %v1018_v27 = vadd.f32 %v971_v20, %v3956_v26  ;;  %v1023_v40 = vadd.f32 %v1019_v34, %v3280_v9  ;;  %v1020_v42 = vadd.f32 %v1012_v23, %v3958_v41  ;;  %v2619_v19 = vld [vmem:[#allocation9 + $0x68] ss:$16 sps:$4 sm:$0xff]   ;;  %v2624_v20 = vld [vmem:[#allocation9 + $0x44] ss:$16 sps:$4 sm:$0xff]   ;;  %v2627_v23 = vld [vmem:[#allocation9 + $0x4c] ss:$16 sps:$4 sm:$0xff]  }
 0x4ed   :  { %v973_v28 = vpop.f32.mrf.mxu0  ;;  %v1014_v29 = vpop.f32.mrf.mxu1  ;;  %v2625_v26 = vld [vmem:[#allocation9 + $0x48] ss:$16 sps:$4 sm:$0xff]   ;;  %v2639_v34 = vld [vmem:[#allocation9 + $0xc] ss:$16 sps:$4 sm:$0xff]  }
 0x4ee   :  { %v1025_v30 = vmul.f32 0.5, %v1021_v25  ;;  %v1022_v36 = vadd.f32 %v1018_v27, %v3275_v21  ;;  %v1024_v43 = vadd.f32 %v1020_v42, %v3287_v50  ;;  %v2622_v25 = vld [vmem:[#allocation9 + $0x40] ss:$16 sps:$4 sm:$0xff]   ;;  %v2630_v27 = vld [vmem:[#allocation9 + $0x24] ss:$16 sps:$4 sm:$0xff]  }
 0x4ef   :  { %v974_v37 = vpop.f32.mrf.mxu0  ;;  %v1015_v38 = vpop.f32.mrf.mxu1  ;;  %v2633_v28 = vld [vmem:[#allocation9 + $0x2c] ss:$16 sps:$4 sm:$0xff]   ;;  %v2628_v29 = vld [vmem:[#allocation9 + $0x20] ss:$16 sps:$4 sm:$0xff]  }
 0x4f0   :  { %2728 = vtanh.f32 %v1025_v30  ;;  %v1029_v39 = vmul.f32 0.5, %v1022_v36  ;;  %v1034_v44 = vmul.f32 0.5, %v1024_v43  ;;  %v2631_v30 = vld [vmem:[#allocation9 + $0x28] ss:$16 sps:$4 sm:$0xff]   ;;  %v2634_v36 = vld [vmem:[#allocation9] ss:$16 sps:$4 sm:$0xff]   ;;  %v1229_v38 = vpack.c.bf16 %v3343_v59, %v3293_v35 }
 0x4f1   :  { %v2637_v37 = vld [vmem:[#allocation9 + $0x8] ss:$16 sps:$4 sm:$0xff]   ;;  %v3505_v41 = vld [vmem:[#allocation11 + $0xec] ss:$16 sps:$4 sm:$0xff]   ;;  %v3507_v35 = vld [vmem:[#allocation11 + $0xe0] ss:$16 sps:$4 sm:$0xff]  }
 0x4f2   :  { %2730 = vtanh.f32 %v1029_v39  ;;  %v1230_v39 = vpack.c.bf16 %v3443_v1, %v3393_v48  ;;  %v3509_v59 = vld [vmem:[#allocation11 + $0xe8] ss:$16 sps:$4 sm:$0xff]   ;;  %v3515_v48 = vld [vmem:[#allocation11 + $0xc4] ss:$16 sps:$4 sm:$0xff]   ;;  %v3517_v1 = vld [vmem:[#allocation11 + $0xcc] ss:$16 sps:$4 sm:$0xff]  }
 0x4f3   :  { %2732 = vtanh.f32 %v1023_v40  ;;  %v3503_v40 = vld [vmem:[#allocation11 + $0xe4] ss:$16 sps:$4 sm:$0xff]   ;;  %v3519_v42 = vld [vmem:[#allocation11 + $0xc0] ss:$16 sps:$4 sm:$0xff]   ;;  %v3521_v43 = vld [vmem:[#allocation11 + $0xc8] ss:$16 sps:$4 sm:$0xff]  }
 0x4f4   :  { %2734 = vtanh.f32 %v1034_v44  ;;  %v3527_v44 = vld [vmem:[#allocation11 + $0xa4] ss:$16 sps:$4 sm:$0xff]  }
 0x4fd   :  { %v2729_v45 = vpop.eup %2728 }
 0x4fe   :  { %v1027_v46 = vadd.f32 1.0, %v2729_v45  ;;  %v3529_v45 = vld [vmem:[#allocation11 + $0xac] ss:$16 sps:$4 sm:$0xff]  }
 0x4ff   :  { %v2731_v47 = vpop.eup %2730 }
 0x500   :  { %v1028_v3 = vmul.f32 0.5, %v1027_v46  ;;  %v1031_v5 = vadd.f32 1.0, %v2731_v47  ;;  %v2733_v8 = vpop.eup %2732  ;;  %v3531_v46 = vld [vmem:[#allocation11 + $0xa0] ss:$16 sps:$4 sm:$0xff]   ;;  %v3533_v47 = vld [vmem:[#allocation11 + $0xa8] ss:$16 sps:$4 sm:$0xff]  }
 0x501   :  { %v2735_v2 = vpop.eup %2734 }
 0x502   :  { %v1032_v11 = vmul.f32 0.5, %v1031_v5  ;;  %v1039_v54 = vmul.f32 %v2733_v8, %v1028_v3  ;;  %v1036_v31 = vadd.f32 1.0, %v2735_v2  ;;  %v3539_v3 = vld [vmem:[#allocation11 + $0x84] ss:$16 sps:$4 sm:$0xff]   ;;  %v3541_v5 = vld [vmem:[#allocation11 + $0x8c] ss:$16 sps:$4 sm:$0xff]  }
 0x503   :  { %v3545_v8 = vld [vmem:[#allocation11 + $0x88] ss:$16 sps:$4 sm:$0xff]   ;;  %v3555_v2 = vld [vmem:[#allocation11 + $0x60] ss:$16 sps:$4 sm:$0xff]  }
 0x504   :  { %v1038_v63 = vmul.f32 %v1032_v11, %v3440_v58  ;;  %v1037_v61 = vmul.f32 0.5, %v1036_v31  ;;  %v2598_v58 = vld [vmem:[#allocation9 + $0xc0] ss:$16 sps:$4 sm:$0xff]   ;;  %v3557_v31 = vld [vmem:[#allocation11 + $0x68] ss:$16 sps:$4 sm:$0xff]  }
 0x505   :  { %v3543_v11 = vld [vmem:[#allocation11 + $0x80] ss:$16 sps:$4 sm:$0xff]  }
 0x506   :  { %v3486_v53 = vadd.f32 %v1039_v54, %v1038_v63  ;;  %v3551_v63 = vld [vmem:[#allocation11 + $0x64] ss:$16 sps:$4 sm:$0xff]   ;;  %v3553_v54 = vld [vmem:[#allocation11 + $0x6c] ss:$16 sps:$4 sm:$0xff]  }
 0x508   :  { %2736 = vtanh.f32 %v3486_v53 }
 0x515   :  { %v2737_v12 = vpop.eup %2736 }
 0x516   :  { %v3489_v4 = vmul.f32 %v2737_v12, %v1037_v61  ;;  %v3563_v61 = vld [vmem:[#allocation11 + $0x44] ss:$16 sps:$4 sm:$0xff]   ;;  %v3565_v12 = vld [vmem:[#allocation11 + $0x4c] ss:$16 sps:$4 sm:$0xff]  }
 0x518   :  { %v1045_v60 = vpack.c.bf16 %v3489_v4, %v3489_v4 }
 0x51a   :  { %1079 = vmatmul.mubr.bf16.vlgmr.msra.gmra.mxu0 %v1045_v60  ;;  %1120 = vmatmul.mubr.bf16.vlgmr.msra.gmra.mxu1 %v1045_v60  ;;  %v3575_v60 = vld [vmem:[#allocation11 + $0x24] ss:$16 sps:$4 sm:$0xff]  }
 0x51b   :  { %1393 = vmatpush1.bf16.msra.mxu0 %v2592_v13  ;;  %1456 = vmatpush1.bf16.msra.mxu1 %v2595_v55  ;;  %v3567_v13 = vld [vmem:[#allocation11 + $0x40] ss:$16 sps:$4 sm:$0xff]   ;;  %v3569_v55 = vld [vmem:[#allocation11 + $0x48] ss:$16 sps:$4 sm:$0xff]  }
 0x51c   :  { %1394 = vmatprep.subr.bf16.mxu0 %v2600_v62  ;;  %1457 = vmatprep.subr.bf16.mxu1 %v2603_v51  ;;  %v3577_v62 = vld [vmem:[#allocation11 + $0x2c] ss:$16 sps:$4 sm:$0xff]   ;;  %v3579_v51 = vld [vmem:[#allocation11 + $0x20] ss:$16 sps:$4 sm:$0xff]  }
 0x51d   :  { %1424 = vmatprep.mubr.bf16.mxu0 %v3949_v49  ;;  %1487 = vmatprep.mubr.bf16.mxu1 %v3949_v49 }
 0x51f   :  { %1395 = vmatpush1.bf16.msra.mxu0 %v2598_v58  ;;  %1458 = vmatpush1.bf16.msra.mxu1 %v2601_v56  ;;  %v3581_v58 = vld [vmem:[#allocation11 + $0x28] ss:$16 sps:$4 sm:$0xff]   ;;  %v3583_v56 = vld [vmem:[#allocation11 + $0x4] ss:$16 sps:$4 sm:$0xff]  }
 0x520   :  { %1396 = vmatprep.subr.bf16.mxu0 %v2606_v22  ;;  %1459 = vmatprep.subr.bf16.mxu1 %v2609_v24  ;;  %v3587_v22 = vld [vmem:[#allocation11 + $0xc] ss:$16 sps:$4 sm:$0xff]   ;;  %v3591_v24 = vld [vmem:[#allocation11] ss:$16 sps:$4 sm:$0xff]  }
 0x523   :  { %1397 = vmatpush1.bf16.msra.mxu0 %v2604_v52  ;;  %1460 = vmatpush1.bf16.msra.mxu1 %v2607_v57  ;;  %v3593_v52 = vld [vmem:[#allocation11 + $0x8] ss:$16 sps:$4 sm:$0xff]  }
 0x524   :  { %1398 = vmatprep.subr.bf16.mxu0 %v2612_v0  ;;  %1461 = vmatprep.subr.bf16.mxu1 %v2615_v10  ;;  %v3959_v10 = vld [vmem:[#allocation31_spill] sm:$0xff] }
 0x527   :  { %1399 = vmatpush1.bf16.msra.mxu0 %v2610_v14  ;;  %1462 = vmatpush1.bf16.msra.mxu1 %v2613_v15 }
 0x528   :  { %1400 = vmatprep.subr.bf16.mxu0 %v2618_v16  ;;  %1463 = vmatprep.subr.bf16.mxu1 %v2621_v17 }
 0x52b   :  { %1401 = vmatpush1.bf16.msra.mxu0 %v2616_v18  ;;  %1464 = vmatpush1.bf16.msra.mxu1 %v2619_v19  ;;  %v3960_v18 = vld [vmem:[#allocation33_spill] sm:$0xff] }
 0x52c   :  { %1402 = vmatprep.subr.bf16.mxu0 %v2624_v20  ;;  %1465 = vmatprep.subr.bf16.mxu1 %v2627_v23 }
 0x52f   :  { %1403 = vmatpush1.bf16.msra.mxu0 %v2622_v25  ;;  %1466 = vmatpush1.bf16.msra.mxu1 %v2625_v26  ;;  %v3961_v26 = vld [vmem:[#allocation30_spill] sm:$0xff] }
 0x530   :  { %1404 = vmatprep.subr.bf16.mxu0 %v2630_v27  ;;  %1467 = vmatprep.subr.bf16.mxu1 %v2633_v28 }
 0x533   :  { %1405 = vmatpush1.bf16.msra.mxu0 %v2628_v29  ;;  %1468 = vmatpush1.bf16.msra.mxu1 %v2631_v30 }
 0x534   :  { %1406 = vmatprep.subr.bf16.mxu0 %v2636_v33  ;;  %1469 = vmatprep.subr.bf16.mxu1 %v2639_v34 }
 0x537   :  { %1407 = vmatpush1.bf16.msra.mxu0 %v2634_v36  ;;  %1470 = vmatpush1.bf16.msra.mxu1 %v2637_v37  ;;  %v3962_v36 = vld [vmem:[#allocation32_spill] sm:$0xff] }
 0x538   :  { %1678 = vmatprep.subr.bf16.mxu0 %v3503_v40  ;;  %1719 = vmatprep.subr.bf16.mxu1 %v3505_v41 }
 0x53a   :  { %1425 = vmatmul.mubr.bf16.vlgmr.msra.gmra.mxu0 %v1229_v38  ;;  %1488 = vmatmul.mubr.bf16.vlgmr.msra.gmra.mxu1 %v1229_v38 }
 0x53b   :  { %1434 = vmatprep.mubr.bf16.mxu0 %v3949_v49  ;;  %1497 = vmatprep.mubr.bf16.mxu1 %v3949_v49 }
 0x53c   :  { %1679 = vmatpush1.bf16.msra.mxu0 %v3507_v35  ;;  %1720 = vmatpush1.bf16.msra.mxu1 %v3509_v59 }
 0x53d   :  { %1680 = vmatprep.subr.bf16.mxu0 %v3515_v48  ;;  %1721 = vmatprep.subr.bf16.mxu1 %v3517_v1 }
 0x540   :  { %1681 = vmatpush1.bf16.msra.mxu0 %v3519_v42  ;;  %1722 = vmatpush1.bf16.msra.mxu1 %v3521_v43 }
 0x541   :  { %1682 = vmatprep.subr.bf16.mxu0 %v3527_v44  ;;  %1723 = vmatprep.subr.bf16.mxu1 %v3529_v45 }
 0x542   :  { %1435 = vmatmul.mubr.bf16.gmra.mxu0 %v1230_v39  ;;  %1498 = vmatmul.mubr.bf16.gmra.mxu1 %v1230_v39 }
 0x543   :  { %1444 = vmatprep.mubr.bf16.mxu0 %v3949_v49  ;;  %1507 = vmatprep.mubr.bf16.mxu1 %v3949_v49 }
 0x544   :  { %1683 = vmatpush1.bf16.msra.mxu0 %v3531_v46  ;;  %1724 = vmatpush1.bf16.msra.mxu1 %v3533_v47 }
 0x545   :  { %1684 = vmatprep.subr.bf16.mxu0 %v3539_v3  ;;  %1725 = vmatprep.subr.bf16.mxu1 %v3541_v5 }
 0x548   :  { %1685 = vmatpush1.bf16.msra.mxu0 %v3543_v11  ;;  %1726 = vmatpush1.bf16.msra.mxu1 %v3545_v8 }
 0x549   :  { %1686 = vmatprep.subr.bf16.mxu0 %v3551_v63  ;;  %1727 = vmatprep.subr.bf16.mxu1 %v3553_v54 }
 0x54c   :  { %1687 = vmatpush1.bf16.msra.mxu0 %v3555_v2  ;;  %1728 = vmatpush1.bf16.msra.mxu1 %v3557_v31 }
 0x54d   :  { %1688 = vmatprep.subr.bf16.mxu0 %v3563_v61  ;;  %1729 = vmatprep.subr.bf16.mxu1 %v3565_v12 }
 0x550   :  { %1689 = vmatpush1.bf16.msra.mxu0 %v3567_v13  ;;  %1730 = vmatpush1.bf16.msra.mxu1 %v3569_v55 }
 0x551   :  { %1690 = vmatprep.subr.bf16.mxu0 %v3575_v60  ;;  %1731 = vmatprep.subr.bf16.mxu1 %v3577_v62 }
 0x554   :  { %1691 = vmatpush1.bf16.msra.mxu0 %v3579_v51  ;;  %1732 = vmatpush1.bf16.msra.mxu1 %v3581_v58 }
 0x555   :  { %1692 = vmatprep.subr.bf16.mxu0 %v3583_v56  ;;  %1733 = vmatprep.subr.bf16.mxu1 %v3587_v22 }
 0x558   :  { %1693 = vmatpush1.bf16.msra.mxu0 %v3591_v24  ;;  %1734 = vmatpush1.bf16.msra.mxu1 %v3593_v52 }
 0x559   :  { %1809 = vmatprep.subr.bf16.mxu0 %v3503_v40  ;;  %1850 = vmatprep.subr.bf16.mxu1 %v3505_v41 }
 0x5da   :  { %v1080_v57 = vpop.f32.mrf.mxu0  ;;  %v1121_v0 = vpop.f32.mrf.mxu1 }
 0x5db   :  { %v1128_v14 = vadd.f32 %v1080_v57, %v3959_v10  ;;  %v1130_v27 = vadd.f32 %v1121_v0, %v3961_v26 }
 0x5dc   :  { %v1082_v15 = vpop.f32.mrf.mxu0  ;;  %v1123_v16 = vpop.f32.mrf.mxu1 }
 0x5dd   :  { %v1132_v17 = vadd.f32 %v1128_v14, %v3270_v32  ;;  %v1129_v19 = vadd.f32 %v1082_v15, %v3960_v18  ;;  %v1134_v34 = vadd.f32 %v1130_v27, %v3280_v9  ;;  %v1131_v37 = vadd.f32 %v1123_v16, %v3962_v36 }
 0x5de   :  { %v1084_v20 = vpop.f32.mrf.mxu0  ;;  %v1125_v23 = vpop.f32.mrf.mxu1 }
 0x5df   :  { %v1136_v25 = vmul.f32 0.5, %v1132_v17  ;;  %v1133_v28 = vadd.f32 %v1129_v19, %v3275_v21  ;;  %v1135_v32 = vadd.f32 %v1131_v37, %v3287_v50 }
 0x5e0   :  { %v1085_v29 = vpop.f32.mrf.mxu0  ;;  %v1126_v30 = vpop.f32.mrf.mxu1 }
 0x5e1   :  { %2738 = vtanh.f32 %v1136_v25  ;;  %v1140_v33 = vmul.f32 0.5, %v1133_v28  ;;  %v1145_v38 = vmul.f32 0.5, %v1135_v32 }
 0x5e3   :  { %2740 = vtanh.f32 %v1140_v33 }
 0x5e4   :  { %2742 = vtanh.f32 %v1134_v34 }
 0x5e5   :  { %2744 = vtanh.f32 %v1145_v38 }
 0x5ee   :  { %v2739_v39 = vpop.eup %2738 }
 0x5ef   :  { %v1138_v57 = vadd.f32 1.0, %v2739_v39 }
 0x5f0   :  { %v2741_v10 = vpop.eup %2740 }
 0x5f1   :  { %v1139_v14 = vmul.f32 0.5, %v1138_v57  ;;  %v1142_v0 = vadd.f32 1.0, %v2741_v10  ;;  %v2743_v15 = vpop.eup %2742 }
 0x5f2   :  { %v2745_v9 = vpop.eup %2744 }
 0x5f3   :  { %v1143_v21 = vmul.f32 0.5, %v1142_v0  ;;  %v1150_v18 = vmul.f32 %v2743_v15, %v1139_v14  ;;  %v1147_v16 = vadd.f32 1.0, %v2745_v9 }
 0x5f5   :  { %v1149_v17 = vmul.f32 %v1143_v21, %v3486_v53  ;;  %v1148_v20 = vmul.f32 0.5, %v1147_v16 }
 0x5f7   :  { %v1151_v19 = vadd.f32 %v1150_v18, %v1149_v17 }
 0x5f9   :  { %2746 = vtanh.f32 %v1151_v19  ;;  %1157 = vst [vmem:[#allocation15] sm:$0xff] %v1151_v19  ;;  %v1228_v19 = vld [vmem:[%s3926_s6] sm:$0xf]  ;;  %s2990_s6 = smov [#allocation13]  }
 0x5fa   :  { %v1426_v53 = vpop.f32.mrf.mxu0  ;;  %s2384_s13 = sshll.u32 %s2990_s6, 4  ;;  %s2385_s13 = int_to_ptr.vmem [resolvable:$true] %s2384_s13 }
 0x5fb   :  { %s2910_s20 = scalar_lea.vmem %s2385_s13, 256  ;;  %p2915_p12 = scmp.lt.s32.totalorder %s2385_s13, %s2385_s13 }
 0x5fc   :  { %v1428_v26 = vpop.f32.mrf.mxu0  ;;  %p2911_p11 = scmp.ne.s32.totalorder %s2385_s13, %s2910_s20  ;;  %p2916_p13 = scmp.lt.s32.totalorder %s2910_s20, %s2910_s20 }
 0x5fe   :  { %v3649_v28 = vpop.f32.mrf.mxu0  ;;  %p2917_p0 = por %p2916_p13, %p2915_p12 }
 0x600   :  { %v3653_v30 = vpop.f32.mrf.mxu0  ;;  %p2918_p1 = pnand %p2917_p0, %p2911_p11 }
 0x602   :  { %v3657_v34 = vpop.f32.mrf.mxu0 }
 0x604   :  { %v3661_v37 = vpop.f32.mrf.mxu0 }
 0x606   :  { %v2747_v23 = vpop.eup %2746  ;;  %v3665_v38 = vpop.f32.mrf.mxu0 }
 0x607   :  { %v1153_v50 = vmul.f32 %v2747_v23, %v1148_v20  ;;  %3965 = vst [vmem:[#allocation24_spill] sm:$0xff] %v3665_v38  ;;  %v3977_v20 = vsub.s32 0, %v3253_v6 }
 0x608   :  { %v3669_v57 = vpop.f32.mrf.mxu0 }
 0x609   :  { %v1231_v25 = vpack.c.bf16 %v1153_v50, %v3489_v4  ;;  %1156 = vst [vmem:[#allocation13] sm:$0xff] %v1153_v50  ;;  %v1489_v4 = vpop.f32.mrf.mxu1  ;;  %3967 = vst [vmem:[#allocation25_spill] sm:$0xff] %v3669_v57  ;;  %v3694_v23 = vrot.slane %v1228_v19, %v3977_v20  ;;  %v3979_v57 = vsub.s32 2, %v3253_v6 }
 0x60b   :  { %1445 = vmatmul.mubr.bf16.gmra.mxu0 %v1231_v25  ;;  %1508 = vmatmul.mubr.bf16.gmra.mxu1 %v1231_v25  ;;  %v1491_v27 = vpop.f32.mrf.mxu1  ;;  %v3703_v20 = vrot.slane %v1228_v19, %v3979_v57 }
 0x60c   :  { %1710 = vmatprep.mubr.bf16.mxu0 %v3949_v49  ;;  %1751 = vmatprep.mubr.bf16.mxu1 %v3949_v49 }
 0x60d   :  { %v3651_v29 = vpop.f32.mrf.mxu1 }
 0x60f   :  { %v3655_v33 = vpop.f32.mrf.mxu1 }
 0x611   :  { %v3659_v36 = vpop.f32.mrf.mxu1 }
 0x612   :  { %3963 = vst [vmem:[#allocation21_spill] sm:$0xff] %v3659_v36 }
 0x613   :  { %1711 = vmatmul.mubr.bf16.vlgmr.msra.gmra.mxu0 %v3949_v49  ;;  %1752 = vmatmul.mubr.bf16.vlgmr.msra.gmra.mxu1 %v3949_v49  ;;  %v3663_v32 = vpop.f32.mrf.mxu1 }
 0x614   :  { %1810 = vmatpush1.bf16.msra.mxu0 %v3507_v35  ;;  %1851 = vmatpush1.bf16.msra.mxu1 %v3509_v59  ;;  %3964 = vst [vmem:[#allocation22_spill] sm:$0xff] %v3663_v32 }
 0x615   :  { %1811 = vmatprep.subr.bf16.mxu0 %v3515_v48  ;;  %1852 = vmatprep.subr.bf16.mxu1 %v3517_v1  ;;  %v3667_v39 = vpop.f32.mrf.mxu1 }
 0x616   :  { %1841 = vmatprep.mubr.bf16.mxu0 %v3949_v49  ;;  %1882 = vmatprep.mubr.bf16.mxu1 %v3949_v49  ;;  %3966 = vst [vmem:[#allocation23_spill] sm:$0xff] %v3667_v39 }
 0x617   :  { %v3671_v10 = vpop.f32.mrf.mxu1 }
 0x618   :  { %1812 = vmatpush1.bf16.msra.mxu0 %v3519_v42  ;;  %1853 = vmatpush1.bf16.msra.mxu1 %v3521_v43  ;;  %3968 = vst [vmem:[#allocation27_spill] sm:$0xff] %v3671_v10 }
 0x619   :  { %1813 = vmatprep.subr.bf16.mxu0 %v3527_v44  ;;  %1854 = vmatprep.subr.bf16.mxu1 %v3529_v45 }
 0x61c   :  { %1814 = vmatpush1.bf16.msra.mxu0 %v3531_v46  ;;  %1855 = vmatpush1.bf16.msra.mxu1 %v3533_v47 }
 0x61d   :  { %1815 = vmatprep.subr.bf16.mxu0 %v3539_v3  ;;  %1856 = vmatprep.subr.bf16.mxu1 %v3541_v5 }
 0x620   :  { %1816 = vmatpush1.bf16.msra.mxu0 %v3543_v11  ;;  %1857 = vmatpush1.bf16.msra.mxu1 %v3545_v8 }
 0x621   :  { %1817 = vmatprep.subr.bf16.mxu0 %v3551_v63  ;;  %1858 = vmatprep.subr.bf16.mxu1 %v3553_v54 }
 0x624   :  { %1818 = vmatpush1.bf16.msra.mxu0 %v3555_v2  ;;  %1859 = vmatpush1.bf16.msra.mxu1 %v3557_v31 }
 0x625   :  { %1819 = vmatprep.subr.bf16.mxu0 %v3563_v61  ;;  %1860 = vmatprep.subr.bf16.mxu1 %v3565_v12 }
 0x628   :  { %1820 = vmatpush1.bf16.msra.mxu0 %v3567_v13  ;;  %1861 = vmatpush1.bf16.msra.mxu1 %v3569_v55 }
 0x629   :  { %1821 = vmatprep.subr.bf16.mxu0 %v3575_v60  ;;  %1862 = vmatprep.subr.bf16.mxu1 %v3577_v62 }
 0x62c   :  { %1822 = vmatpush1.bf16.msra.mxu0 %v3579_v51  ;;  %1863 = vmatpush1.bf16.msra.mxu1 %v3581_v58 }
 0x62d   :  { %1823 = vmatprep.subr.bf16.mxu0 %v3583_v56  ;;  %1864 = vmatprep.subr.bf16.mxu1 %v3587_v22 }
 0x630   :  { %1824 = vmatpush1.bf16.msra.mxu0 %v3591_v24  ;;  %1865 = vmatpush1.bf16.msra.mxu1 %v3593_v52 }
 0x631   :  { %1920 = vmatprep.subr.bf16.mxu0 %v3503_v40  ;;  %1961 = vmatprep.subr.bf16.mxu1 %v3505_v41 }
 0x6cb   :  { %v3673_v14 = vpop.f32.mrf.mxu0  ;;  %v3675_v0 = vpop.f32.mrf.mxu1 }
 0x6cc   :  { %3969 = vst [vmem:[#allocation29_spill] sm:$0xff] %v3673_v14  ;;  %3970 = vst [vmem:[#allocation26_spill] sm:$0xff] %v3675_v0 }
 0x6cd   :  { %v3677_v21 = vpop.f32.mrf.mxu0  ;;  %v3679_v15 = vpop.f32.mrf.mxu1 }
 0x6ce   :  { %3971 = vst [vmem:[#allocation28_spill] sm:$0xff] %v3677_v21  ;;  %3972 = vst [vmem:[#allocation31_spill] sm:$0xff] %v3679_v15  ;;  %v3978_v15 = vsub.s32 1, %v3253_v6 }
 0x6cf   :  { %v3681_v17 = vpop.f32.mrf.mxu0  ;;  %v3683_v18 = vpop.f32.mrf.mxu1 }
 0x6d0   :  { %3973 = vst [vmem:[#allocation33_spill] sm:$0xff] %v3681_v17  ;;  %3974 = vst [vmem:[#allocation30_spill] sm:$0xff] %v3683_v18  ;;  %v3698_v17 = vrot.slane %v1228_v19, %v3978_v15 }
 0x6d1   :  { %v3688_v9 = vpop.f32.mrf.mxu0  ;;  %v3690_v16 = vpop.f32.mrf.mxu1 }
 0x6d2   :  { %3975 = vst [vmem:[#allocation32_spill] sm:$0xff] %v3688_v9  ;;  %3976 = vst [vmem:[#allocation34_spill] sm:$0xff] %v3690_v16 }
 0x6d3   :  { %v1712_v50 = vpop.f32.mrf.mxu0  ;;  %v1753_v25 = vpop.f32.mrf.mxu1 }
 0x6d4   :  { %v1760_v7 = vadd.f32 %v1712_v50, %v1426_v53  ;;  %v1762_v16 = vadd.f32 %v1753_v25, %v1489_v4 }
 0x6d5   :  { %v1714_v18 = vpop.f32.mrf.mxu0  ;;  %v1755_v0 = vpop.f32.mrf.mxu1 }
 0x6d6   :  { %v1785_v21 = vadd.f32 %v3694_v23, %v1760_v7  ;;  %v1761_v14 = vadd.f32 %v1714_v18, %v1428_v26  ;;  %v1787_v32 = vadd.f32 %v3703_v20, %v1762_v16  ;;  %v1763_v36 = vadd.f32 %v1755_v0, %v1491_v27 }
 0x6d7   :  { %v1716_v10 = vpop.f32.mrf.mxu0  ;;  %v1757_v9 = vpop.f32.mrf.mxu1  ;;  %v3980_v7 = vsub.s32 3, %v3253_v6 }
 0x6d8   :  { %v1789_v39 = vmul.f32 0.5, %v1785_v21  ;;  %v1786_v38 = vadd.f32 %v3698_v17, %v1761_v14 }
 0x6d9   :  { %v1717_v53 = vpop.f32.mrf.mxu0  ;;  %v1758_v50 = vpop.f32.mrf.mxu1  ;;  %v3709_v26 = vrot.slane %v1228_v19, %v3980_v7 }
 0x6da   :  { %2748 = vtanh.f32 %v1789_v39  ;;  %v1793_v15 = vmul.f32 0.5, %v1786_v38 }
 0x6db   :  { %v1788_v4 = vadd.f32 %v3709_v26, %v1763_v36 }
 0x6dc   :  { %2750 = vtanh.f32 %v1793_v15 }
 0x6dd   :  { %2752 = vtanh.f32 %v1787_v32  ;;  %v1798_v10 = vmul.f32 0.5, %v1788_v4 }
 0x6df   :  { %2754 = vtanh.f32 %v1798_v10 }
 0x6e7   :  { %v2749_v57 = vpop.eup %2748 }
 0x6e8   :  { %v1791_v21 = vadd.f32 1.0, %v2749_v57 }
 0x6e9   :  { %v2751_v18 = vpop.eup %2750 }
 0x6ea   :  { %v1792_v14 = vmul.f32 0.5, %v1791_v21  ;;  %v1795_v9 = vadd.f32 1.0, %v2751_v18  ;;  %v2753_v38 = vpop.eup %2752 }
 0x6ec   :  { %v1796_v39 = vmul.f32 0.5, %v1795_v9  ;;  %v1803_v16 = vmul.f32 %v2753_v38, %v1792_v14  ;;  %v2755_v6 = vpop.eup %2754 }
 0x6ed   :  { %v1800_v27 = vadd.f32 1.0, %v2755_v6 }
 0x6ee   :  { %v1802_v25 = vmul.f32 0.0, %v1796_v39 }
 0x6ef   :  { %v1801_v32 = vmul.f32 0.5, %v1800_v27 }
 0x6f0   :  { %v3712_v53 = vadd.f32 %v1803_v16, %v1802_v25 }
 0x6f2   :  { %2756 = vtanh.f32 %v3712_v53 }
 0x6ff   :  { %v2757_v0 = vpop.eup %2756 }
 0x700   :  { %v1806_v36 = vmul.f32 %v2757_v0, %v1801_v32 }
 0x702   :  { %1807 = vst [vmem:[#allocation12] sm:$0xff] %v1806_v36  ;;  %v1808_v19 = vpack.c.bf16 %v1806_v36, %v1806_v36 }
 0x704   :  { %1842 = vmatmul.mubr.bf16.vlgmr.msra.gmra.mxu0 %v1808_v19  ;;  %1883 = vmatmul.mubr.bf16.vlgmr.msra.gmra.mxu1 %v1808_v19 }
 0x705   :  { %1921 = vmatpush1.bf16.msra.mxu0 %v3507_v35  ;;  %1962 = vmatpush1.bf16.msra.mxu1 %v3509_v59 }
 0x706   :  { %1922 = vmatprep.subr.bf16.mxu0 %v3515_v48  ;;  %1963 = vmatprep.subr.bf16.mxu1 %v3517_v1 }
 0x707   :  { %1952 = vmatprep.mubr.bf16.mxu0 %v3949_v49  ;;  %1993 = vmatprep.mubr.bf16.mxu1 %v3949_v49 }
 0x709   :  { %1923 = vmatpush1.bf16.msra.mxu0 %v3519_v42  ;;  %1964 = vmatpush1.bf16.msra.mxu1 %v3521_v43 }
 0x70a   :  { %1924 = vmatprep.subr.bf16.mxu0 %v3527_v44  ;;  %1965 = vmatprep.subr.bf16.mxu1 %v3529_v45 }
 0x70d   :  { %1925 = vmatpush1.bf16.msra.mxu0 %v3531_v46  ;;  %1966 = vmatpush1.bf16.msra.mxu1 %v3533_v47 }
 0x70e   :  { %1926 = vmatprep.subr.bf16.mxu0 %v3539_v3  ;;  %1967 = vmatprep.subr.bf16.mxu1 %v3541_v5 }
 0x711   :  { %1927 = vmatpush1.bf16.msra.mxu0 %v3543_v11  ;;  %1968 = vmatpush1.bf16.msra.mxu1 %v3545_v8 }
 0x712   :  { %1928 = vmatprep.subr.bf16.mxu0 %v3551_v63  ;;  %1969 = vmatprep.subr.bf16.mxu1 %v3553_v54 }
 0x715   :  { %1929 = vmatpush1.bf16.msra.mxu0 %v3555_v2  ;;  %1970 = vmatpush1.bf16.msra.mxu1 %v3557_v31 }
 0x716   :  { %1930 = vmatprep.subr.bf16.mxu0 %v3563_v61  ;;  %1971 = vmatprep.subr.bf16.mxu1 %v3565_v12 }
 0x719   :  { %1931 = vmatpush1.bf16.msra.mxu0 %v3567_v13  ;;  %1972 = vmatpush1.bf16.msra.mxu1 %v3569_v55 }
 0x71a   :  { %1932 = vmatprep.subr.bf16.mxu0 %v3575_v60  ;;  %1973 = vmatprep.subr.bf16.mxu1 %v3577_v62 }
 0x71d   :  { %1933 = vmatpush1.bf16.msra.mxu0 %v3579_v51  ;;  %1974 = vmatpush1.bf16.msra.mxu1 %v3581_v58 }
 0x71e   :  { %1934 = vmatprep.subr.bf16.mxu0 %v3583_v56  ;;  %1975 = vmatprep.subr.bf16.mxu1 %v3587_v22 }
 0x721   :  { %1935 = vmatpush1.bf16.msra.mxu0 %v3591_v24  ;;  %1976 = vmatpush1.bf16.msra.mxu1 %v3593_v52 }
 0x722   :  { %2031 = vmatprep.subr.bf16.mxu0 %v3503_v40  ;;  %2072 = vmatprep.subr.bf16.mxu1 %v3505_v41 }
 0x7c4   :  { %v1843_v50 = vpop.f32.mrf.mxu0  ;;  %v1884_v15 = vpop.f32.mrf.mxu1 }
 0x7c5   :  { %v1891_v7 = vadd.f32 %v1843_v50, %v3649_v28  ;;  %v1893_v39 = vadd.f32 %v1884_v15, %v3651_v29 }
 0x7c6   :  { %v1845_v4 = vpop.f32.mrf.mxu0  ;;  %v1886_v10 = vpop.f32.mrf.mxu1 }
 0x7c7   :  { %v1895_v57 = vadd.f32 %v1891_v7, %v3694_v23  ;;  %v1892_v21 = vadd.f32 %v1845_v4, %v3653_v30  ;;  %v1897_v27 = vadd.f32 %v1893_v39, %v3703_v20  ;;  %v1894_v28 = vadd.f32 %v1886_v10, %v3655_v33 }
 0x7c8   :  { %v1847_v18 = vpop.f32.mrf.mxu0  ;;  %v1888_v14 = vpop.f32.mrf.mxu1 }
 0x7c9   :  { %v1899_v9 = vmul.f32 0.5, %v1895_v57  ;;  %v1896_v38 = vadd.f32 %v1892_v21, %v3698_v17  ;;  %v1898_v32 = vadd.f32 %v1894_v28, %v3709_v26 }
 0x7ca   :  { %v1848_v25 = vpop.f32.mrf.mxu0  ;;  %v1889_v16 = vpop.f32.mrf.mxu1 }
 0x7cb   :  { %2758 = vtanh.f32 %v1899_v9  ;;  %v1903_v6 = vmul.f32 0.5, %v1896_v38  ;;  %v1908_v30 = vmul.f32 0.5, %v1898_v32 }
 0x7cd   :  { %2760 = vtanh.f32 %v1903_v6 }
 0x7ce   :  { %2762 = vtanh.f32 %v1897_v27 }
 0x7cf   :  { %2764 = vtanh.f32 %v1908_v30 }
 0x7d8   :  { %v2759_v0 = vpop.eup %2758 }
 0x7d9   :  { %v1901_v36 = vadd.f32 1.0, %v2759_v0 }
 0x7da   :  { %v2761_v19 = vpop.eup %2760 }
 0x7db   :  { %v1902_v50 = vmul.f32 0.5, %v1901_v36  ;;  %v1905_v29 = vadd.f32 1.0, %v2761_v19  ;;  %v2763_v7 = vpop.eup %2762  ;;  %v3981_v36 = vld [vmem:[#allocation21_spill] sm:$0xff] }
 0x7dc   :  { %v2765_v33 = vpop.eup %2764 }
 0x7dd   :  { %v1906_v15 = vmul.f32 0.5, %v1905_v29  ;;  %v1913_v57 = vmul.f32 %v2763_v7, %v1902_v50  ;;  %v1910_v10 = vadd.f32 1.0, %v2765_v33 }
 0x7df   :  { %v1912_v4 = vmul.f32 %v1906_v15, %v3712_v53  ;;  %v1911_v18 = vmul.f32 0.5, %v1910_v10 }
 0x7e1   :  { %v3758_v21 = vadd.f32 %v1913_v57, %v1912_v4 }
 0x7e3   :  { %2766 = vtanh.f32 %v3758_v21 }
 0x7f0   :  { %v2767_v14 = vpop.eup %2766 }
 0x7f1   :  { %v1916_v9 = vmul.f32 %v2767_v14, %v1911_v18 }
 0x7f3   :  { %1918 = vst [vmem:[#allocation12 + $0x8] sm:$0xff] %v1916_v9  ;;  %v1919_v39 = vpack.c.bf16 %v1916_v9, %v1916_v9 }
 0x7f5   :  { %1953 = vmatmul.mubr.bf16.vlgmr.msra.gmra.mxu0 %v1919_v39  ;;  %1994 = vmatmul.mubr.bf16.vlgmr.msra.gmra.mxu1 %v1919_v39 }
 0x7f6   :  { %2032 = vmatpush1.bf16.msra.mxu0 %v3507_v35  ;;  %2073 = vmatpush1.bf16.msra.mxu1 %v3509_v59 }
 0x7f7   :  { %2033 = vmatprep.subr.bf16.mxu0 %v3515_v48  ;;  %2074 = vmatprep.subr.bf16.mxu1 %v3517_v1 }
 0x7f8   :  { %2063 = vmatprep.mubr.bf16.mxu0 %v3949_v49  ;;  %2104 = vmatprep.mubr.bf16.mxu1 %v3949_v49 }
 0x7fa   :  { %2034 = vmatpush1.bf16.msra.mxu0 %v3519_v42  ;;  %2075 = vmatpush1.bf16.msra.mxu1 %v3521_v43 }
 0x7fb   :  { %2035 = vmatprep.subr.bf16.mxu0 %v3527_v44  ;;  %2076 = vmatprep.subr.bf16.mxu1 %v3529_v45 }
 0x7fe   :  { %2036 = vmatpush1.bf16.msra.mxu0 %v3531_v46  ;;  %2077 = vmatpush1.bf16.msra.mxu1 %v3533_v47 }
 0x7ff   :  { %2037 = vmatprep.subr.bf16.mxu0 %v3539_v3  ;;  %2078 = vmatprep.subr.bf16.mxu1 %v3541_v5 }
 0x802   :  { %2038 = vmatpush1.bf16.msra.mxu0 %v3543_v11  ;;  %2079 = vmatpush1.bf16.msra.mxu1 %v3545_v8 }
 0x803   :  { %2039 = vmatprep.subr.bf16.mxu0 %v3551_v63  ;;  %2080 = vmatprep.subr.bf16.mxu1 %v3553_v54 }
 0x806   :  { %2040 = vmatpush1.bf16.msra.mxu0 %v3555_v2  ;;  %2081 = vmatpush1.bf16.msra.mxu1 %v3557_v31 }
 0x807   :  { %2041 = vmatprep.subr.bf16.mxu0 %v3563_v61  ;;  %2082 = vmatprep.subr.bf16.mxu1 %v3565_v12 }
 0x80a   :  { %2042 = vmatpush1.bf16.msra.mxu0 %v3567_v13  ;;  %2083 = vmatpush1.bf16.msra.mxu1 %v3569_v55 }
 0x80b   :  { %2043 = vmatprep.subr.bf16.mxu0 %v3575_v60  ;;  %2084 = vmatprep.subr.bf16.mxu1 %v3577_v62 }
 0x80e   :  { %2044 = vmatpush1.bf16.msra.mxu0 %v3579_v51  ;;  %2085 = vmatpush1.bf16.msra.mxu1 %v3581_v58 }
 0x80f   :  { %2045 = vmatprep.subr.bf16.mxu0 %v3583_v56  ;;  %2086 = vmatprep.subr.bf16.mxu1 %v3587_v22 }
 0x812   :  { %2046 = vmatpush1.bf16.msra.mxu0 %v3591_v24  ;;  %2087 = vmatpush1.bf16.msra.mxu1 %v3593_v52 }
 0x813   :  { %2142 = vmatprep.subr.bf16.mxu0 %v3503_v40  ;;  %2183 = vmatprep.subr.bf16.mxu1 %v3505_v41 }
 0x8b5   :  { %v1954_v53 = vpop.f32.mrf.mxu0  ;;  %v1995_v38 = vpop.f32.mrf.mxu1 }
 0x8b6   :  { %v2002_v25 = vadd.f32 %v1954_v53, %v3657_v34  ;;  %v2004_v19 = vadd.f32 %v1995_v38, %v3981_v36  ;;  %v3982_v34 = vld [vmem:[#allocation22_spill] sm:$0xff] }
 0x8b7   :  { %v1956_v16 = vpop.f32.mrf.mxu0  ;;  %v1997_v6 = vpop.f32.mrf.mxu1 }
 0x8b8   :  { %v2006_v27 = vadd.f32 %v2002_v25, %v3694_v23  ;;  %v2003_v28 = vadd.f32 %v1956_v16, %v3661_v37  ;;  %v2008_v4 = vadd.f32 %v2004_v19, %v3703_v20  ;;  %v2005_v57 = vadd.f32 %v1997_v6, %v3982_v34  ;;  %v3984_v34 = vld [vmem:[#allocation25_spill] sm:$0xff] }
 0x8b9   :  { %v1958_v32 = vpop.f32.mrf.mxu0  ;;  %v1999_v30 = vpop.f32.mrf.mxu1 }
 0x8ba   :  { %v2010_v0 = vmul.f32 0.5, %v2006_v27  ;;  %v2007_v50 = vadd.f32 %v2003_v28, %v3698_v17  ;;  %v2009_v33 = vadd.f32 %v2005_v57, %v3709_v26 }
 0x8bb   :  { %v1959_v29 = vpop.f32.mrf.mxu0  ;;  %v2000_v15 = vpop.f32.mrf.mxu1 }
 0x8bc   :  { %2768 = vtanh.f32 %v2010_v0  ;;  %v2014_v7 = vmul.f32 0.5, %v2007_v50  ;;  %v2019_v37 = vmul.f32 0.5, %v2009_v33  ;;  %v3983_v50 = vld [vmem:[#allocation24_spill] sm:$0xff] }
 0x8be   :  { %2770 = vtanh.f32 %v2014_v7 }
 0x8bf   :  { %2772 = vtanh.f32 %v2008_v4 }
 0x8c0   :  { %2774 = vtanh.f32 %v2019_v37 }
 0x8c9   :  { %v2769_v10 = vpop.eup %2768 }
 0x8ca   :  { %v2012_v18 = vadd.f32 1.0, %v2769_v10 }
 0x8cb   :  { %v2771_v14 = vpop.eup %2770 }
 0x8cc   :  { %v2013_v9 = vmul.f32 0.5, %v2012_v18  ;;  %v2016_v39 = vadd.f32 1.0, %v2771_v14  ;;  %v2773_v38 = vpop.eup %2772  ;;  %v3985_v18 = vld [vmem:[#allocation23_spill] sm:$0xff] }
 0x8cd   :  { %v2775_v6 = vpop.eup %2774 }
 0x8ce   :  { %v2017_v53 = vmul.f32 0.5, %v2016_v39  ;;  %v2024_v16 = vmul.f32 %v2773_v38, %v2013_v9  ;;  %v2021_v28 = vadd.f32 1.0, %v2775_v6  ;;  %v3986_v38 = vld [vmem:[#allocation27_spill] sm:$0xff] }
 0x8d0   :  { %v2023_v25 = vmul.f32 %v2017_v53, %v3758_v21  ;;  %v2022_v32 = vmul.f32 0.5, %v2021_v28 }
 0x8d2   :  { %v3804_v27 = vadd.f32 %v2024_v16, %v2023_v25 }
 0x8d4   :  { %2776 = vtanh.f32 %v3804_v27 }
 0x8e1   :  { %v2777_v30 = vpop.eup %2776 }
 0x8e2   :  { %v2027_v0 = vmul.f32 %v2777_v30, %v2022_v32 }
 0x8e4   :  { %2029 = vst [vmem:[#allocation12 + $0x10] sm:$0xff] %v2027_v0  ;;  %v2030_v36 = vpack.c.bf16 %v2027_v0, %v2027_v0 }
 0x8e6   :  { %2064 = vmatmul.mubr.bf16.vlgmr.msra.gmra.mxu0 %v2030_v36  ;;  %2105 = vmatmul.mubr.bf16.vlgmr.msra.gmra.mxu1 %v2030_v36 }
 0x8e7   :  { %2143 = vmatpush1.bf16.msra.mxu0 %v3507_v35  ;;  %2184 = vmatpush1.bf16.msra.mxu1 %v3509_v59 }
 0x8e8   :  { %2144 = vmatprep.subr.bf16.mxu0 %v3515_v48  ;;  %2185 = vmatprep.subr.bf16.mxu1 %v3517_v1 }
 0x8e9   :  { %2174 = vmatprep.mubr.bf16.mxu0 %v3949_v49  ;;  %2215 = vmatprep.mubr.bf16.mxu1 %v3949_v49 }
 0x8eb   :  { %2145 = vmatpush1.bf16.msra.mxu0 %v3519_v42  ;;  %2186 = vmatpush1.bf16.msra.mxu1 %v3521_v43 }
 0x8ec   :  { %2146 = vmatprep.subr.bf16.mxu0 %v3527_v44  ;;  %2187 = vmatprep.subr.bf16.mxu1 %v3529_v45 }
 0x8ef   :  { %2147 = vmatpush1.bf16.msra.mxu0 %v3531_v46  ;;  %2188 = vmatpush1.bf16.msra.mxu1 %v3533_v47 }
 0x8f0   :  { %2148 = vmatprep.subr.bf16.mxu0 %v3539_v3  ;;  %2189 = vmatprep.subr.bf16.mxu1 %v3541_v5 }
 0x8f3   :  { %2149 = vmatpush1.bf16.msra.mxu0 %v3543_v11  ;;  %2190 = vmatpush1.bf16.msra.mxu1 %v3545_v8 }
 0x8f4   :  { %2150 = vmatprep.subr.bf16.mxu0 %v3551_v63  ;;  %2191 = vmatprep.subr.bf16.mxu1 %v3553_v54 }
 0x8f7   :  { %2151 = vmatpush1.bf16.msra.mxu0 %v3555_v2  ;;  %2192 = vmatpush1.bf16.msra.mxu1 %v3557_v31 }
 0x8f8   :  { %2152 = vmatprep.subr.bf16.mxu0 %v3563_v61  ;;  %2193 = vmatprep.subr.bf16.mxu1 %v3565_v12 }
 0x8fb   :  { %2153 = vmatpush1.bf16.msra.mxu0 %v3567_v13  ;;  %2194 = vmatpush1.bf16.msra.mxu1 %v3569_v55 }
 0x8fc   :  { %2154 = vmatprep.subr.bf16.mxu0 %v3575_v60  ;;  %2195 = vmatprep.subr.bf16.mxu1 %v3577_v62 }
 0x8ff   :  { %2155 = vmatpush1.bf16.msra.mxu0 %v3579_v51  ;;  %2196 = vmatpush1.bf16.msra.mxu1 %v3581_v58 }
 0x900   :  { %2156 = vmatprep.subr.bf16.mxu0 %v3583_v56  ;;  %2197 = vmatprep.subr.bf16.mxu1 %v3587_v22 }
 0x903   :  { %2157 = vmatpush1.bf16.msra.mxu0 %v3591_v24  ;;  %2198 = vmatpush1.bf16.msra.mxu1 %v3593_v52 }
 0x904   :  { %2253 = vmatprep.subr.bf16.mxu0 %v3503_v40  ;;  %2294 = vmatprep.subr.bf16.mxu1 %v3505_v41 }
 0x9a6   :  { %v2065_v21 = vpop.f32.mrf.mxu0  ;;  %v2106_v19 = vpop.f32.mrf.mxu1 }
 0x9a7   :  { %v2113_v29 = vadd.f32 %v2065_v21, %v3983_v50  ;;  %v2115_v14 = vadd.f32 %v2106_v19, %v3985_v18 }
 0x9a8   :  { %v2067_v15 = vpop.f32.mrf.mxu0  ;;  %v2108_v7 = vpop.f32.mrf.mxu1 }
 0x9a9   :  { %v2117_v4 = vadd.f32 %v2113_v29, %v3694_v23  ;;  %v2114_v57 = vadd.f32 %v2067_v15, %v3984_v34  ;;  %v2119_v53 = vadd.f32 %v2115_v14, %v3703_v20  ;;  %v2116_v25 = vadd.f32 %v2108_v7, %v3986_v38 }
 0x9aa   :  { %v2069_v33 = vpop.f32.mrf.mxu0  ;;  %v2110_v37 = vpop.f32.mrf.mxu1 }
 0x9ab   :  { %v2121_v10 = vmul.f32 0.5, %v2117_v4  ;;  %v2118_v9 = vadd.f32 %v2114_v57, %v3698_v17  ;;  %v2120_v16 = vadd.f32 %v2116_v25, %v3709_v26  ;;  %v3991_v25 = vld [vmem:[#allocation33_spill] sm:$0xff] }
 0x9ac   :  { %v2070_v40 = vpop.f32.mrf.mxu0  ;;  %v2111_v39 = vpop.f32.mrf.mxu1 }
 0x9ad   :  { %2778 = vtanh.f32 %v2121_v10  ;;  %v2125_v41 = vmul.f32 0.5, %v2118_v9  ;;  %v2130_v6 = vmul.f32 0.5, %v2120_v16 }
 0x9af   :  { %2780 = vtanh.f32 %v2125_v41 }
 0x9b0   :  { %2782 = vtanh.f32 %v2119_v53 }
 0x9b1   :  { %2784 = vtanh.f32 %v2130_v6 }
 0x9ba   :  { %v2779_v28 = vpop.eup %2778 }
 0x9bb   :  { %v2123_v32 = vadd.f32 1.0, %v2779_v28 }
 0x9bc   :  { %v2781_v30 = vpop.eup %2780 }
 0x9bd   :  { %v2124_v0 = vmul.f32 0.5, %v2123_v32  ;;  %v2127_v36 = vadd.f32 1.0, %v2781_v30  ;;  %v2783_v19 = vpop.eup %2782  ;;  %v3992_v30 = vld [vmem:[#allocation32_spill] sm:$0xff] }
 0x9be   :  { %v2785_v7 = vpop.eup %2784 }
 0x9bf   :  { %v2128_v21 = vmul.f32 0.5, %v2127_v36  ;;  %v2135_v29 = vmul.f32 %v2783_v19, %v2124_v0  ;;  %v2132_v4 = vadd.f32 1.0, %v2785_v7 }
 0x9c1   :  { %v2134_v50 = vmul.f32 %v2128_v21, %v3804_v27  ;;  %v2133_v34 = vmul.f32 0.5, %v2132_v4 }
 0x9c3   :  { %v3850_v15 = vadd.f32 %v2135_v29, %v2134_v50  ;;  %v3993_v50 = vld [vmem:[#allocation30_spill] sm:$0xff] }
 0x9c5   :  { %2786 = vtanh.f32 %v3850_v15 }
 0x9d2   :  { %v2787_v57 = vpop.eup %2786 }
 0x9d3   :  { %v2138_v33 = vmul.f32 %v2787_v57, %v2133_v34 }
 0x9d5   :  { %2140 = vst [vmem:[#allocation12 + $0x18] sm:$0xff] %v2138_v33  ;;  %v2141_v37 = vpack.c.bf16 %v2138_v33, %v2138_v33  ;;  %v3994_v33 = vld [vmem:[#allocation34_spill] sm:$0xff] }
 0x9d7   :  { %2175 = vmatmul.mubr.bf16.vlgmr.msra.gmra.mxu0 %v2141_v37  ;;  %2216 = vmatmul.mubr.bf16.vlgmr.msra.gmra.mxu1 %v2141_v37 }
 0x9d8   :  { %2254 = vmatpush1.bf16.msra.mxu0 %v3507_v35  ;;  %2295 = vmatpush1.bf16.msra.mxu1 %v3509_v59  ;;  %v3987_v59 = vld [vmem:[#allocation29_spill] sm:$0xff] }
 0x9d9   :  { %2255 = vmatprep.subr.bf16.mxu0 %v3515_v48  ;;  %2296 = vmatprep.subr.bf16.mxu1 %v3517_v1 }
 0x9da   :  { %2285 = vmatprep.mubr.bf16.mxu0 %v3949_v49  ;;  %2326 = vmatprep.mubr.bf16.mxu1 %v3949_v49 }
 0x9dc   :  { %2256 = vmatpush1.bf16.msra.mxu0 %v3519_v42  ;;  %2297 = vmatpush1.bf16.msra.mxu1 %v3521_v43 }
 0x9dd   :  { %2257 = vmatprep.subr.bf16.mxu0 %v3527_v44  ;;  %2298 = vmatprep.subr.bf16.mxu1 %v3529_v45  ;;  %v3988_v44 = vld [vmem:[#allocation28_spill] sm:$0xff] }
 0x9e0   :  { %2258 = vmatpush1.bf16.msra.mxu0 %v3531_v46  ;;  %2299 = vmatpush1.bf16.msra.mxu1 %v3533_v47 }
 0x9e1   :  { %2259 = vmatprep.subr.bf16.mxu0 %v3539_v3  ;;  %2300 = vmatprep.subr.bf16.mxu1 %v3541_v5  ;;  %v3989_v5 = vld [vmem:[#allocation26_spill] sm:$0xff] }
 0x9e4   :  { %2260 = vmatpush1.bf16.msra.mxu0 %v3543_v11  ;;  %2301 = vmatpush1.bf16.msra.mxu1 %v3545_v8 }
 0x9e5   :  { %2261 = vmatprep.subr.bf16.mxu0 %v3551_v63  ;;  %2302 = vmatprep.subr.bf16.mxu1 %v3553_v54 }
 0x9e8   :  { %2262 = vmatpush1.bf16.msra.mxu0 %v3555_v2  ;;  %2303 = vmatpush1.bf16.msra.mxu1 %v3557_v31 }
 0x9e9   :  { %2263 = vmatprep.subr.bf16.mxu0 %v3563_v61  ;;  %2304 = vmatprep.subr.bf16.mxu1 %v3565_v12  ;;  %v3990_v61 = vld [vmem:[#allocation31_spill] sm:$0xff] }
 0x9ec   :  { %2264 = vmatpush1.bf16.msra.mxu0 %v3567_v13  ;;  %2305 = vmatpush1.bf16.msra.mxu1 %v3569_v55 }
 0x9ed   :  { %2265 = vmatprep.subr.bf16.mxu0 %v3575_v60  ;;  %2306 = vmatprep.subr.bf16.mxu1 %v3577_v62 }
 0x9f0   :  { %2266 = vmatpush1.bf16.msra.mxu0 %v3579_v51  ;;  %2307 = vmatpush1.bf16.msra.mxu1 %v3581_v58 }
 0x9f1   :  { %2267 = vmatprep.subr.bf16.mxu0 %v3583_v56  ;;  %2308 = vmatprep.subr.bf16.mxu1 %v3587_v22 }
 0x9f4   :  { %2268 = vmatpush1.bf16.msra.mxu0 %v3591_v24  ;;  %2309 = vmatpush1.bf16.msra.mxu1 %v3593_v52 }
 0xa97   :  { %v2176_v49 = vpop.f32.mrf.mxu0  ;;  %v2217_v35 = vpop.f32.mrf.mxu1 }
 0xa98   :  { %v2224_v48 = vadd.f32 %v2176_v49, %v3987_v59  ;;  %v2226_v11 = vadd.f32 %v2217_v35, %v3989_v5 }
 0xa99   :  { %v2178_v1 = vpop.f32.mrf.mxu0  ;;  %v2219_v42 = vpop.f32.mrf.mxu1 }
 0xa9a   :  { %v2228_v43 = vadd.f32 %v2224_v48, %v3694_v23  ;;  %v2225_v45 = vadd.f32 %v2178_v1, %v3988_v44  ;;  %v2230_v31 = vadd.f32 %v2226_v11, %v3703_v20  ;;  %v2227_v12 = vadd.f32 %v2219_v42, %v3990_v61 }
 0xa9b   :  { %v2180_v46 = vpop.f32.mrf.mxu0  ;;  %v2221_v47 = vpop.f32.mrf.mxu1 }
 0xa9c   :  { %v2232_v3 = vmul.f32 0.5, %v2228_v43  ;;  %v2229_v8 = vadd.f32 %v2225_v45, %v3698_v17  ;;  %v2231_v13 = vadd.f32 %v2227_v12, %v3709_v26 }
 0xa9d   :  { %v2181_v63 = vpop.f32.mrf.mxu0  ;;  %v2222_v54 = vpop.f32.mrf.mxu1 }
 0xa9e   :  { %2788 = vtanh.f32 %v2232_v3  ;;  %v2236_v2 = vmul.f32 0.5, %v2229_v8  ;;  %v2241_v55 = vmul.f32 0.5, %v2231_v13 }
 0xaa0   :  { %2790 = vtanh.f32 %v2236_v2 }
 0xaa1   :  { %2792 = vtanh.f32 %v2230_v31 }
 0xaa2   :  { %2794 = vtanh.f32 %v2241_v55 }
 0xaab   :  { %v2789_v60 = vpop.eup %2788 }
 0xaac   :  { %v2234_v62 = vadd.f32 1.0, %v2789_v60 }
 0xaad   :  { %v2791_v51 = vpop.eup %2790 }
 0xaae   :  { %v2235_v58 = vmul.f32 0.5, %v2234_v62  ;;  %v2238_v56 = vadd.f32 1.0, %v2791_v51  ;;  %v2793_v24 = vpop.eup %2792 }
 0xaaf   :  { %v2795_v18 = vpop.eup %2794 }
 0xab0   :  { %v2239_v22 = vmul.f32 0.5, %v2238_v56  ;;  %v2246_v27 = vmul.f32 %v2793_v24, %v2235_v58  ;;  %v2243_v14 = vadd.f32 1.0, %v2795_v18 }
 0xab2   :  { %v2245_v52 = vmul.f32 %v2239_v22, %v3850_v15  ;;  %v2244_v9 = vmul.f32 0.5, %v2243_v14 }
 0xab4   :  { %v2247_v10 = vadd.f32 %v2246_v27, %v2245_v52 }
 0xab6   :  { %2796 = vtanh.f32 %v2247_v10 }
 0xac3   :  { %v2797_v40 = vpop.eup %2796 }
 0xac4   :  { %v2249_v39 = vmul.f32 %v2797_v40, %v2244_v9 }
 0xac6   :  { %2251 = vst [vmem:[#allocation12 + $0x20] sm:$0xff] %v2249_v39  ;;  %v2252_v41 = vpack.c.bf16 %v2249_v39, %v2249_v39 }
 0xac8   :  { %2286 = vmatmul.mubr.bf16.vlgmr.msra.gmra.mxu0 %v2252_v41  ;;  %2327 = vmatmul.mubr.bf16.vlgmr.msra.gmra.mxu1 %v2252_v41 }
 0xb88   :  { %v2287_v53 = vpop.f32.mrf.mxu0  ;;  %v2328_v38 = vpop.f32.mrf.mxu1 }
 0xb89   :  { %v2335_v16 = vadd.f32 %v2287_v53, %v3991_v25  ;;  %v2337_v29 = vadd.f32 %v2328_v38, %v3993_v50 }
 0xb8a   :  { %v2289_v6 = vpop.f32.mrf.mxu0  ;;  %v2330_v28 = vpop.f32.mrf.mxu1 }
 0xb8b   :  { %v2339_v32 = vadd.f32 %v2335_v16, %v3694_v23  ;;  %v2336_v0 = vadd.f32 %v2289_v6, %v3992_v30  ;;  %v2341_v57 = vadd.f32 %v2337_v29, %v3703_v20  ;;  %v2338_v37 = vadd.f32 %v2330_v28, %v3994_v33 }
 0xb8c   :  { %v2291_v36 = vpop.f32.mrf.mxu0  ;;  %v2332_v21 = vpop.f32.mrf.mxu1 }
 0xb8d   :  { %v2343_v19 = vmul.f32 0.5, %v2339_v32  ;;  %v2340_v15 = vadd.f32 %v2336_v0, %v3698_v17  ;;  %v2342_v23 = vadd.f32 %v2338_v37, %v3709_v26 }
 0xb8e   :  { %v2292_v7 = vpop.f32.mrf.mxu0  ;;  %v2333_v4 = vpop.f32.mrf.mxu1 }
 0xb8f   :  { %2798 = vtanh.f32 %v2343_v19  ;;  %v2347_v34 = vmul.f32 0.5, %v2340_v15  ;;  %v2352_v49 = vmul.f32 0.5, %v2342_v23 }
 0xb91   :  { %2800 = vtanh.f32 %v2347_v34 }
 0xb92   :  { %2802 = vtanh.f32 %v2341_v57 }
 0xb93   :  { %2804 = vtanh.f32 %v2352_v49 }
 0xb9c   :  { %v2799_v35 = vpop.eup %2798 }
 0xb9d   :  { %v2345_v59 = vadd.f32 1.0, %v2799_v35 }
 0xb9e   :  { %v2801_v48 = vpop.eup %2800 }
 0xb9f   :  { %v2346_v1 = vmul.f32 0.5, %v2345_v59  ;;  %v2349_v42 = vadd.f32 1.0, %v2801_v48  ;;  %v2803_v43 = vpop.eup %2802 }
 0xba0   :  { %v2805_v20 = vpop.eup %2804 }
 0xba1   :  { %v2350_v17 = vmul.f32 0.5, %v2349_v42  ;;  %v2357_v45 = vmul.f32 %v2803_v43, %v2346_v1  ;;  %v2354_v47 = vadd.f32 1.0, %v2805_v20 }
 0xba3   :  { %v2356_v44 = vmul.f32 %v2350_v17, %v2247_v10  ;;  %v2355_v3 = vmul.f32 0.5, %v2354_v47 }
 0xba5   :  { %v2358_v46 = vadd.f32 %v2357_v45, %v2356_v44 }
 0xba7   :  { %2806 = vtanh.f32 %v2358_v46  ;;  %2366 = vst [vmem:[#allocation15 + $0x8] sm:$0xff] %v2358_v46 }
 0xbb4   :  { %v2807_v26 = vpop.eup %2806 }
 0xbb5   :  { %v2360_v5 = vmul.f32 %v2807_v26, %v2355_v3 }
 0xbb7   :  { %2362 = vst [vmem:[#allocation12 + $0x28] sm:$0xff] %v2360_v5  ;;  %2364 = vst [vmem:[#allocation13 + $0x8] sm:$0xff] %v2360_v5 }
 0xbb8   :  { %2921 = shalt.err (!%p2918_p1)
}
 0xbb9   :  { %2390 = dma.vmem_to_hbm [thread:$0]  %s2385_s13, 256, %s3928_s8, [#allocation14], %s2985_s23, %s2985_s23, %s2986_s24  }
 0xbba   :  { %s2930_s1 = scalar_lea.vmem %s2373_s17, 768  ;;  %p2935_p3 = scmp.lt.s32.totalorder %s2373_s17, %s2373_s17 }
 0xbbb   :  { %p2931_p2 = scmp.ne.s32.totalorder %s2373_s17, %s2930_s1  ;;  %p2936_p4 = scmp.lt.s32.totalorder %s2930_s1, %s2930_s1 }
 0xbbd   :  { %p2937_p5 = por %p2936_p4, %p2935_p3 }
 0xbbf   :  { %p2938_p6 = pnand %p2937_p5, %p2931_p2 }
 0xbc1   :  { %2941 = shalt.err (!%p2938_p6)
}
 0xbc2   :  { %2378 = dma.vmem_to_hbm [thread:$0]  %s2373_s17, 768, %s3927_s7, [#allocation5], %s2985_s23, %s2985_s23, %s2986_s24  }
 0xbc3   :  { %s2950_s27 = scalar_lea.vmem %s2397_s19, 256  ;;  %p2955_p8 = scmp.lt.s32.totalorder %s2397_s19, %s2397_s19 }
 0xbc4   :  { %p2951_p7 = scmp.ne.s32.totalorder %s2397_s19, %s2950_s27  ;;  %p2956_p9 = scmp.lt.s32.totalorder %s2950_s27, %s2950_s27 }
 0xbc6   :  { %p2957_p10 = por %p2956_p9, %p2955_p8 }
 0xbc8   :  { %p2958_p11 = pnand %p2957_p10, %p2951_p7 }
 0xbca   :  { %2961 = shalt.err (!%p2958_p11)
}
 0xbcb   :  { %2402 = dma.vmem_to_hbm [thread:$0]  %s2397_s19, 256, %s3929_s9, [#allocation14], %s2985_s23, %s2985_s23, %s2986_s24  }
 0xbcc   :  { %2976 = dma.done.wait [#allocation5], 768  }
 0xbcd   :  { %2977 = vsyncadd [#allocation5], 4294966528 }
 0xbce   :  { %2978 = dma.done.wait [#allocation14], 512  }
 0xbcf   :  { %2979 = vsyncadd [#allocation14], 4294966784 }
 0xbd0   :  { %2412 = vsyncpa [#allocation4], 1 }
 0xbd1   :  { %2413 = vsyncpa [#allocation7], 1 }
 0xbd2   :  { %2414 = vsyncpa [#allocation10], 1 }
 0xbd3   :  { %2415 = vsyncpa [#allocation5], 1 }
 0xbd4   :  { %2416 = vsyncpa [#allocation14], 1 }

</bundles_post_ra>
